<compile_context>
chip_gen: v5e
topology: v5e:2x2
jax: 0.10.0
libtpu: 0.0.40
codegen_flags: <defaults>
</compile_context>

<pallas_src>
import jax
import jax.numpy as jnp
from jax.experimental import pallas as pl
from jax.experimental.pallas import tpu as pltpu

GROUP = 128          # batch elements interleaved per lane-dense row
ROWS_PER_TILE = 512  # grid tile: 512 rows * 128 = 65536 batch elements / step


def _linear_kernel(x_ref, m_ref, b_ref, o_ref):
    # x_ref: (TR, Cin*GROUP)        lane-interleaved input rows
    # m_ref: (Cin*GROUP, Cout*GROUP) = kron(I_GROUP, W^T), VMEM-resident
    # b_ref: (1, Cout*GROUP)        bias tiled across the lane groups
    # o_ref: (TR, Cout*GROUP)       lane-interleaved output rows
    acc = jnp.dot(
        x_ref[...], m_ref[...],
        preferred_element_type=jnp.float32,
        precision=jax.lax.Precision.HIGHEST,   # f32-accurate MXU path
    )
    o_ref[...] = (acc + b_ref[...]).astype(o_ref.dtype)


def make_linear_pallas(weight, bias, *, rows_per_tile=ROWS_PER_TILE):
    """Factory: returns a jitted y = x @ W.T + b (nn.Linear(3,4) forward)."""
    out_f, in_f = weight.shape
    assert bias.shape == (out_f,)

    # Hoisted per-parameter constants (built once, not per call):
    #   M[g*in_f + k, g*out_f + j] = W[j, k]  (lane-group-local Linear)
    m_mat = jnp.kron(jnp.eye(GROUP, dtype=weight.dtype), weight.T)  # (in_f*G, out_f*G)
    b_tiled = jnp.tile(bias, GROUP)[None, :]                        # (1, out_f*G)

    def apply(x):
        assert x.shape[-1] == in_f
        lead = x.shape[:-1]
        x2 = x.reshape(-1, in_f)
        b_orig = x2.shape[0]

        # Pad batch to a multiple of GROUP so the lane-dense bit-cast is legal.
        b_pad = pl.cdiv(b_orig, GROUP) * GROUP
        if b_pad != b_orig:
            x2 = jnp.pad(x2, ((0, b_pad - b_orig), (0, 0)))
        nrows = b_pad // GROUP
        tr = min(rows_per_tile, nrows)  # either full extent or a multiple of 8

        # Free row-major reshape (no transpose, no extra HBM pass).
        x_r = x2.reshape(nrows, in_f * GROUP)

        out_r = pl.pallas_call(
            _linear_kernel,
            out_shape=jax.ShapeDtypeStruct((nrows, out_f * GROUP), x.dtype),
            grid=(pl.cdiv(nrows, tr),),
            in_specs=[
                pl.BlockSpec((tr, in_f * GROUP), lambda i: (i, 0)),
                # Constant index_maps: parameters DMA'd once, stay VMEM-resident.
                pl.BlockSpec((in_f * GROUP, out_f * GROUP), lambda i: (0, 0)),
                pl.BlockSpec((1, out_f * GROUP), lambda i: (0, 0)),
            ],
            out_specs=pl.BlockSpec((tr, out_f * GROUP), lambda i: (i, 0)),
            compiler_params=pltpu.CompilerParams(
                dimension_semantics=("parallel",)),  # v7x: shard across 2 TCs
        )(x_r, m_mat, b_tiled)

        # Free reshape back to (B, Cout), drop batch padding.
        y = out_r.reshape(b_pad, out_f)[:b_orig]
        return y.reshape(*lead, out_f)

    return jax.jit(apply)


def init_params(key):
    """Deterministic init matching nn.Linear(3, 4) parameter shapes."""
    in_features, out_features = 3, 4
    kw, kb = jax.random.split(key)
    bound = 1.0 / jnp.sqrt(in_features)
    weight = jax.random.uniform(
        kw, (out_features, in_features), jnp.float32, -bound, bound
    )
    bias = jax.random.uniform(kb, (out_features,), jnp.float32, -bound, bound)
    return weight, bias


if __name__ == "__main__":
    key = jax.random.PRNGKey(0)
    kx, kp = jax.random.split(key)

    # Batch of 8 vectors of size 3 (the Linear's in_features).
    x = jax.random.normal(kx, (8, 3), dtype=jnp.float32)
    weight, bias = init_params(kp)

    linear = make_linear_pallas(weight, bias)
    out = jax.block_until_ready(linear(x))

    # Sanity check against plain JAX reference.
    ref = x @ weight.T + bias
    assert out.shape == (8, 4)
    assert jnp.allclose(out, ref, atol=1e-5, rtol=1e-5)

    print("KERNEL_OK")
</pallas_src>

<mosaic_0001>
module attributes {stable_mosaic.version = 11 : i64} {
  func.func @_linear_kernel(%arg0: i32, %arg1: memref<1x384xf32, #tpu.memory_space<vmem>>, %arg2: memref<384x512xf32, #tpu.memory_space<vmem>>, %arg3: memref<1x512xf32, #tpu.memory_space<vmem>>, %arg4: memref<1x512xf32, #tpu.memory_space<vmem>>) attributes {dimension_semantics = [#tpu.dimension_semantics<parallel>], iteration_bounds = array<i64: 1>, scalar_prefetch = 0 : i64, scratch_operands = 0 : i64, tpu.core_type = #tpu.core_type<tc>, window_params = [{transform_indices = @transform_0, window_bounds = array<i64: 1, 384>}, {pipeline_mode = #tpu.pipeline_mode<synchronous>, transform_indices = @transform_1, window_bounds = array<i64: 384, 512>}, {pipeline_mode = #tpu.pipeline_mode<synchronous>, transform_indices = @transform_2, window_bounds = array<i64: 1, 512>}, {transform_indices = @transform_3, window_bounds = array<i64: 1, 512>}]} {
    %c0 = arith.constant 0 : index
    %c0_0 = arith.constant 0 : index
    %0 = vector.load %arg1[%c0, %c0_0] : memref<1x384xf32, #tpu.memory_space<vmem>>, vector<1x384xf32>
    %c0_1 = arith.constant 0 : index
    %c0_2 = arith.constant 0 : index
    %1 = vector.load %arg2[%c0_1, %c0_2] : memref<384x512xf32, #tpu.memory_space<vmem>>, vector<384x512xf32>
    %cst = arith.constant dense<0.000000e+00> : vector<1x512xf32>
    %2 = tpu.matmul %0, %1, %cst {dimension_numbers = #tpu.dot_dimension_numbers<[1], [0], [0], [1], [0, 0, 1, 1], [], []>, precision = #tpu.contract_precision<fp32>} : vector<1x384xf32>, vector<384x512xf32>, vector<1x512xf32> -> vector<1x512xf32>
    %c0_3 = arith.constant 0 : index
    %c0_4 = arith.constant 0 : index
    %3 = vector.load %arg3[%c0_3, %c0_4] : memref<1x512xf32, #tpu.memory_space<vmem>>, vector<1x512xf32>
    %4 = arith.addf %2, %3 : vector<1x512xf32>
    %c0_5 = arith.constant 0 : index
    %c0_6 = arith.constant 0 : index
    %5 = vector.load %arg4[%c0_5, %c0_6] : memref<1x512xf32, #tpu.memory_space<vmem>>, vector<1x512xf32>
    tpu.vector_store %arg4[%c0_5, %c0_6], %4 {strides = array<i32>} : memref<1x512xf32, #tpu.memory_space<vmem>>, vector<1x512xf32>,
    return
  }
  func.func @transform_0(%arg0: i32) -> (i32, i32) {
    %c0_i32 = arith.constant 0 : i32
    %c0_i32_0 = arith.constant 0 : i32
    return %arg0, %c0_i32 : i32, i32
  }
  func.func @transform_1(%arg0: i32) -> (i32, i32) {
    %c0_i32 = arith.constant 0 : i32
    %c0_i32_0 = arith.constant 0 : i32
    %c0_i32_1 = arith.constant 0 : i32
    return %c0_i32, %c0_i32_0 : i32, i32
  }
  func.func @transform_2(%arg0: i32) -> (i32, i32) {
    %c0_i32 = arith.constant 0 : i32
    %c0_i32_0 = arith.constant 0 : i32
    %c0_i32_1 = arith.constant 0 : i32
    return %c0_i32, %c0_i32_0 : i32, i32
  }
  func.func @transform_3(%arg0: i32) -> (i32, i32) {
    %c0_i32 = arith.constant 0 : i32
    %c0_i32_0 = arith.constant 0 : i32
    return %arg0, %c0_i32 : i32, i32
  }
}

</mosaic_0001>

<bundles_post_ra>
// kernel: apply.1
= control target key start
LH: loop header
LB: loop body
LE: loop exit
PB: predicated region body
PF: predicated region fallthrough
CT: control target
= control target key end

     0   :  { %8 = vsyncpa [#allocation3], 0  ;;  %s4387_s15 = smov [#allocation2]   ;;  %s4388_s17 = smov 512   ;;  %s7437_s0 = inlined_call_operand.vmem [shape: f32[1,384], index: 0, kind: input, shape index: {}]   ;;  %s7438_s1 = inlined_call_operand.hbm [shape: f32[384,512], index: 1, kind: input, shape index: {}]   ;;  %s7439_s2 = inlined_call_operand.vmem [shape: f32[1,512], index: 2, kind: input, shape index: {}]   ;;  %s7440_s3 = inlined_call_operand.vmem [shape: f32[1,512], index: 3, kind: output, shape index: {}]  }
   0x1   :  { %s15_s14 = sshll.u32 %s7438_s1, 4  ;;  %s17_s16 = sshll.u32 %s4387_s15, 4  ;;  %s16_s14 = int_to_ptr.hbm [resolvable:$true] %s15_s14  ;;  %s18_s16 = int_to_ptr.vmem [resolvable:$true] %s17_s16 }
   0x2   :  { %s4389_s18 = smov 32  }
   0x3   :  { %23 = dma.hbm_to_vmem [thread:$0]  %s16_s14, 24576, %s18_s16, [#allocation3], %s4388_s17, %s4388_s17, %s4389_s18  }
   0x4   :  { %4385 = dma.done.wait [#allocation3], 24576  }
   0x5   :  { %4386 = vsyncadd [#allocation3], 4294942720  ;;  %v91_v0 = vld [vmem:[#allocation2 + $0x1e0] sm:$0xff]  ;;  %vm4339_vm0 = vcmask 1040384   ;;  %vm4341_vm1 = vcmask 1042434   ;;  %vm4343_vm2 = vcmask 1041408  }
   0x6   :  { %v87_v1 = vld [vmem:[#allocation2 + $0x1c0] sm:$0xff]  ;;  %v4413_v3 = vand.u32 4294901760, %v91_v0 }
   0x7   :  { %v83_v2 = vld [vmem:[#allocation2 + $0x1a0] sm:$0xff]  ;;  %v4415_v4 = vand.u32 4294901760, %v87_v1 }
   0x8   :  { %v4417_v5 = vand.u32 4294901760, %v83_v2  ;;  %v79_v6 = vld [vmem:[#allocation2 + $0x180] sm:$0xff]  ;;  %241 = vmatpush.msra.mxu0 %v4413_v3  ;;  %v4427_v14 = vsub.f32 %v91_v0, %v4413_v3  ;;  %437 = vmatpush.msra.mxu3 %v4413_v3 }
   0x9   :  { %v75_v7 = vld [vmem:[#allocation2 + $0x160] sm:$0xff]  ;;  %v4419_v9 = vand.u32 4294901760, %v79_v6  ;;  %v4430_v15 = vsub.f32 %v87_v1, %v4415_v4 }
   0xa   :  { %v71_v8 = vld [vmem:[#allocation2 + $0x140] sm:$0xff]  ;;  %v4421_v10 = vand.u32 4294901760, %v75_v7  ;;  %v4434_v16 = vsub.f32 %v83_v2, %v4417_v5  ;;  %243 = vmatpush.msra.mxu0 %v4415_v4  ;;  %384 = vmatpush.msra.mxu2 %v4427_v14  ;;  %v283_v22 = vand.u32 4294901760, %v4427_v14 }
   0xb   :  { %v4423_v11 = vand.u32 4294901760, %v71_v8  ;;  %v67_v12 = vld [vmem:[#allocation2 + $0x120] sm:$0xff]  ;;  %v4439_v18 = vsub.f32 %v79_v6, %v4419_v9  ;;  %v7456_v23 = vand.u32 4294901760, %v4430_v15  ;;  %439 = vmatpush.msra.mxu3 %v4415_v4 }
   0xc   :  { %v63_v13 = vld [vmem:[#allocation2 + $0x100] sm:$0xff]  ;;  %v4436_v17 = vand.u32 4294901760, %v67_v12  ;;  %v4442_v19 = vsub.f32 %v75_v7, %v4421_v10  ;;  %v7454_v24 = vand.u32 4294901760, %v4434_v16  ;;  %245 = vmatpush.msra.mxu0 %v4417_v5  ;;  %387 = vmatpush.msra.mxu2 %v4430_v15  ;;  %v284_v30 = vsub.f32 %v4427_v14, %v283_v22 }
   0xd   :  { %v4444_v20 = vand.u32 4294901760, %v63_v13  ;;  %v59_v21 = vld [vmem:[#allocation2 + $0xe0] sm:$0xff]  ;;  %v4452_v25 = vsub.f32 %v71_v8, %v4423_v11  ;;  %v7453_v27 = vand.u32 4294901760, %v4439_v18  ;;  %v290_v31 = vsub.f32 %v4430_v15, %v7456_v23  ;;  %441 = vmatpush.msra.mxu3 %v4417_v5 }
   0xe   :  { %v55_v26 = vld [vmem:[#allocation2 + $0xc0] sm:$0xff]  ;;  %v7450_v28 = vand.u32 4294901760, %v4442_v19  ;;  %v4458_v29 = vsub.f32 %v67_v12, %v4436_v17  ;;  %v296_v32 = vsub.f32 %v4434_v16, %v7454_v24  ;;  %v4471_v33 = vand.u32 4294901760, %v59_v21  ;;  %247 = vmatpush.msra.mxu0 %v4419_v9  ;;  %390 = vmatpush.msra.mxu2 %v4434_v16 }
   0xf   :  { %v4474_v34 = vand.u32 4294901760, %v55_v26  ;;  %v4477_v35 = vsub.f32 %v63_v13, %v4444_v20  ;;  %v51_v36 = vld [vmem:[#allocation2 + $0xa0] sm:$0xff]  ;;  %v285_v37 = vand.u32 4294901760, %v284_v30  ;;  %v291_v38 = vand.u32 4294901760, %v290_v31  ;;  %443 = vmatpush.msra.mxu3 %v4419_v9 }
  0x10   :  { %v302_v39 = vsub.f32 %v4439_v18, %v7453_v27  ;;  %v7449_v40 = vand.u32 4294901760, %v4452_v25  ;;  %v308_v41 = vsub.f32 %v4442_v19, %v7450_v28  ;;  %v47_v42 = vld [vmem:[#allocation2 + $0x80] sm:$0xff]  ;;  %249 = vmatpush.msra.mxu0 %v4421_v10  ;;  %v297_v43 = vand.u32 4294901760, %v296_v32  ;;  %393 = vmatpush.msra.mxu2 %v4439_v18 }
  0x11   :  { %286 = vmatpush.msra.mxu1 %v285_v37  ;;  %v4490_v44 = vand.u32 4294901760, %v51_v36  ;;  %v7447_v45 = vand.u32 4294901760, %v4458_v29  ;;  %v4494_v46 = vsub.f32 %v59_v21, %v4471_v33  ;;  %445 = vmatpush.msra.mxu3 %v4421_v10  ;;  %v7446_v47 = vand.u32 4294901760, %v4477_v35  ;;  %v43_v48 = vld [vmem:[#allocation2 + $0x60] sm:$0xff] }
  0x12   :  { %251 = vmatpush.msra.mxu0 %v4423_v11  ;;  %v303_v49 = vand.u32 4294901760, %v302_v39  ;;  %v314_v50 = vsub.f32 %v4452_v25, %v7449_v40  ;;  %v4503_v51 = vand.u32 4294901760, %v47_v42  ;;  %v4506_v52 = vsub.f32 %v55_v26, %v4474_v34  ;;  %396 = vmatpush.msra.mxu2 %v4442_v19  ;;  %v39_v54 = vld [vmem:[#allocation2 + $0x40] sm:$0xff] }
  0x13   :  { %292 = vmatpush.msra.mxu1 %v291_v38  ;;  %v309_v53 = vand.u32 4294901760, %v308_v41  ;;  %447 = vmatpush.msra.mxu3 %v4423_v11  ;;  %v320_v55 = vsub.f32 %v4458_v29, %v7447_v45  ;;  %v4514_v56 = vand.u32 4294901760, %v43_v48  ;;  %v7444_v57 = vand.u32 4294901760, %v4494_v46  ;;  %v35_v59 = vld [vmem:[#allocation2 + $0x20] sm:$0xff] }
  0x14   :  { %253 = vmatpush.msra.mxu0 %v4436_v17  ;;  %v4518_v58 = vsub.f32 %v51_v36, %v4490_v44  ;;  %v155_v60 = vld [vmem:[#allocation2 + $0x3e0] sm:$0xff]  ;;  %399 = vmatpush.msra.mxu2 %v4452_v25  ;;  %v326_v61 = vsub.f32 %v4477_v35, %v7446_v47  ;;  %v315_v62 = vand.u32 4294901760, %v314_v50  ;;  %v4526_v63 = vand.u32 4294901760, %v39_v54 }
  0x15   :  { %298 = vmatpush.msra.mxu1 %v297_v43  ;;  %449 = vmatpush.msra.mxu3 %v4436_v17  ;;  %v7443_v0 = vand.u32 4294901760, %v4506_v52  ;;  %v4530_v1 = vsub.f32 %v47_v42, %v4503_v51  ;;  %v151_v2 = vld [vmem:[#allocation2 + $0x3c0] sm:$0xff]  ;;  %v4534_v6 = vand.u32 4294901760, %v35_v59  ;;  %v4536_v8 = vand.u32 4294901760, %v155_v60 }
  0x16   :  { %255 = vmatpush.msra.mxu0 %v4444_v20  ;;  %402 = vmatpush.msra.mxu2 %v4458_v29  ;;  %v31_v7 = vld [vmem:[#allocation2] sm:$0xff]  ;;  %v321_v12 = vand.u32 4294901760, %v320_v55  ;;  %v332_v13 = vsub.f32 %v4494_v46, %v7444_v57  ;;  %v7441_v21 = vand.u32 4294901760, %v4518_v58  ;;  %v4544_v26 = vsub.f32 %v43_v48, %v4514_v56 }
  0x17   :  { %304 = vmatpush.msra.mxu1 %v303_v49  ;;  %451 = vmatpush.msra.mxu3 %v4444_v20  ;;  %7582 = vst [vmem:[#allocation5_spill] sm:$0xff] %v4536_v8  ;;  %v327_v30 = vand.u32 4294901760, %v326_v61  ;;  %v4548_v31 = vand.u32 4294901760, %v151_v2  ;;  %v147_v32 = vld [vmem:[#allocation2 + $0x3a0] sm:$0xff]  ;;  %v338_v36 = vsub.f32 %v4506_v52, %v7443_v0  ;;  %v4554_v37 = vand.u32 4294901760, %v31_v7 }
  0x18   :  { %257 = vmatpush.msra.mxu0 %v4471_v33  ;;  %405 = vmatpush.msra.mxu2 %v4477_v35  ;;  %v7442_v38 = vand.u32 4294901760, %v4530_v1  ;;  %v4558_v39 = vsub.f32 %v39_v54, %v4526_v63  ;;  %v143_v41 = vld [vmem:[#allocation2 + $0x380] sm:$0xff]  ;;  %v4563_v42 = vsub.f32 %v35_v59, %v4534_v6  ;;  %v4566_v43 = vsub.f32 %v155_v60, %v4536_v8 }
  0x19   :  { %310 = vmatpush.msra.mxu1 %v309_v53  ;;  %453 = vmatpush.msra.mxu3 %v4471_v33  ;;  %7583 = vst [vmem:[#allocation6_spill] sm:$0xff] %v4554_v37  ;;  %v333_v48 = vand.u32 4294901760, %v332_v13  ;;  %v344_v49 = vsub.f32 %v4518_v58, %v7441_v21  ;;  %v7445_v50 = vand.u32 4294901760, %v4544_v26  ;;  %v4573_v53 = vand.u32 4294901760, %v147_v32  ;;  %v139_v59 = vld [vmem:[#allocation2 + $0x360] sm:$0xff] }
  0x1a   :  { %259 = vmatpush.msra.mxu0 %v4474_v34  ;;  %408 = vmatpush.msra.mxu2 %v4494_v46  ;;  %v4578_v54 = vsub.f32 %v151_v2, %v4548_v31  ;;  %v4580_v55 = vand.u32 4294901760, %v143_v41  ;;  %v339_v60 = vand.u32 4294901760, %v338_v36  ;;  %v350_v61 = vsub.f32 %v4530_v1, %v7442_v38  ;;  %v135_v21 = vld [vmem:[#allocation2 + $0x340] sm:$0xff] }
  0x1b   :  { %316 = vmatpush.msra.mxu1 %v315_v62  ;;  %455 = vmatpush.msra.mxu3 %v4474_v34  ;;  %v7448_v62 = vand.u32 4294901760, %v4558_v39  ;;  %v7451_v2 = vand.u32 4294901760, %v4563_v42  ;;  %v7452_v13 = vand.u32 4294901760, %v4566_v43  ;;  %v356_v36 = vsub.f32 %v4544_v26, %v7445_v50  ;;  %v127_v45 = vld [vmem:[#allocation2 + $0x300] sm:$0xff] }
  0x1c   :  { %261 = vmatpush.msra.mxu0 %v4490_v44  ;;  %411 = vmatpush.msra.mxu2 %v4506_v52  ;;  %v4601_v38 = vand.u32 4294901760, %v139_v59  ;;  %v7455_v0 = vand.u32 4294901760, %v4578_v54  ;;  %v4607_v57 = vsub.f32 %v143_v41, %v4580_v55  ;;  %v4614_v47 = vand.u32 4294901760, %v135_v21  ;;  %v119_v23 = vld [vmem:[#allocation2 + $0x2c0] sm:$0xff] }
  0x1d   :  { %322 = vmatpush.msra.mxu1 %v321_v12  ;;  %457 = vmatpush.msra.mxu3 %v4490_v44  ;;  %v4588_v12 = vsub.f32 %v31_v7, %v4554_v37  ;;  %v4599_v7 = vsub.f32 %v147_v32, %v4573_v53  ;;  %v362_v32 = vsub.f32 %v4558_v39, %v7448_v62  ;;  %v4637_v27 = vand.u32 4294901760, %v127_v45  ;;  %v115_v14 = vld [vmem:[#allocation2 + $0x2a0] sm:$0xff] }
  0x1e   :  { %263 = vmatpush.msra.mxu0 %v4503_v51  ;;  %414 = vmatpush.msra.mxu2 %v4518_v58  ;;  %v368_v41 = vsub.f32 %v4563_v42, %v7451_v2  ;;  %v4627_v40 = vsub.f32 %v139_v59, %v4601_v38  ;;  %v631_v2 = vsub.f32 %v4578_v54, %v7455_v0 }
  0x1f   :  { %328 = vmatpush.msra.mxu1 %v327_v30  ;;  %459 = vmatpush.msra.mxu3 %v4503_v51  ;;  %v345_v30 = vand.u32 4294901760, %v344_v49  ;;  %v351_v49 = vand.u32 4294901760, %v350_v61  ;;  %v7457_v50 = vand.u32 4294901760, %v4588_v12  ;;  %v357_v61 = vand.u32 4294901760, %v356_v36 }
  0x20   :  { %265 = vmatpush.msra.mxu0 %v4514_v56  ;;  %417 = vmatpush.msra.mxu2 %v4530_v1  ;;  %v7458_v62 = vand.u32 4294901760, %v4599_v7  ;;  %v363_v59 = vand.u32 4294901760, %v362_v32  ;;  %v4644_v24 = vsub.f32 %v135_v21, %v4614_v47  ;;  %v369_v0 = vand.u32 4294901760, %v368_v41 }
  0x21   :  { %334 = vmatpush.msra.mxu1 %v333_v48  ;;  %461 = vmatpush.msra.mxu3 %v4514_v56  ;;  %v131_v48 = vld [vmem:[#allocation2 + $0x320] sm:$0xff]  ;;  %v374_v36 = vsub.f32 %v4588_v12, %v7457_v50  ;;  %v632_v41 = vand.u32 4294901760, %v631_v2  ;;  %v4674_v2 = vand.u32 4294901760, %v115_v14 }
  0x22   :  { %267 = vmatpush.msra.mxu0 %v4526_v63  ;;  %420 = vmatpush.msra.mxu2 %v4544_v26  ;;  %v4629_v28 = vand.u32 4294901760, %v131_v48 }
  0x23   :  { %340 = vmatpush.msra.mxu1 %v339_v60  ;;  %463 = vmatpush.msra.mxu3 %v4526_v63  ;;  %v625_v60 = vsub.f32 %v4566_v43, %v7452_v13 }
  0x24   :  { %269 = vmatpush.msra.mxu0 %v4534_v6  ;;  %423 = vmatpush.msra.mxu2 %v4558_v39  ;;  %v4655_v21 = vsub.f32 %v131_v48, %v4629_v28  ;;  %v375_v48 = vand.u32 4294901760, %v374_v36  ;;  %v7587_v36 = vand.u32 4294901760, %v4627_v40 }
  0x25   :  { %346 = vmatpush.msra.mxu1 %v345_v30  ;;  %465 = vmatpush.msra.mxu3 %v4534_v6  ;;  %v123_v30 = vld [vmem:[#allocation2 + $0x2e0] sm:$0xff]  ;;  %v626_v13 = vand.u32 4294901760, %v625_v60  ;;  %v7585_v60 = vand.u32 4294901760, %v4607_v57 }
  0x26   :  { %271 = vmatpush.msra.mxu0 %v4554_v37  ;;  %426 = vmatpush.msra.mxu2 %v4563_v42  ;;  %v4657_v50 = vand.u32 4294901760, %v123_v30 }
  0x27   :  { %352 = vmatpush.msra.mxu1 %v351_v49  ;;  %467 = vmatpush.msra.mxu3 %v4554_v37  ;;  %v637_v49 = vsub.f32 %v4599_v7, %v7458_v62  ;;  %v4666_v62 = vsub.f32 %v127_v45, %v4637_v27  ;;  %v4670_v37 = vand.u32 4294901760, %v119_v23  ;;  %v4679_v45 = vld [vmem:[%s7437_s0] sm:$0x7] }
  0x28   :  { %478 = vmatpush.msrb.mxu0 %v283_v22  ;;  %v7584_v22 = vand.u32 4294901760, %v4430_v15  ;;  %429 = vmatpush.msra.mxu2 %v4588_v12  ;;  %v7586_v15 = vand.u32 4294901760, %v4434_v16 }
  0x29   :  { %358 = vmatpush.msra.mxu1 %v357_v61  ;;  %v643_v61 = vsub.f32 %v4607_v57, %v7585_v60  ;;  %627 = vmatpush.msrb.mxu3 %v626_v13  ;;  %v649_v60 = vsub.f32 %v4627_v40, %v7587_v36  ;;  %v4687_v13 = vsub.f32 %v123_v30, %v4657_v50 }
  0x2a   :  { %482 = vmatpush.msrb.mxu0 %v7584_v22  ;;  %582 = vmatpush.msrb.mxu2 %v4536_v8  ;;  %v111_v22 = vld [vmem:[#allocation2 + $0x280] sm:$0xff]  ;;  %v4697_v16 = vsub.f32 %v119_v23, %v4670_v37 }
  0x2b   :  { %364 = vmatpush.msra.mxu1 %v363_v59  ;;  %v638_v59 = vand.u32 4294901760, %v637_v49  ;;  %633 = vmatpush.msrb.mxu3 %v632_v41  ;;  %v644_v32 = vand.u32 4294901760, %v643_v61  ;;  %v7589_v49 = vand.u32 4294901760, %v4644_v24  ;;  %v4699_v30 = vand.u32 4294901760, %v111_v22 }
  0x2c   :  { %486 = vmatpush.msrb.mxu0 %v7586_v15  ;;  %584 = vmatpush.msrb.mxu2 %v4548_v31  ;;  %v7588_v15 = vand.u32 4294901760, %v4439_v18  ;;  %v225_v18 = vperm.slane %v4679_v45, 0  ;;  %v7590_v41 = vand.u32 4294901760, %v4442_v19  ;;  %v4706_v61 = vsub.f32 %v115_v14, %v4674_v2 }
  0x2d   :  { %370 = vmatpush.msra.mxu1 %v369_v0  ;;  %v107_v0 = vld [vmem:[#allocation2 + $0x260] sm:$0xff]  ;;  %v655_v36 = vsub.f32 %v4644_v24, %v7589_v49  ;;  %639 = vmatpush.msrb.mxu3 %v638_v59  ;;  %v7592_v19 = vand.u32 4294901760, %v4452_v25  ;;  %v7595_v25 = vand.u32 4294901760, %v4458_v29  ;;  %v7597_v29 = vand.u32 4294901760, %v4477_v35 }
  0x2e   :  { %490 = vmatpush.msrb.mxu0 %v7588_v15  ;;  %586 = vmatpush.msrb.mxu2 %v4573_v53  ;;  %v7591_v15 = vand.u32 4294901760, %v4655_v21  ;;  %v4713_v8 = vand.u32 4294901760, %v107_v0  ;;  %v4726_v49 = vand.u32 4294901760, %v225_v18  ;;  %v7600_v35 = vand.u32 4294901760, %v4494_v46 }
  0x2f   :  { %376 = vmatpush.msra.mxu1 %v375_v48  ;;  %v650_v48 = vand.u32 4294901760, %v649_v60  ;;  %645 = vmatpush.msrb.mxu3 %v644_v32  ;;  %v656_v59 = vand.u32 4294901760, %v655_v36  ;;  %v7596_v36 = vand.u32 4294901760, %v4687_v13  ;;  %v7602_v46 = vand.u32 4294901760, %v4506_v52 }
  0x30   :  { %494 = vmatpush.msrb.mxu0 %v7590_v41  ;;  %588 = vmatpush.msrb.mxu2 %v4580_v55  ;;  %v661_v23 = vsub.f32 %v4655_v21, %v7591_v15  ;;  %v103_v41 = vld [vmem:[#allocation2 + $0x240] sm:$0xff]  ;;  %v4724_v15 = vsub.f32 %v111_v22, %v4699_v30  ;;  %7594 = vst [vmem:[#allocation7_spill] sm:$0xff] %v4726_v49 }
  0x31   :  { %545 = vmatpush.msrb.mxu1 %v4413_v3  ;;  %v7593_v3 = vand.u32 4294901760, %v4666_v62  ;;  %651 = vmatpush.msrb.mxu3 %v650_v48  ;;  %v4736_v22 = vand.u32 4294901760, %v103_v41  ;;  %v4739_v60 = vsub.f32 %v107_v0, %v4713_v8  ;;  %v7598_v48 = vand.u32 4294901760, %v4697_v16 }
  0x32   :  { %498 = vmatpush.msrb.mxu0 %v7592_v19  ;;  %590 = vmatpush.msrb.mxu2 %v4601_v38  ;;  %v99_v19 = vld [vmem:[#allocation2 + $0x220] sm:$0xff]  ;;  %v662_v32 = vand.u32 4294901760, %v661_v23 }
  0x33   :  { %547 = vmatpush.msrb.mxu1 %v4415_v4  ;;  %v667_v14 = vsub.f32 %v4666_v62, %v7593_v3  ;;  %v673_v3 = vsub.f32 %v4687_v13, %v7596_v36  ;;  %657 = vmatpush.msrb.mxu3 %v656_v59  ;;  %v679_v23 = vsub.f32 %v4697_v16, %v7598_v48  ;;  %v690_v36 = vand.u32 4294901760, %v4724_v15 }
  0x34   :  { %502 = vmatpush.msrb.mxu0 %v7595_v25  ;;  %592 = vmatpush.msrb.mxu2 %v4614_v47  ;;  %v95_v25 = vld [vmem:[#allocation2 + $0x200] sm:$0xff]  ;;  %v4750_v4 = vsub.f32 %v225_v18, %v4726_v49  ;;  %v4752_v0 = vand.u32 4294901760, %v99_v19  ;;  %v4763_v18 = vsub.f32 %v103_v41, %v4736_v22 }
  0x35   :  { %549 = vmatpush.msrb.mxu1 %v4417_v5  ;;  %v668_v5 = vand.u32 4294901760, %v667_v14  ;;  %663 = vmatpush.msrb.mxu3 %v662_v32  ;;  %v674_v59 = vand.u32 4294901760, %v673_v3  ;;  %v4765_v48 = vand.u32 4294901760, %v95_v25  ;;  %v691_v32 = vsub.f32 %v4724_v15, %v690_v36 }
  0x36   :  { %506 = vmatpush.msrb.mxu0 %v7597_v29  ;;  %594 = vmatpush.msrb.mxu2 %v4629_v28  ;;  %7599 = vst [vmem:[#allocation8_spill] sm:$0xff] %v4750_v4  ;;  %v696_v29 = vand.u32 4294901760, %v4739_v60  ;;  %v4775_v3 = vand.u32 4294901760, %v4750_v4  ;;  %v4778_v41 = vsub.f32 %v99_v19, %v4752_v0  ;;  %v226_v19 = vperm.slane %v4679_v45, 1 }
  0x37   :  { %551 = vmatpush.msrb.mxu1 %v4419_v9  ;;  %v7601_v9 = vand.u32 4294901760, %v4706_v61  ;;  %669 = vmatpush.msrb.mxu3 %v668_v5  ;;  %v702_v5 = vand.u32 4294901760, %v4763_v18 }
  0x38   :  { %510 = vmatpush.msrb.mxu0 %v7600_v35  ;;  %596 = vmatpush.msrb.mxu2 %v4637_v27  ;;  %7603 = vst [vmem:[#allocation9_spill] sm:$0xff] %v4775_v3  ;;  %v7604_v35 = vand.u32 4294901760, %v4518_v58  ;;  %v697_v52 = vsub.f32 %v4739_v60, %v696_v29  ;;  %v7605_v58 = vand.u32 4294901760, %v4530_v1 }
  0x39   :  { %553 = vmatpush.msrb.mxu1 %v4421_v10  ;;  %v685_v14 = vsub.f32 %v4706_v61, %v7601_v9  ;;  %v680_v10 = vand.u32 4294901760, %v679_v23  ;;  %675 = vmatpush.msrb.mxu3 %v674_v59  ;;  %v4789_v23 = vsub.f32 %v95_v25, %v4765_v48  ;;  %v275_v9 = vsub.f32 %v4750_v4, %v4775_v3 }
  0x3a   :  { %514 = vmatpush.msrb.mxu0 %v7602_v46  ;;  %598 = vmatpush.msrb.mxu2 %v4657_v50  ;;  %v7606_v59 = vand.u32 4294901760, %v4544_v26  ;;  %v698_v1 = vand.u32 4294901760, %v697_v52  ;;  %v4807_v46 = vand.u32 4294901760, %v226_v19 }
  0x3b   :  { %555 = vmatpush.msrb.mxu1 %v4423_v11  ;;  %v686_v11 = vand.u32 4294901760, %v685_v14  ;;  %681 = vmatpush.msrb.mxu3 %v680_v10  ;;  %v708_v14 = vand.u32 4294901760, %v4778_v41  ;;  %v714_v25 = vand.u32 4294901760, %v4789_v23  ;;  %v7608_v10 = vand.u32 4294901760, %v4558_v39 }
  0x3c   :  { %518 = vmatpush.msrb.mxu0 %v7604_v35  ;;  %600 = vmatpush.msrb.mxu2 %v4670_v37  ;;  %7607 = vst [vmem:[#allocation10_spill] sm:$0xff] %v4807_v46  ;;  %v4826_v35 = vsub.f32 %v226_v19, %v4807_v46  ;;  %v7617_v19 = vld [vmem:[#allocation6_spill] sm:$0xff] }
  0x3d   :  { %557 = vmatpush.msrb.mxu1 %v4436_v17  ;;  %v692_v17 = vand.u32 4294901760, %v691_v32  ;;  %687 = vmatpush.msrb.mxu3 %v686_v11  ;;  %v709_v26 = vsub.f32 %v4778_v41, %v708_v14  ;;  %v7610_v32 = vand.u32 4294901760, %v4563_v42  ;;  %v7612_v11 = vand.u32 4294901760, %v4588_v12  ;;  %v7616_v12 = vld [vmem:[#allocation5_spill] sm:$0xff] }
  0x3e   :  { %522 = vmatpush.msrb.mxu0 %v7605_v58  ;;  %602 = vmatpush.msrb.mxu2 %v4674_v2  ;;  %7611 = vst [vmem:[#allocation12_spill] sm:$0xff] %v4826_v35  ;;  %v4837_v52 = vand.u32 4294901760, %v4826_v35  ;;  %v195_v58 = vld [vmem:[#allocation2 + $0x520] sm:$0xff] }
  0x3f   :  { %559 = vmatpush.msrb.mxu1 %v4444_v20  ;;  %v703_v20 = vsub.f32 %v4763_v18, %v702_v5  ;;  %693 = vmatpush.msrb.mxu3 %v692_v17  ;;  %v4963_v17 = vand.u32 4294901760, %v195_v58 }
  0x40   :  { %526 = vmatpush.msrb.mxu0 %v7606_v59  ;;  %604 = vmatpush.msrb.mxu2 %v4699_v30  ;;  %7613 = vst [vmem:[#allocation13_spill] sm:$0xff] %v4837_v52 }
  0x41   :  { %561 = vmatpush.msrb.mxu1 %v4471_v33  ;;  %v4813_v33 = vand.u32 4294901760, %v275_v9  ;;  %699 = vmatpush.msrb.mxu3 %v698_v1  ;;  %v704_v39 = vand.u32 4294901760, %v703_v20 }
  0x42   :  { %530 = vmatpush.msrb.mxu0 %v7608_v10  ;;  %606 = vmatpush.msrb.mxu2 %v4713_v8 }
  0x43   :  { %563 = vmatpush.msrb.mxu1 %v4474_v34  ;;  %7609 = vst [vmem:[#allocation11_spill] sm:$0xff] %v4813_v33  ;;  %v715_v34 = vsub.f32 %v4789_v23, %v714_v25  ;;  %277 = vmatmul.f32.vlgmr.msra.gmra.mxu0 %v4813_v33  ;;  %v48_v33 = vld [vmem:[#allocation2 + $0x88] sm:$0xff] }
  0x44   :  { %534 = vmatpush.msrb.mxu0 %v7610_v32  ;;  %608 = vmatpush.msrb.mxu2 %v4736_v22 }
  0x45   :  { %565 = vmatpush.msrb.mxu1 %v4490_v44  ;;  %v710_v44 = vand.u32 4294901760, %v709_v26  ;;  %705 = vmatpush.msrb.mxu3 %v704_v39  ;;  %v716_v42 = vand.u32 4294901760, %v715_v34  ;;  %v4990_v39 = vsub.f32 %v195_v58, %v4963_v17  ;;  %v179_v34 = vld [vmem:[#allocation2 + $0x4a0] sm:$0xff] }
  0x46   :  { %538 = vmatpush.msrb.mxu0 %v7612_v11  ;;  %610 = vmatpush.msrb.mxu2 %v4752_v0 }
  0x47   :  { %567 = vmatpush.msrb.mxu1 %v4503_v51  ;;  %711 = vmatpush.msrb.mxu3 %v710_v44  ;;  %v7614_v51 = vand.u32 4294901760, %v4566_v43 }
  0x48   :  { %725 = vmatpush.msra.mxu0 %v4566_v43  ;;  %612 = vmatpush.msrb.mxu2 %v4765_v48 }
  0x49   :  { %569 = vmatpush.msrb.mxu1 %v4514_v56  ;;  %432 = vmatmul.f32.vlgmr.msra.gmra.mxu2 %v4750_v4  ;;  %v616_v56 = vsub.f32 %v4826_v35, %v4837_v52  ;;  %v56_v4 = vld [vmem:[#allocation2 + $0xc8] sm:$0xff] }
  0x4a   :  { %728 = vmatpush.msra.mxu0 %v4578_v54  ;;  %819 = vmatpush.msra.mxu2 %v7614_v51 }
  0x4b   :  { %571 = vmatpush.msrb.mxu1 %v4526_v63  ;;  %717 = vmatpush.msrb.mxu3 %v716_v42  ;;  %v7615_v63 = vand.u32 4294901760, %v4578_v54  ;;  %v4858_v43 = vand.u32 4294901760, %v616_v56  ;;  %v7620_v54 = vand.u32 4294901760, %v4607_v57  ;;  %v175_v56 = vld [vmem:[#allocation2 + $0x480] sm:$0xff] }
  0x4c   :  { %731 = vmatpush.msra.mxu0 %v4599_v7  ;;  %471 = vmatmul.f32.vlgmr.msra.gmra.mxu3 %v4775_v3  ;;  %v60_v3 = vld [vmem:[#allocation2 + $0xe8] sm:$0xff] }
  0x4d   :  { %573 = vmatpush.msrb.mxu1 %v4534_v6  ;;  %823 = vmatpush.msra.mxu2 %v7615_v63  ;;  %v7618_v6 = vand.u32 4294901760, %v4599_v7  ;;  %7619 = vst [vmem:[#allocation5_spill] sm:$0xff] %v4858_v43  ;;  %v7621_v7 = vand.u32 4294901760, %v4627_v40  ;;  %v227_v63 = vperm.slane %v4679_v45, 2  ;;  %v171_v45 = vld [vmem:[#allocation2 + $0x460] sm:$0xff] }
  0x4e   :  { %734 = vmatpush.msra.mxu0 %v4607_v57  ;;  %886 = vmatpush.msra.mxu3 %v7616_v12  ;;  %v7622_v57 = vand.u32 4294901760, %v4644_v24 }
  0x4f   :  { %575 = vmatpush.msrb.mxu1 %v7617_v19  ;;  %827 = vmatpush.msra.mxu2 %v7618_v6  ;;  %v5012_v19 = vand.u32 4294901760, %v179_v34  ;;  %v7466_v6 = vand.u32 4294901760, %v4990_v39 }
  0x50   :  { %737 = vmatpush.msra.mxu0 %v4627_v40  ;;  %378 = vmatmul.f32.vlgmr.msra.gmra.mxu1 %v4726_v49  ;;  %v7623_v40 = vand.u32 4294901760, %v4655_v21 }
  0x51   :  { %778 = vmatpush.msra.mxu1 %v7616_v12  ;;  %888 = vmatpush.msra.mxu3 %v4548_v31 }
  0x52   :  { %740 = vmatpush.msra.mxu0 %v4644_v24  ;;  %831 = vmatpush.msra.mxu2 %v7620_v54  ;;  %v7624_v24 = vand.u32 4294901760, %v4666_v62 }
  0x53   :  { %780 = vmatpush.msra.mxu1 %v4548_v31  ;;  %890 = vmatpush.msra.mxu3 %v4573_v53  ;;  %v219_v31 = vld [vmem:[#allocation2 + $0x5e0] sm:$0xff] }
  0x54   :  { %618 = vmatmul.f32.vlgmr.msrb.gmra.mxu2 %v4858_v43  ;;  %743 = vmatpush.msra.mxu0 %v4655_v21 }
  0x55   :  { %782 = vmatpush.msra.mxu1 %v4573_v53  ;;  %835 = vmatpush.msra.mxu2 %v7621_v7  ;;  %v7626_v53 = vand.u32 4294901760, %v4697_v16 }
  0x56   :  { %892 = vmatpush.msra.mxu3 %v4580_v55  ;;  %540 = vmatmul.f32.vlgmr.msrb.gmra.mxu0 %v4726_v49 }
  0x57   :  { %719 = vmatmul.f32.vlgmr.msrb.gmra.mxu3 %v4807_v46  ;;  %746 = vmatpush.msra.mxu0 %v4666_v62  ;;  %v7627_v62 = vand.u32 4294901760, %v4706_v61 }
  0x58   :  { %784 = vmatpush.msra.mxu1 %v4580_v55  ;;  %839 = vmatpush.msra.mxu2 %v7622_v57  ;;  %v4901_v55 = vand.u32 4294901760, %v219_v31 }
  0x59   :  { %894 = vmatpush.msra.mxu3 %v4601_v38  ;;  %577 = vmatmul.f32.vlgmr.msrb.gmra.mxu1 %v4726_v49  ;;  %v5200_v49 = vand.u32 4294901760, %v60_v3 }
  0x5a   :  { %749 = vmatpush.msra.mxu0 %v4687_v13  ;;  %786 = vmatpush.msra.mxu1 %v4601_v38  ;;  %v7625_v38 = vand.u32 4294901760, %v4687_v13  ;;  %v203_v13 = vld [vmem:[#allocation2 + $0x560] sm:$0xff] }
  0x5b   :  { %843 = vmatpush.msra.mxu2 %v7623_v40  ;;  %896 = vmatpush.msra.mxu3 %v4614_v47  ;;  %v5024_v40 = vand.u32 4294901760, %v175_v56 }
  0x5c   :  { %752 = vmatpush.msra.mxu0 %v4697_v16  ;;  %788 = vmatpush.msra.mxu1 %v4614_v47  ;;  %v215_v47 = vld [vmem:[#allocation2 + $0x5c0] sm:$0xff] }
  0x5d   :  { %847 = vmatpush.msra.mxu2 %v7624_v24  ;;  %898 = vmatpush.msra.mxu3 %v4629_v28  ;;  %v4908_v21 = vand.u32 4294901760, %v215_v47 }
  0x5e   :  { %755 = vmatpush.msra.mxu0 %v4706_v61  ;;  %790 = vmatpush.msra.mxu1 %v4629_v28  ;;  %v211_v28 = vld [vmem:[#allocation2 + $0x5a0] sm:$0xff] }
  0x5f   :  { %851 = vmatpush.msra.mxu2 %v7625_v38  ;;  %900 = vmatpush.msra.mxu3 %v4637_v27  ;;  %v4915_v16 = vand.u32 4294901760, %v211_v28  ;;  %v4928_v61 = vsub.f32 %v215_v47, %v4908_v21  ;;  %v167_v47 = vld [vmem:[#allocation2 + $0x440] sm:$0xff] }
  0x60   :  { %758 = vmatpush.msra.mxu0 %v4724_v15  ;;  %792 = vmatpush.msra.mxu1 %v4637_v27  ;;  %v207_v27 = vld [vmem:[#allocation2 + $0x580] sm:$0xff] }
  0x61   :  { %855 = vmatpush.msra.mxu2 %v7626_v53  ;;  %902 = vmatpush.msra.mxu3 %v4657_v50  ;;  %v199_v15 = vld [vmem:[#allocation2 + $0x540] sm:$0xff]  ;;  %v5032_v53 = vand.u32 4294901760, %v227_v63 }
  0x62   :  { %761 = vmatpush.msra.mxu0 %v4739_v60  ;;  %794 = vmatpush.msra.mxu1 %v4657_v50  ;;  %v4918_v50 = vsub.f32 %v219_v31, %v4901_v55  ;;  %v4939_v60 = vsub.f32 %v211_v28, %v4915_v16  ;;  %v1002_v28 = vsub.f32 %v4990_v39, %v7466_v6 }
  0x63   :  { %859 = vmatpush.msra.mxu2 %v7627_v62  ;;  %904 = vmatpush.msra.mxu3 %v4670_v37  ;;  %7628 = vst [vmem:[#allocation6_spill] sm:$0xff] %v5032_v53  ;;  %v5038_v62 = vand.u32 4294901760, %v171_v45 }
  0x64   :  { %764 = vmatpush.msra.mxu0 %v4763_v18  ;;  %796 = vmatpush.msra.mxu1 %v4670_v37  ;;  %v4925_v37 = vand.u32 4294901760, %v207_v27  ;;  %v7471_v9 = vand.u32 4294901760, %v4939_v60 }
  0x65   :  { %863 = vmatpush.msra.mxu2 %v690_v36  ;;  %906 = vmatpush.msra.mxu3 %v4674_v2  ;;  %v4932_v36 = vand.u32 4294901760, %v203_v13 }
  0x66   :  { %767 = vmatpush.msra.mxu0 %v4778_v41  ;;  %798 = vmatpush.msra.mxu1 %v4674_v2  ;;  %v7474_v2 = vand.u32 4294901760, %v4918_v50  ;;  %v4950_v18 = vsub.f32 %v207_v27, %v4925_v37  ;;  %v978_v26 = vsub.f32 %v4939_v60, %v7471_v9  ;;  %v76_v9 = vld [vmem:[#allocation2 + $0x168] sm:$0xff] }
  0x67   :  { %867 = vmatpush.msra.mxu2 %v696_v29  ;;  %908 = vmatpush.msra.mxu3 %v4699_v30  ;;  %v4943_v29 = vand.u32 4294901760, %v199_v15 }
  0x68   :  { %770 = vmatpush.msra.mxu0 %v4789_v23  ;;  %800 = vmatpush.msra.mxu1 %v4699_v30  ;;  %v7473_v30 = vand.u32 4294901760, %v4928_v61  ;;  %v966_v41 = vsub.f32 %v4918_v50, %v7474_v2  ;;  %v7470_v1 = vand.u32 4294901760, %v4950_v18  ;;  %v979_v12 = vand.u32 4294901760, %v978_v26 }
  0x69   :  { %871 = vmatpush.msra.mxu2 %v702_v5  ;;  %910 = vmatpush.msra.mxu3 %v4713_v8  ;;  %v4955_v5 = vsub.f32 %v203_v13, %v4932_v36  ;;  %v5042_v13 = vsub.f32 %v179_v34, %v5012_v19 }
  0x6a   :  { %773 = vmatmul.f32.vlgmr.msra.gmra.mxu0 %v4826_v35  ;;  %802 = vmatpush.msra.mxu1 %v4713_v8  ;;  %v191_v8 = vld [vmem:[#allocation2 + $0x500] sm:$0xff]  ;;  %v972_v23 = vsub.f32 %v4928_v61, %v7473_v30  ;;  %v967_v10 = vand.u32 4294901760, %v966_v41  ;;  %v984_v44 = vsub.f32 %v4950_v18, %v7470_v1  ;;  %v64_v35 = vld [vmem:[#allocation2 + $0x108] sm:$0xff] }
  0x6b   :  { %923 = vmatpush.msrb.mxu0 %v4901_v55  ;;  %875 = vmatpush.msra.mxu2 %v708_v14  ;;  %v187_v14 = vld [vmem:[#allocation2 + $0x4e0] sm:$0xff]  ;;  %v4976_v59 = vand.u32 4294901760, %v191_v8  ;;  %v7469_v20 = vand.u32 4294901760, %v4955_v5  ;;  %v7465_v34 = vand.u32 4294901760, %v5042_v13 }
  0x6c   :  { %912 = vmatpush.msra.mxu3 %v4736_v22  ;;  %804 = vmatpush.msra.mxu1 %v4736_v22  ;;  %v4969_v22 = vsub.f32 %v199_v15, %v4943_v29  ;;  %v4987_v32 = vand.u32 4294901760, %v187_v14  ;;  %v973_v11 = vand.u32 4294901760, %v972_v23  ;;  %v985_v57 = vand.u32 4294901760, %v984_v44  ;;  %v163_v23 = vld [vmem:[#allocation2 + $0x420] sm:$0xff]  ;;  %v92_v44 = vld [vmem:[#allocation2 + $0x1e8] sm:$0xff] }
  0x6d   :  { %925 = vmatpush.msrb.mxu0 %v4908_v21  ;;  %879 = vmatpush.msra.mxu2 %v714_v25  ;;  %v183_v25 = vld [vmem:[#allocation2 + $0x4c0] sm:$0xff]  ;;  %v5003_v51 = vsub.f32 %v191_v8, %v4976_v59  ;;  %v5050_v8 = vand.u32 4294901760, %v167_v47 }
  0x6e   :  { %914 = vmatpush.msra.mxu3 %v4752_v0  ;;  %881 = vmatmul.f32.vlgmr.msra.gmra.mxu2 %v4807_v46  ;;  %v5000_v42 = vand.u32 4294901760, %v183_v25  ;;  %v5016_v54 = vsub.f32 %v187_v14, %v4987_v32  ;;  %v5054_v14 = vsub.f32 %v175_v56, %v5024_v40  ;;  %v159_v56 = vld [vmem:[#allocation2 + $0x400] sm:$0xff] }
  0x6f   :  { %927 = vmatpush.msrb.mxu0 %v4915_v16  ;;  %1066 = vmatpush.msrb.mxu2 %v4918_v50  ;;  %v7464_v24 = vand.u32 4294901760, %v5003_v51 }
  0x70   :  { %806 = vmatpush.msra.mxu1 %v4752_v0  ;;  %916 = vmatpush.msra.mxu3 %v4765_v48  ;;  %v7467_v0 = vand.u32 4294901760, %v4969_v22  ;;  %v5028_v31 = vsub.f32 %v183_v25, %v5000_v42  ;;  %v7463_v27 = vand.u32 4294901760, %v5016_v54  ;;  %v5059_v25 = vsub.f32 %v227_v63, %v5032_v53 }
  0x71   :  { %918 = vmatmul.f32.vlgmr.msra.gmra.mxu3 %v4807_v46  ;;  %929 = vmatpush.msrb.mxu0 %v4925_v37  ;;  %v1008_v58 = vsub.f32 %v5003_v51, %v7464_v24  ;;  %v84_v24 = vld [vmem:[#allocation2 + $0x1a8] sm:$0xff] }
  0x72   :  { %1069 = vmatpush.msrb.mxu2 %v4928_v61  ;;  %1119 = vmatpush.msrb.mxu3 %v4901_v55  ;;  %v996_v7 = vsub.f32 %v4969_v22, %v7467_v0  ;;  %v7462_v41 = vand.u32 4294901760, %v5028_v31  ;;  %7629 = vst [vmem:[#allocation14_spill] sm:$0xff] %v5059_v25  ;;  %v1014_v26 = vsub.f32 %v5016_v54, %v7463_v27  ;;  %v80_v0 = vld [vmem:[#allocation2 + $0x188] sm:$0xff]  ;;  %v5121_v1 = vand.u32 4294901760, %v84_v24 }
  0x73   :  { %808 = vmatpush.msra.mxu1 %v4765_v48  ;;  %931 = vmatpush.msrb.mxu0 %v4932_v36  ;;  %v990_v48 = vsub.f32 %v4955_v5, %v7469_v20  ;;  %v1009_v63 = vand.u32 4294901760, %v1008_v58  ;;  %v1026_v58 = vsub.f32 %v5042_v13, %v7465_v34 }
  0x74   :  { %812 = vmatmul.f32.vlgmr.msra.gmra.mxu1 %v4837_v52  ;;  %1072 = vmatpush.msrb.mxu2 %v4939_v60  ;;  %v997_v15 = vand.u32 4294901760, %v996_v7  ;;  %v7468_v7 = vand.u32 4294901760, %v5054_v14 }
  0x75   :  { %968 = vmatpush.msrb.mxu1 %v967_v10  ;;  %1121 = vmatpush.msrb.mxu3 %v4908_v21  ;;  %v991_v38 = vand.u32 4294901760, %v990_v48  ;;  %v1003_v10 = vand.u32 4294901760, %v1002_v28  ;;  %v5071_v48 = vand.u32 4294901760, %v163_v23  ;;  %v88_v28 = vld [vmem:[#allocation2 + $0x1c8] sm:$0xff] }
  0x76   :  { %933 = vmatpush.msrb.mxu0 %v4943_v29  ;;  %1075 = vmatpush.msrb.mxu2 %v4950_v18  ;;  %v5105_v6 = vand.u32 4294901760, %v88_v28 }
  0x77   :  { %974 = vmatpush.msrb.mxu1 %v973_v11  ;;  %1123 = vmatpush.msrb.mxu3 %v4915_v16  ;;  %v5067_v11 = vsub.f32 %v171_v45, %v5038_v62  ;;  %v5079_v45 = vsub.f32 %v167_v47, %v5050_v8  ;;  %v5092_v47 = vand.u32 4294901760, %v159_v56  ;;  %v5098_v27 = vsub.f32 %v163_v23, %v5071_v48 }
  0x78   :  { %935 = vmatpush.msrb.mxu0 %v4963_v17  ;;  %1078 = vmatpush.msrb.mxu2 %v4955_v5 }
  0x79   :  { %980 = vmatpush.msrb.mxu1 %v979_v12  ;;  %1125 = vmatpush.msrb.mxu3 %v4925_v37  ;;  %v1020_v12 = vsub.f32 %v5028_v31, %v7462_v41  ;;  %v7472_v41 = vand.u32 4294901760, %v5067_v11  ;;  %v7475_v34 = vand.u32 4294901760, %v5079_v45  ;;  %v5119_v20 = vsub.f32 %v159_v56, %v5092_v47 }
  0x7a   :  { %937 = vmatpush.msrb.mxu0 %v4976_v59  ;;  %1081 = vmatpush.msrb.mxu2 %v4969_v22 }
  0x7b   :  { %986 = vmatpush.msrb.mxu1 %v985_v57  ;;  %1127 = vmatpush.msrb.mxu3 %v4932_v36  ;;  %v5084_v57 = vand.u32 4294901760, %v5059_v25  ;;  %v1044_v56 = vsub.f32 %v5079_v45, %v7475_v34 }
  0x7c   :  { %939 = vmatpush.msrb.mxu0 %v4987_v32  ;;  %1084 = vmatpush.msrb.mxu2 %v4990_v39 }
  0x7d   :  { %992 = vmatpush.msrb.mxu1 %v991_v38  ;;  %1129 = vmatpush.msrb.mxu3 %v4943_v29  ;;  %7630 = vst [vmem:[#allocation15_spill] sm:$0xff] %v5084_v57  ;;  %v5086_v38 = vand.u32 4294901760, %v92_v44  ;;  %v957_v23 = vsub.f32 %v5059_v25, %v5084_v57 }
  0x7e   :  { %941 = vmatpush.msrb.mxu0 %v5000_v42  ;;  %1087 = vmatpush.msrb.mxu2 %v5003_v51 }
  0x7f   :  { %998 = vmatpush.msrb.mxu1 %v997_v15  ;;  %1131 = vmatpush.msrb.mxu3 %v4963_v17  ;;  %v1015_v15 = vand.u32 4294901760, %v1014_v26  ;;  %v1032_v26 = vsub.f32 %v5054_v14, %v7468_v7  ;;  %v1038_v7 = vsub.f32 %v5067_v11, %v7472_v41  ;;  %v5133_v41 = vsub.f32 %v88_v28, %v5105_v6 }
  0x80   :  { %943 = vmatpush.msrb.mxu0 %v5012_v19  ;;  %1090 = vmatpush.msrb.mxu2 %v5016_v54  ;;  %v5137_v30 = vand.u32 4294901760, %v957_v23  ;;  %v5145_v28 = vsub.f32 %v84_v24, %v5121_v1  ;;  %v7632_v23 = vand.u32 4294901760, %v5098_v27 }
  0x81   :  { %1004 = vmatpush.msrb.mxu1 %v1003_v10  ;;  %1133 = vmatpush.msrb.mxu3 %v4976_v59  ;;  %v1021_v10 = vand.u32 4294901760, %v1020_v12  ;;  %v1027_v12 = vand.u32 4294901760, %v1026_v58  ;;  %v1033_v58 = vand.u32 4294901760, %v1032_v26  ;;  %v1039_v26 = vand.u32 4294901760, %v1038_v7 }
  0x82   :  { %945 = vmatpush.msrb.mxu0 %v5024_v40  ;;  %1093 = vmatpush.msrb.mxu2 %v5028_v31  ;;  %7631 = vst [vmem:[#allocation16_spill] sm:$0xff] %v5137_v30  ;;  %v1050_v2 = vsub.f32 %v5098_v27, %v7632_v23  ;;  %v1045_v7 = vand.u32 4294901760, %v1044_v56  ;;  %v7635_v56 = vand.u32 4294901760, %v5119_v20 }
  0x83   :  { %1010 = vmatpush.msrb.mxu1 %v1009_v63  ;;  %1135 = vmatpush.msrb.mxu3 %v4987_v32  ;;  %v5112_v63 = vsub.f32 %v92_v44, %v5086_v38  ;;  %v5140_v44 = vand.u32 4294901760, %v76_v9 }
  0x84   :  { %947 = vmatpush.msrb.mxu0 %v5038_v62  ;;  %1096 = vmatpush.msrb.mxu2 %v5042_v13  ;;  %v1056_v34 = vsub.f32 %v5119_v20, %v7635_v56 }
  0x85   :  { %1016 = vmatpush.msrb.mxu1 %v1015_v15  ;;  %1137 = vmatpush.msrb.mxu3 %v5000_v42  ;;  %v5126_v15 = vand.u32 4294901760, %v80_v0  ;;  %v7633_v52 = vand.u32 4294901760, %v5112_v63 }
  0x86   :  { %949 = vmatpush.msrb.mxu0 %v5050_v8  ;;  %1099 = vmatpush.msrb.mxu2 %v5054_v14 }
  0x87   :  { %1022 = vmatpush.msrb.mxu1 %v1021_v10  ;;  %1139 = vmatpush.msrb.mxu3 %v5012_v19  ;;  %v72_v10 = vld [vmem:[#allocation2 + $0x148] sm:$0xff]  ;;  %v5153_v46 = vsub.f32 %v80_v0, %v5126_v15  ;;  %v1307_v23 = vsub.f32 %v5112_v63, %v7633_v52  ;;  %v5165_v0 = vsub.f32 %v76_v9, %v5140_v44  ;;  %v1051_v52 = vand.u32 4294901760, %v1050_v2 }
  0x88   :  { %951 = vmatpush.msrb.mxu0 %v5071_v48  ;;  %1102 = vmatpush.msrb.mxu2 %v5067_v11  ;;  %v5157_v24 = vand.u32 4294901760, %v72_v10 }
  0x89   :  { %1028 = vmatpush.msrb.mxu1 %v1027_v12  ;;  %1141 = vmatpush.msrb.mxu3 %v5024_v40  ;;  %v68_v12 = vld [vmem:[#allocation2 + $0x128] sm:$0xff]  ;;  %v1308_v2 = vand.u32 4294901760, %v1307_v23  ;;  %v7640_v23 = vand.u32 4294901760, %v5153_v46 }
  0x8a   :  { %953 = vmatpush.msrb.mxu0 %v5092_v47  ;;  %1105 = vmatpush.msrb.mxu2 %v5079_v45  ;;  %v5173_v43 = vand.u32 4294901760, %v68_v12  ;;  %v5184_v56 = vsub.f32 %v72_v10, %v5157_v24 }
  0x8b   :  { %1034 = vmatpush.msrb.mxu1 %v1033_v58  ;;  %1143 = vmatpush.msrb.mxu3 %v5038_v62  ;;  %v7634_v58 = vand.u32 4294901760, %v4918_v50  ;;  %v7636_v50 = vand.u32 4294901760, %v4928_v61  ;;  %v7638_v61 = vand.u32 4294901760, %v4939_v60  ;;  %v1325_v60 = vsub.f32 %v5153_v46, %v7640_v23 }
  0x8c   :  { %959 = vmatmul.f32.vlgmr.msrb.gmra.mxu0 %v5137_v30  ;;  %1108 = vmatpush.msrb.mxu2 %v5098_v27  ;;  %v5186_v30 = vand.u32 4294901760, %v64_v35 }
  0x8d   :  { %1160 = vmatpush.msra.mxu0 %v7634_v58  ;;  %1040 = vmatpush.msrb.mxu1 %v1039_v26  ;;  %v7637_v26 = vand.u32 4294901760, %v5133_v41 }
  0x8e   :  { %1145 = vmatpush.msrb.mxu3 %v5050_v8  ;;  %1111 = vmatpush.msrb.mxu2 %v5119_v20 }
  0x8f   :  { %1164 = vmatpush.msra.mxu0 %v7636_v50  ;;  %1046 = vmatpush.msrb.mxu1 %v1045_v7  ;;  %v1313_v58 = vsub.f32 %v5133_v41, %v7637_v26  ;;  %v1057_v7 = vand.u32 4294901760, %v1056_v34  ;;  %v7639_v50 = vand.u32 4294901760, %v5145_v28  ;;  %v5198_v26 = vsub.f32 %v68_v12, %v5173_v43 }
  0x90   :  { %1147 = vmatpush.msrb.mxu3 %v5071_v48  ;;  %1114 = vmatmul.f32.vlgmr.msrb.gmra.mxu2 %v5059_v25  ;;  %v7641_v34 = vand.u32 4294901760, %v4950_v18  ;;  %v5211_v12 = vsub.f32 %v64_v35, %v5186_v30  ;;  %v5213_v25 = vand.u32 4294901760, %v56_v4  ;;  %v7643_v18 = vand.u32 4294901760, %v4955_v5 }
  0x91   :  { %1168 = vmatpush.msra.mxu0 %v7638_v61  ;;  %1264 = vmatpush.msra.mxu2 %v5086_v38  ;;  %v1319_v10 = vsub.f32 %v5145_v28, %v7639_v50  ;;  %v52_v61 = vld [vmem:[#allocation2 + $0xa8] sm:$0xff]  ;;  %v1314_v9 = vand.u32 4294901760, %v1313_v58  ;;  %v5223_v35 = vsub.f32 %v60_v3, %v5200_v49  ;;  %v7644_v5 = vand.u32 4294901760, %v5184_v56 }
  0x92   :  { %1052 = vmatpush.msrb.mxu1 %v1051_v52  ;;  %1149 = vmatpush.msrb.mxu3 %v5092_v47  ;;  %v7642_v52 = vand.u32 4294901760, %v5165_v0  ;;  %v5225_v50 = vand.u32 4294901760, %v52_v61  ;;  %v5235_v3 = vsub.f32 %v56_v4, %v5213_v25 }
  0x93   :  { %1153 = vmatmul.f32.vlgmr.msrb.gmra.mxu3 %v5084_v57  ;;  %1172 = vmatpush.msra.mxu0 %v7641_v34  ;;  %v1320_v58 = vand.u32 4294901760, %v1319_v10  ;;  %v7498_v34 = vand.u32 4294901760, %v5198_v26  ;;  %v44_v57 = vld [vmem:[#allocation2 + $0x68] sm:$0xff] }
  0x94   :  { %1266 = vmatpush.msra.mxu2 %v5105_v6  ;;  %1309 = vmatpush.msra.mxu3 %v1308_v2  ;;  %v1331_v23 = vsub.f32 %v5165_v0, %v7642_v52  ;;  %v1326_v2 = vand.u32 4294901760, %v1325_v60  ;;  %v5237_v52 = vand.u32 4294901760, %v48_v33  ;;  %v5248_v4 = vsub.f32 %v52_v61, %v5225_v50  ;;  %v40_v10 = vld [vmem:[#allocation2 + $0x48] sm:$0xff] }
  0x95   :  { %1058 = vmatpush.msrb.mxu1 %v1057_v7  ;;  %1176 = vmatpush.msra.mxu0 %v7643_v18  ;;  %v1337_v7 = vsub.f32 %v5184_v56, %v7644_v5  ;;  %v7645_v18 = vand.u32 4294901760, %v4969_v22  ;;  %v5250_v5 = vand.u32 4294901760, %v44_v57  ;;  %v7646_v22 = vand.u32 4294901760, %v4990_v39 }
  0x96   :  { %1060 = vmatmul.f32.vlgmr.msrb.gmra.mxu1 %v5032_v53  ;;  %1268 = vmatpush.msra.mxu2 %v5121_v1  ;;  %v1332_v60 = vand.u32 4294901760, %v1331_v23  ;;  %v7647_v23 = vand.u32 4294901760, %v5211_v12  ;;  %v5261_v61 = vsub.f32 %v48_v33, %v5237_v52  ;;  %v5266_v39 = vand.u32 4294901760, %v40_v10 }
  0x97   :  { %1227 = vmatpush.msra.mxu1 %v4901_v55  ;;  %1315 = vmatpush.msra.mxu3 %v1314_v9  ;;  %v1343_v55 = vsub.f32 %v5198_v26, %v7498_v34  ;;  %v36_v34 = vld [vmem:[#allocation2 + $0x28] sm:$0xff]  ;;  %v7648_v9 = vand.u32 4294901760, %v5003_v51  ;;  %v5274_v33 = vsub.f32 %v44_v57, %v5250_v5  ;;  %v7650_v51 = vand.u32 4294901760, %v5016_v54 }
  0x98   :  { %1180 = vmatpush.msra.mxu0 %v7645_v18  ;;  %1270 = vmatpush.msra.mxu2 %v5126_v15  ;;  %v1360_v18 = vand.u32 4294901760, %v5235_v3  ;;  %v7651_v57 = vand.u32 4294901760, %v5028_v31  ;;  %v5290_v54 = vsub.f32 %v40_v10, %v5266_v39  ;;  %v7652_v31 = vand.u32 4294901760, %v5042_v13 }
  0x99   :  { %1229 = vmatpush.msra.mxu1 %v4908_v21  ;;  %1321 = vmatpush.msra.mxu3 %v1320_v58  ;;  %v1338_v21 = vand.u32 4294901760, %v1337_v7  ;;  %v1349_v58 = vsub.f32 %v5211_v12, %v7647_v23  ;;  %v32_v23 = vld [vmem:[#allocation2 + $0x8] sm:$0xff] }
  0x9a   :  { %1184 = vmatpush.msra.mxu0 %v7646_v22  ;;  %1272 = vmatpush.msra.mxu2 %v5140_v44  ;;  %v1366_v22 = vand.u32 4294901760, %v5248_v4  ;;  %v1384_v13 = vand.u32 4294901760, %v5290_v54 }
  0x9b   :  { %1231 = vmatpush.msra.mxu1 %v4915_v16  ;;  %1327 = vmatpush.msra.mxu3 %v1326_v2  ;;  %v1344_v16 = vand.u32 4294901760, %v1343_v55  ;;  %v7649_v2 = vand.u32 4294901760, %v5223_v35  ;;  %v1372_v55 = vand.u32 4294901760, %v5261_v61 }
  0x9c   :  { %1188 = vmatpush.msra.mxu0 %v7648_v9  ;;  %1274 = vmatpush.msra.mxu2 %v5157_v24  ;;  %v5279_v9 = vand.u32 4294901760, %v36_v34 }
  0x9d   :  { %1233 = vmatpush.msra.mxu1 %v4925_v37  ;;  %1333 = vmatpush.msra.mxu3 %v1332_v60  ;;  %v1355_v7 = vsub.f32 %v5223_v35, %v7649_v2  ;;  %v1350_v37 = vand.u32 4294901760, %v1349_v58  ;;  %v1361_v60 = vsub.f32 %v5235_v3, %v1360_v18  ;;  %v5292_v2 = vand.u32 4294901760, %v32_v23 }
  0x9e   :  { %1192 = vmatpush.msra.mxu0 %v7650_v51  ;;  %1276 = vmatpush.msra.mxu2 %v5173_v43  ;;  %v1378_v58 = vand.u32 4294901760, %v5274_v33  ;;  %v5303_v10 = vsub.f32 %v36_v34, %v5279_v9 }
  0x9f   :  { %1235 = vmatpush.msra.mxu1 %v4932_v36  ;;  %1339 = vmatpush.msra.mxu3 %v1338_v21  ;;  %v1356_v36 = vand.u32 4294901760, %v1355_v7  ;;  %v1367_v21 = vsub.f32 %v5248_v4, %v1366_v22  ;;  %v7653_v7 = vand.u32 4294901760, %v5054_v14  ;;  %v5314_v51 = vsub.f32 %v32_v23, %v5292_v2 }
  0xa0   :  { %1196 = vmatpush.msra.mxu0 %v7651_v57  ;;  %1278 = vmatpush.msra.mxu2 %v5186_v30  ;;  %v1379_v34 = vsub.f32 %v5274_v33, %v1378_v58  ;;  %v1390_v14 = vand.u32 4294901760, %v5303_v10 }
  0xa1   :  { %1237 = vmatpush.msra.mxu1 %v4943_v29  ;;  %1345 = vmatpush.msra.mxu3 %v1344_v16  ;;  %v1362_v29 = vand.u32 4294901760, %v1361_v60  ;;  %v1373_v16 = vsub.f32 %v5261_v61, %v1372_v55  ;;  %v7655_v60 = vand.u32 4294901760, %v5079_v45  ;;  %v7657_v45 = vand.u32 4294901760, %v5119_v20 }
  0xa2   :  { %1200 = vmatpush.msra.mxu0 %v7652_v31  ;;  %1280 = vmatpush.msra.mxu2 %v5200_v49  ;;  %v1380_v57 = vand.u32 4294901760, %v1379_v34  ;;  %v7667_v34 = vld [vmem:[#allocation11_spill] sm:$0xff] }
  0xa3   :  { %1239 = vmatpush.msra.mxu1 %v4963_v17  ;;  %1351 = vmatpush.msra.mxu3 %v1350_v37  ;;  %v1368_v17 = vand.u32 4294901760, %v1367_v21  ;;  %v7654_v37 = vand.u32 4294901760, %v5067_v11  ;;  %v1374_v23 = vand.u32 4294901760, %v1373_v16  ;;  %v1396_v11 = vand.u32 4294901760, %v5314_v51 }
  0xa4   :  { %1204 = vmatpush.msra.mxu0 %v7653_v7  ;;  %1282 = vmatpush.msra.mxu2 %v5213_v25 }
  0xa5   :  { %1241 = vmatpush.msra.mxu1 %v4976_v59  ;;  %1357 = vmatpush.msra.mxu3 %v1356_v36  ;;  %v1385_v59 = vsub.f32 %v5290_v54, %v1384_v13  ;;  %v7656_v36 = vand.u32 4294901760, %v5098_v27  ;;  %v1397_v27 = vsub.f32 %v5314_v51, %v1396_v11 }
  0xa6   :  { %1208 = vmatpush.msra.mxu0 %v7654_v37  ;;  %1284 = vmatpush.msra.mxu2 %v5225_v50 }
  0xa7   :  { %1243 = vmatpush.msra.mxu1 %v4987_v32  ;;  %1363 = vmatpush.msra.mxu3 %v1362_v29  ;;  %v1391_v32 = vsub.f32 %v5303_v10, %v1390_v14  ;;  %v1398_v20 = vand.u32 4294901760, %v1397_v27 }
  0xa8   :  { %1212 = vmatpush.msra.mxu0 %v7655_v60  ;;  %1286 = vmatpush.msra.mxu2 %v5237_v52 }
  0xa9   :  { %1245 = vmatpush.msra.mxu1 %v5000_v42  ;;  %1369 = vmatpush.msra.mxu3 %v1368_v17  ;;  %v1386_v42 = vand.u32 4294901760, %v1385_v59  ;;  %v1392_v21 = vand.u32 4294901760, %v1391_v32 }
  0xaa   :  { %1216 = vmatpush.msra.mxu0 %v7656_v36  ;;  %1288 = vmatpush.msra.mxu2 %v5250_v5 }
  0xab   :  { %1247 = vmatpush.msra.mxu1 %v5012_v19  ;;  %1375 = vmatpush.msra.mxu3 %v1374_v23  ;;  %v7658_v19 = vand.u32 4294901760, %v5112_v63 }
  0xac   :  { %1220 = vmatpush.msra.mxu0 %v7657_v45  ;;  %1290 = vmatpush.msra.mxu2 %v5266_v39 }
  0xad   :  { %1249 = vmatpush.msra.mxu1 %v5024_v40  ;;  %1381 = vmatpush.msra.mxu3 %v1380_v57  ;;  %v7659_v40 = vand.u32 4294901760, %v5133_v41 }
  0xae   :  { %1222 = vmatmul.f32.vlgmr.msra.gmra.mxu0 %v5032_v53  ;;  %1292 = vmatpush.msra.mxu2 %v5279_v9 }
  0xaf   :  { %1407 = vmatpush.msrb.mxu0 %v5112_v63  ;;  %1251 = vmatpush.msra.mxu1 %v5038_v62  ;;  %v7660_v62 = vand.u32 4294901760, %v5145_v28  ;;  %v152_v63 = vld [vmem:[#allocation2 + $0x3c8] sm:$0xff] }
  0xb0   :  { %1387 = vmatpush.msra.mxu3 %v1386_v42  ;;  %1294 = vmatpush.msra.mxu2 %v5292_v2 }
  0xb1   :  { %1410 = vmatpush.msrb.mxu0 %v5133_v41  ;;  %1253 = vmatpush.msra.mxu1 %v5050_v8  ;;  %v7661_v8 = vand.u32 4294901760, %v5153_v46  ;;  %v7662_v41 = vand.u32 4294901760, %v5165_v0 }
  0xb2   :  { %1393 = vmatpush.msra.mxu3 %v1392_v21  ;;  %1501 = vmatpush.msrb.mxu2 %v7658_v19 }
  0xb3   :  { %1413 = vmatpush.msrb.mxu0 %v5145_v28  ;;  %1255 = vmatpush.msra.mxu1 %v5071_v48  ;;  %v7663_v48 = vand.u32 4294901760, %v5184_v56  ;;  %v148_v28 = vld [vmem:[#allocation2 + $0x3a8] sm:$0xff] }
  0xb4   :  { %1399 = vmatpush.msra.mxu3 %v1398_v20  ;;  %1505 = vmatpush.msrb.mxu2 %v7659_v40  ;;  %v116_v40 = vld [vmem:[#allocation2 + $0x2a8] sm:$0xff] }
  0xb5   :  { %1416 = vmatpush.msrb.mxu0 %v5153_v46  ;;  %1257 = vmatpush.msra.mxu1 %v5092_v47  ;;  %v7664_v46 = vand.u32 4294901760, %v5198_v26 }
  0xb6   :  { %1568 = vmatpush.msrb.mxu3 %v5086_v38  ;;  %1509 = vmatpush.msrb.mxu2 %v7660_v62 }
  0xb7   :  { %1259 = vmatmul.f32.vlgmr.msra.gmra.mxu1 %v5032_v53  ;;  %1419 = vmatpush.msrb.mxu0 %v5165_v0 }
  0xb8   :  { %1460 = vmatpush.msrb.mxu1 %v5086_v38  ;;  %1570 = vmatpush.msrb.mxu3 %v5105_v6  ;;  %v7666_v38 = vand.u32 4294901760, %v5223_v35 }
  0xb9   :  { %1422 = vmatpush.msrb.mxu0 %v5184_v56  ;;  %1513 = vmatpush.msrb.mxu2 %v7661_v8  ;;  %v144_v56 = vld [vmem:[#allocation2 + $0x388] sm:$0xff] }
  0xba   :  { %1462 = vmatpush.msrb.mxu1 %v5105_v6  ;;  %1572 = vmatpush.msrb.mxu3 %v5121_v1  ;;  %v7665_v6 = vand.u32 4294901760, %v5211_v12 }
  0xbb   :  { %1425 = vmatpush.msrb.mxu0 %v5198_v26  ;;  %1517 = vmatpush.msrb.mxu2 %v7662_v41 }
  0xbc   :  { %1464 = vmatpush.msrb.mxu1 %v5121_v1  ;;  %1574 = vmatpush.msrb.mxu3 %v5126_v15  ;;  %v156_v1 = vld [vmem:[#allocation2 + $0x3e8] sm:$0xff] }
  0xbd   :  { %1428 = vmatpush.msrb.mxu0 %v5211_v12  ;;  %1521 = vmatpush.msrb.mxu2 %v7663_v48  ;;  %v5397_v47 = vand.u32 4294901760, %v156_v1 }
  0xbe   :  { %1466 = vmatpush.msrb.mxu1 %v5126_v15  ;;  %1576 = vmatpush.msrb.mxu3 %v5140_v44  ;;  %v5409_v15 = vand.u32 4294901760, %v152_v63 }
  0xbf   :  { %1431 = vmatpush.msrb.mxu0 %v5223_v35  ;;  %1525 = vmatpush.msrb.mxu2 %v7664_v46  ;;  %v140_v35 = vld [vmem:[#allocation2 + $0x368] sm:$0xff] }
  0xc0   :  { %1468 = vmatpush.msrb.mxu1 %v5140_v44  ;;  %1578 = vmatpush.msrb.mxu3 %v5157_v24  ;;  %v223_v44 = vld [vmem:[%s7439_s2] sm:$0xf]  ;;  %v278_v0 = vpop.f32.mrf.mxu0  ;;  %v5427_v26 = vsub.f32 %v152_v63, %v5409_v15 }
  0xc1   :  { %1434 = vmatpush.msrb.mxu0 %v5235_v3  ;;  %1529 = vmatpush.msrb.mxu2 %v7665_v6  ;;  %v5435_v3 = vand.u32 4294901760, %v144_v56  ;;  %v5516_v6 = vand.u32 4294901760, %v116_v40 }
  0xc2   :  { %1470 = vmatpush.msrb.mxu1 %v5157_v24  ;;  %1580 = vmatpush.msrb.mxu3 %v5173_v43  ;;  %v232_v24 = vperm.slane %v223_v44, 0 }
  0xc3   :  { %1437 = vmatpush.msrb.mxu0 %v5248_v4  ;;  %1533 = vmatpush.msrb.mxu2 %v7666_v38 }
  0xc4   :  { %1472 = vmatpush.msrb.mxu1 %v5173_v43  ;;  %1582 = vmatpush.msrb.mxu3 %v5186_v30  ;;  %v5415_v43 = vsub.f32 %v156_v1, %v5397_v47  ;;  %v279_v12 = vadd.f32 %v278_v0, %v232_v24  ;;  %v112_v1 = vld [vmem:[#allocation2 + $0x288] sm:$0xff] }
  0xc5   :  { %1440 = vmatpush.msrb.mxu0 %v5261_v61  ;;  %1537 = vmatpush.msrb.mxu2 %v1360_v18  ;;  %v136_v61 = vld [vmem:[#allocation2 + $0x348] sm:$0xff] }
  0xc6   :  { %1474 = vmatpush.msrb.mxu1 %v5186_v30  ;;  %1584 = vmatpush.msrb.mxu3 %v5200_v49  ;;  %v5422_v30 = vand.u32 4294901760, %v148_v28  ;;  %v108_v0 = vld [vmem:[#allocation2 + $0x268] sm:$0xff] }
  0xc7   :  { %1443 = vmatpush.msrb.mxu0 %v5274_v33  ;;  %1541 = vmatpush.msrb.mxu2 %v1366_v22  ;;  %v7511_v33 = vand.u32 4294901760, %v5427_v26 }
  0xc8   :  { %1476 = vmatpush.msrb.mxu1 %v5200_v49  ;;  %1586 = vmatpush.msrb.mxu3 %v5213_v25  ;;  %v1647_v49 = vand.u32 4294901760, %v5415_v43  ;;  %v5443_v4 = vsub.f32 %v148_v28, %v5422_v30 }
  0xc9   :  { %1446 = vmatpush.msrb.mxu0 %v5290_v54  ;;  %1545 = vmatpush.msrb.mxu2 %v1372_v55  ;;  %v132_v54 = vld [vmem:[#allocation2 + $0x328] sm:$0xff]  ;;  %v1654_v7 = vsub.f32 %v5427_v26, %v7511_v33 }
  0xca   :  { %1478 = vmatpush.msrb.mxu1 %v5213_v25  ;;  %1588 = vmatpush.msrb.mxu3 %v5225_v50  ;;  %v5440_v25 = vand.u32 4294901760, %v140_v35  ;;  %v1648_v55 = vsub.f32 %v5415_v43, %v1647_v49 }
  0xcb   :  { %1449 = vmatpush.msrb.mxu0 %v5303_v10  ;;  %1549 = vmatpush.msrb.mxu2 %v1378_v58  ;;  %v5459_v58 = vsub.f32 %v144_v56, %v5435_v3  ;;  %v7510_v10 = vand.u32 4294901760, %v5443_v4  ;;  %v1655_v32 = vand.u32 4294901760, %v1654_v7 }
  0xcc   :  { %1480 = vmatpush.msrb.mxu1 %v5225_v50  ;;  %1590 = vmatpush.msrb.mxu3 %v5237_v52  ;;  %v433_v22 = vpop.f32.mrf.mxu2  ;;  %v5466_v16 = vsub.f32 %v140_v35, %v5440_v25  ;;  %v5534_v35 = vand.u32 4294901760, %v112_v1 }
  0xcd   :  { %1452 = vmatpush.msrb.mxu0 %v5314_v51  ;;  %1553 = vmatpush.msrb.mxu2 %v1384_v13  ;;  %v379_v18 = vpop.f32.mrf.mxu1  ;;  %v5473_v13 = vand.u32 4294901760, %v132_v54  ;;  %v1649_v51 = vand.u32 4294901760, %v1648_v55  ;;  %v7509_v23 = vand.u32 4294901760, %v5459_v58  ;;  %v1660_v57 = vsub.f32 %v5443_v4, %v7510_v10 }
  0xce   :  { %1482 = vmatpush.msrb.mxu1 %v5237_v52  ;;  %1592 = vmatpush.msrb.mxu3 %v5250_v5  ;;  %v380_v50 = vadd.f32 %v379_v18, %v279_v12  ;;  %v5456_v52 = vand.u32 4294901760, %v136_v61  ;;  %v7508_v36 = vand.u32 4294901760, %v5466_v16 }
  0xcf   :  { %1605 = vmatpush.msra.mxu0 %v5397_v47  ;;  %1557 = vmatpush.msrb.mxu2 %v1390_v14  ;;  %v472_v29 = vpop.f32.mrf.mxu3  ;;  %v124_v14 = vld [vmem:[#allocation2 + $0x2e8] sm:$0xff]  ;;  %v5496_v42 = vsub.f32 %v132_v54, %v5473_v13  ;;  %v1666_v62 = vsub.f32 %v5459_v58, %v7509_v23  ;;  %v5543_v54 = vand.u32 4294901760, %v108_v0 }
  0xd0   :  { %1484 = vmatpush.msrb.mxu1 %v5250_v5  ;;  %1594 = vmatpush.msrb.mxu3 %v5266_v39  ;;  %v434_v31 = vadd.f32 %v433_v22, %v380_v50  ;;  %v128_v5 = vld [vmem:[#allocation2 + $0x308] sm:$0xff]  ;;  %v5483_v60 = vsub.f32 %v136_v61, %v5456_v52  ;;  %v5493_v45 = vand.u32 4294901760, %v124_v14  ;;  %v1672_v48 = vsub.f32 %v5466_v16, %v7508_v36  ;;  %v7669_v50 = vld [vmem:[#allocation8_spill] sm:$0xff] }
  0xd1   :  { %1607 = vmatpush.msra.mxu0 %v5409_v15  ;;  %1561 = vmatpush.msrb.mxu2 %v1396_v11  ;;  %v120_v11 = vld [vmem:[#allocation2 + $0x2c8] sm:$0xff]  ;;  %v7506_v38 = vand.u32 4294901760, %v5496_v42  ;;  %v1667_v56 = vand.u32 4294901760, %v1666_v62 }
  0xd2   :  { %1486 = vmatpush.msrb.mxu1 %v5266_v39  ;;  %1596 = vmatpush.msrb.mxu3 %v5279_v9  ;;  %v473_v17 = vadd.f32 %v472_v29, %v434_v31  ;;  %v5479_v39 = vand.u32 4294901760, %v128_v5  ;;  %v5500_v20 = vand.u32 4294901760, %v120_v11  ;;  %v7507_v8 = vand.u32 4294901760, %v5483_v60  ;;  %v104_v22 = vld [vmem:[#allocation2 + $0x248] sm:$0xff] }
  0xd3   :  { %1300 = vmatmul.f32.vlgmr.msra.gmra.mxu2 %v7667_v34  ;;  %1609 = vmatpush.msra.mxu0 %v5422_v30  ;;  %v541_v37 = vpop.f32.mrf.mxu0  ;;  %v5520_v63 = vsub.f32 %v124_v14, %v5493_v45  ;;  %v1673_v61 = vand.u32 4294901760, %v1672_v48  ;;  %v1684_v55 = vsub.f32 %v5496_v42, %v7506_v38  ;;  %v5547_v29 = vsub.f32 %v116_v40, %v5516_v6  ;;  %v7670_v14 = vld [vmem:[#allocation9_spill] sm:$0xff]  ;;  %v196_v36 = vld [vmem:[#allocation2 + $0x528] sm:$0xff] }
  0xd4   :  { %1748 = vmatpush.msra.mxu2 %v5415_v43  ;;  %1488 = vmatpush.msrb.mxu1 %v5279_v9  ;;  %v542_v59 = vadd.f32 %v541_v37, %v473_v17  ;;  %v7668_v9 = vld [vmem:[#allocation7_spill] sm:$0xff]  ;;  %v5508_v41 = vsub.f32 %v128_v5, %v5479_v39  ;;  %v5527_v24 = vsub.f32 %v120_v11, %v5500_v20  ;;  %v192_v38 = vld [vmem:[#allocation2 + $0x508] sm:$0xff] }
  0xd5   :  { %1598 = vmatpush.msrb.mxu3 %v5292_v2  ;;  %1611 = vmatpush.msra.mxu0 %v5435_v3  ;;  %v1678_v12 = vsub.f32 %v5483_v60, %v7507_v8  ;;  %v7502_v31 = vand.u32 4294901760, %v5520_v63  ;;  %v5559_v37 = vsub.f32 %v112_v1, %v5534_v35  ;;  %v1685_v11 = vand.u32 4294901760, %v1684_v55  ;;  %v188_v43 = vld [vmem:[#allocation2 + $0x4e8] sm:$0xff] }
  0xd6   :  { %1401 = vmatmul.f32.vlgmr.msra.gmra.mxu3 %v7668_v9  ;;  %1751 = vmatpush.msra.mxu2 %v5427_v26  ;;  %v578_v27 = vpop.f32.mrf.mxu1  ;;  %v7504_v18 = vand.u32 4294901760, %v5508_v41  ;;  %v7500_v5 = vand.u32 4294901760, %v5527_v24 }
  0xd7   :  { %1801 = vmatpush.msra.mxu3 %v5397_v47  ;;  %1490 = vmatpush.msrb.mxu1 %v5292_v2  ;;  %v579_v21 = vadd.f32 %v578_v27, %v542_v59  ;;  %v619_v19 = vpop.f32.mrf.mxu2  ;;  %v1661_v2 = vand.u32 4294901760, %v1660_v57  ;;  %v1679_v7 = vand.u32 4294901760, %v1678_v12  ;;  %v100_v59 = vld [vmem:[#allocation2 + $0x228] sm:$0xff]  ;;  %v1696_v57 = vsub.f32 %v5520_v63, %v7502_v31 }
  0xd8   :  { %1613 = vmatpush.msra.mxu0 %v5440_v25  ;;  %1754 = vmatpush.msra.mxu2 %v5443_v4  ;;  %v1690_v17 = vsub.f32 %v5508_v41, %v7504_v18  ;;  %v5569_v27 = vsub.f32 %v108_v0, %v5543_v54  ;;  %v5577_v62 = vand.u32 4294901760, %v100_v59  ;;  %v7501_v48 = vand.u32 4294901760, %v5559_v37  ;;  %v216_v12 = vld [vmem:[#allocation2 + $0x5c8] sm:$0xff] }
  0xd9   :  { %1650 = vmatpush.msra.mxu1 %v1649_v51  ;;  %1803 = vmatpush.msra.mxu3 %v5409_v15  ;;  %v620_v46 = vadd.f32 %v619_v19, %v579_v21  ;;  %v5556_v51 = vand.u32 4294901760, %v104_v22  ;;  %v1702_v21 = vsub.f32 %v5527_v24, %v7500_v5  ;;  %v220_v19 = vld [vmem:[#allocation2 + $0x5e8] sm:$0xff]  ;;  %v1697_v1 = vand.u32 4294901760, %v1696_v57 }
  0xda   :  { %1615 = vmatpush.msra.mxu0 %v5456_v52  ;;  %v720_v44 = vpop.f32.mrf.mxu3  ;;  %1757 = vmatpush.msra.mxu2 %v5459_v58  ;;  %v1691_v40 = vand.u32 4294901760, %v1690_v17  ;;  %v7503_v0 = vand.u32 4294901760, %v5569_v27  ;;  %v208_v5 = vld [vmem:[#allocation2 + $0x588] sm:$0xff] }
  0xdb   :  { %1656 = vmatpush.msra.mxu1 %v1655_v32  ;;  %1805 = vmatpush.msra.mxu3 %v5422_v30  ;;  %v5524_v28 = vadd.f32 %v720_v44, %v620_v46  ;;  %v7499_v32 = vand.u32 4294901760, %v5547_v29  ;;  %v5581_v46 = vsub.f32 %v104_v22, %v5556_v51  ;;  %v204_v31 = vld [vmem:[#allocation2 + $0x568] sm:$0xff] }
  0xdc   :  { %1563 = vmatmul.f32.vlgmr.msrb.gmra.mxu2 %v7668_v9  ;;  %1617 = vmatpush.msra.mxu0 %v5473_v13  ;;  %v5637_v18 = vand.u32 4294901760, %v204_v31 }
  0xdd   :  { %1662 = vmatpush.msra.mxu1 %v1661_v2  ;;  %1760 = vmatpush.msra.mxu2 %v5466_v16  ;;  %v96_v2 = vld [vmem:[#allocation2 + $0x208] sm:$0xff]  ;;  %v1708_v44 = vsub.f32 %v5547_v29, %v7499_v32  ;;  %v7505_v57 = vand.u32 4294901760, %v5581_v46 }
  0xde   :  { %1807 = vmatpush.msra.mxu3 %v5435_v3  ;;  %1455 = vmatmul.f32.vlgmr.msrb.gmra.mxu0 %v7669_v50  ;;  %v5594_v22 = vand.u32 4294901760, %v96_v2  ;;  %v212_v32 = vld [vmem:[#allocation2 + $0x5a8] sm:$0xff]  ;;  %v5684_v50 = vand.u32 4294901760, %v192_v38 }
  0xdf   :  { %1600 = vmatmul.f32.vlgmr.msrb.gmra.mxu3 %v7668_v9  ;;  %1619 = vmatpush.msra.mxu0 %v5479_v39 }
  0xe0   :  { %1668 = vmatpush.msra.mxu1 %v1667_v56  ;;  %1763 = vmatpush.msra.mxu2 %v5483_v60  ;;  %v5590_v56 = vand.u32 4294901760, %v220_v19  ;;  %7671 = vst [vmem:[#allocation17_spill] sm:$0xff] %v5594_v22 }
  0xe1   :  { %1809 = vmatpush.msra.mxu3 %v5440_v25  ;;  %1494 = vmatmul.f32.vlgmr.msrb.gmra.mxu1 %v7670_v14 }
  0xe2   :  { %1621 = vmatpush.msra.mxu0 %v5493_v45  ;;  %1674 = vmatpush.msra.mxu1 %v1673_v61  ;;  %v1703_v61 = vand.u32 4294901760, %v1702_v21  ;;  %v5607_v21 = vand.u32 4294901760, %v216_v12 }
  0xe3   :  { %1766 = vmatpush.msra.mxu2 %v5496_v42  ;;  %1811 = vmatpush.msra.mxu3 %v5456_v52 }
  0xe4   :  { %1623 = vmatpush.msra.mxu0 %v5500_v20  ;;  %1680 = vmatpush.msra.mxu1 %v1679_v7  ;;  %v1714_v7 = vsub.f32 %v5559_v37, %v7501_v48  ;;  %7672 = vst [vmem:[#allocation18_spill] sm:$0xff] %v5607_v21  ;;  %v5621_v48 = vand.u32 4294901760, %v212_v32 }
  0xe5   :  { %1769 = vmatpush.msra.mxu2 %v5508_v41  ;;  %1813 = vmatpush.msra.mxu3 %v5473_v13 }
  0xe6   :  { %1625 = vmatpush.msra.mxu0 %v5516_v6  ;;  %1686 = vmatpush.msra.mxu1 %v1685_v11  ;;  %v5602_v11 = vsub.f32 %v100_v59, %v5577_v62  ;;  %v5614_v59 = vsub.f32 %v220_v19, %v5590_v56  ;;  %v5643_v8 = vsub.f32 %v212_v32, %v5621_v48 }
  0xe7   :  { %1772 = vmatpush.msra.mxu2 %v5520_v63  ;;  %1815 = vmatpush.msra.mxu3 %v5479_v39  ;;  %v774_v55 = vpop.f32.mrf.mxu0 }
  0xe8   :  { %1627 = vmatpush.msra.mxu0 %v5534_v35  ;;  %1692 = vmatpush.msra.mxu1 %v1691_v40  ;;  %v775_v17 = vadd.f32 %v774_v55, %v5524_v28  ;;  %v1709_v40 = vand.u32 4294901760, %v1708_v44  ;;  %v1720_v28 = vsub.f32 %v5569_v27, %v7503_v0  ;;  %v5619_v55 = vsub.f32 %v96_v2, %v5594_v22 }
  0xe9   :  { %1775 = vmatpush.msra.mxu2 %v5527_v24  ;;  %1817 = vmatpush.msra.mxu3 %v5493_v45  ;;  %v1726_v44 = vsub.f32 %v5581_v46, %v7505_v57  ;;  %v7512_v19 = vand.u32 4294901760, %v5602_v11  ;;  %v5628_v0 = vand.u32 4294901760, %v208_v5  ;;  %v5633_v2 = vsub.f32 %v216_v12, %v5607_v21  ;;  %v200_v57 = vld [vmem:[#allocation2 + $0x548] sm:$0xff] }
  0xea   :  { %1629 = vmatpush.msra.mxu0 %v5543_v54  ;;  %1698 = vmatpush.msra.mxu1 %v1697_v1  ;;  %v1715_v1 = vand.u32 4294901760, %v1714_v7  ;;  %v7514_v7 = vand.u32 4294901760, %v5614_v59  ;;  %v5655_v33 = vand.u32 4294901760, %v200_v57  ;;  %v7674_v23 = vand.u32 4294901760, %v5619_v55 }
  0xeb   :  { %1778 = vmatpush.msra.mxu2 %v5547_v29  ;;  %1819 = vmatpush.msra.mxu3 %v5500_v20  ;;  %v1727_v12 = vand.u32 4294901760, %v1726_v44 }
  0xec   :  { %1631 = vmatpush.msra.mxu0 %v5556_v51  ;;  %1704 = vmatpush.msra.mxu1 %v1703_v61  ;;  %v1721_v61 = vand.u32 4294901760, %v1720_v28  ;;  %v5650_v28 = vsub.f32 %v208_v5, %v5628_v0  ;;  %v1989_v44 = vsub.f32 %v5614_v59, %v7514_v7  ;;  %v1738_v9 = vsub.f32 %v5619_v55, %v7674_v23 }
  0xed   :  { %1781 = vmatpush.msra.mxu2 %v5559_v37  ;;  %1821 = vmatpush.msra.mxu3 %v5516_v6  ;;  %v7676_v23 = vand.u32 4294901760, %v5633_v2  ;;  %v5682_v14 = vsub.f32 %v200_v57, %v5655_v33  ;;  %v7679_v57 = vand.u32 4294901760, %v5643_v8 }
  0xee   :  { %1633 = vmatpush.msra.mxu0 %v5577_v62  ;;  %1710 = vmatpush.msra.mxu1 %v1709_v40  ;;  %v1732_v40 = vsub.f32 %v5602_v11, %v7512_v19  ;;  %v5662_v19 = vsub.f32 %v204_v31, %v5637_v18 }
  0xef   :  { %1784 = vmatpush.msra.mxu2 %v5569_v27  ;;  %1823 = vmatpush.msra.mxu3 %v5534_v35 }
  0xf0   :  { %1635 = vmatpush.msra.mxu0 %v5594_v22  ;;  %1716 = vmatpush.msra.mxu1 %v1715_v1  ;;  %v7673_v1 = vld [vmem:[#allocation5_spill] sm:$0xff] }
  0xf1   :  { %1787 = vmatpush.msra.mxu2 %v5581_v46  ;;  %1825 = vmatpush.msra.mxu3 %v5543_v54  ;;  %v813_v32 = vpop.f32.mrf.mxu1  ;;  %v882_v10 = vpop.f32.mrf.mxu2 }
  0xf2   :  { %1641 = vmatmul.f32.vlgmr.msra.gmra.mxu0 %v7673_v1  ;;  %1722 = vmatpush.msra.mxu1 %v1721_v61  ;;  %v814_v5 = vadd.f32 %v813_v32, %v775_v17  ;;  %v5671_v1 = vand.u32 4294901760, %v196_v36  ;;  %v1733_v17 = vand.u32 4294901760, %v1732_v40  ;;  %v1995_v61 = vsub.f32 %v5633_v2, %v7676_v23 }
  0xf3   :  { %1842 = vmatpush.msrb.mxu0 %v1647_v49  ;;  %1790 = vmatpush.msra.mxu2 %v5602_v11  ;;  %v7675_v49 = vand.u32 4294901760, %v5427_v26  ;;  %v1739_v23 = vand.u32 4294901760, %v1738_v9  ;;  %v2001_v32 = vsub.f32 %v5643_v8, %v7679_v57  ;;  %v7682_v9 = vand.u32 4294901760, %v5459_v58 }
  0xf4   :  { %1827 = vmatpush.msra.mxu3 %v5556_v51  ;;  %1728 = vmatpush.msra.mxu1 %v1727_v12  ;;  %v883_v31 = vadd.f32 %v882_v10, %v814_v5  ;;  %v919_v7 = vpop.f32.mrf.mxu3  ;;  %v7677_v10 = vld [vmem:[#allocation12_spill] sm:$0xff]  ;;  %v1990_v12 = vand.u32 4294901760, %v1989_v44  ;;  %v184_v5 = vld [vmem:[#allocation2 + $0x4c8] sm:$0xff]  ;;  %v5698_v34 = vsub.f32 %v196_v36, %v5671_v1  ;;  %v5711_v36 = vsub.f32 %v192_v38, %v5684_v50 }
  0xf5   :  { %1846 = vmatpush.msrb.mxu0 %v7675_v49  ;;  %1793 = vmatpush.msra.mxu2 %v5619_v55  ;;  %v7678_v49 = vand.u32 4294901760, %v5443_v4  ;;  %v180_v44 = vld [vmem:[#allocation2 + $0x4a8] sm:$0xff]  ;;  %v5713_v26 = vand.u32 4294901760, %v184_v5  ;;  %v7684_v58 = vand.u32 4294901760, %v5466_v16  ;;  %v7686_v16 = vand.u32 4294901760, %v5682_v14 }
  0xf6   :  { %1829 = vmatpush.msra.mxu3 %v5577_v62  ;;  %1796 = vmatmul.f32.vlgmr.msra.gmra.mxu2 %v7677_v10  ;;  %v5688_v40 = vadd.f32 %v919_v7, %v883_v31  ;;  %v5700_v10 = vand.u32 4294901760, %v188_v43  ;;  %v7680_v7 = vand.u32 4294901760, %v5650_v28  ;;  %v7681_v31 = vld [vmem:[#allocation13_spill] sm:$0xff]  ;;  %v5725_v57 = vand.u32 4294901760, %v180_v44 }
  0xf7   :  { %1850 = vmatpush.msrb.mxu0 %v7678_v49  ;;  %1946 = vmatpush.msrb.mxu2 %v5590_v56  ;;  %v1996_v49 = vand.u32 4294901760, %v1995_v61  ;;  %v2002_v61 = vand.u32 4294901760, %v2001_v32  ;;  %v2019_v32 = vsub.f32 %v5682_v14, %v7686_v16 }
  0xf8   :  { %1734 = vmatpush.msra.mxu1 %v1733_v17  ;;  %1831 = vmatpush.msra.mxu3 %v5594_v22  ;;  %v2007_v4 = vsub.f32 %v5650_v28, %v7680_v7  ;;  %v7683_v17 = vand.u32 4294901760, %v5662_v19  ;;  %v176_v22 = vld [vmem:[#allocation2 + $0x488] sm:$0xff]  ;;  %v5723_v38 = vsub.f32 %v188_v43, %v5700_v10  ;;  %v5735_v43 = vsub.f32 %v184_v5, %v5713_v26 }
  0xf9   :  { %1835 = vmatmul.f32.vlgmr.msra.gmra.mxu3 %v7681_v31  ;;  %1854 = vmatpush.msrb.mxu0 %v7682_v9  ;;  %v7518_v9 = vand.u32 4294901760, %v5698_v34  ;;  %v7685_v31 = vld [vmem:[#allocation10_spill] sm:$0xff]  ;;  %v5748_v5 = vsub.f32 %v180_v44, %v5725_v57 }
  0xfa   :  { %1948 = vmatpush.msrb.mxu2 %v5607_v21  ;;  %1991 = vmatpush.msrb.mxu3 %v1990_v12  ;;  %v2013_v7 = vsub.f32 %v5662_v19, %v7683_v17  ;;  %v2008_v12 = vand.u32 4294901760, %v2007_v4  ;;  %v172_v21 = vld [vmem:[#allocation2 + $0x468] sm:$0xff]  ;;  %v5737_v17 = vand.u32 4294901760, %v176_v22 }
  0xfb   :  { %1740 = vmatpush.msra.mxu1 %v1739_v23  ;;  %1858 = vmatpush.msrb.mxu0 %v7684_v58  ;;  %v7687_v58 = vand.u32 4294901760, %v5483_v60  ;;  %v5750_v16 = vand.u32 4294901760, %v172_v21  ;;  %v168_v23 = vld [vmem:[#allocation2 + $0x448] sm:$0xff]  ;;  %v7688_v60 = vand.u32 4294901760, %v5496_v42 }
  0xfc   :  { %1742 = vmatmul.f32.vlgmr.msra.gmra.mxu1 %v7685_v31  ;;  %1950 = vmatpush.msrb.mxu2 %v5621_v48  ;;  %v2014_v4 = vand.u32 4294901760, %v2013_v7  ;;  %v7689_v7 = vand.u32 4294901760, %v5711_v36  ;;  %v5761_v44 = vsub.f32 %v176_v22, %v5737_v17  ;;  %v5766_v42 = vand.u32 4294901760, %v168_v23 }
  0xfd   :  { %1909 = vmatpush.msrb.mxu1 %v5397_v47  ;;  %1997 = vmatpush.msrb.mxu3 %v1996_v49  ;;  %v2025_v47 = vsub.f32 %v5698_v34, %v7518_v9  ;;  %v164_v9 = vld [vmem:[#allocation2 + $0x428] sm:$0xff]  ;;  %v7690_v49 = vand.u32 4294901760, %v5508_v41  ;;  %v5774_v22 = vsub.f32 %v172_v21, %v5750_v16  ;;  %v7692_v41 = vand.u32 4294901760, %v5520_v63 }
  0xfe   :  { %1862 = vmatpush.msrb.mxu0 %v7687_v58  ;;  %1952 = vmatpush.msrb.mxu2 %v5628_v0  ;;  %v2042_v58 = vand.u32 4294901760, %v5735_v43  ;;  %v7693_v21 = vand.u32 4294901760, %v5527_v24  ;;  %v5790_v63 = vsub.f32 %v168_v23, %v5766_v42  ;;  %v7694_v24 = vand.u32 4294901760, %v5547_v29 }
  0xff   :  { %1911 = vmatpush.msrb.mxu1 %v5409_v15  ;;  %2003 = vmatpush.msrb.mxu3 %v2002_v61  ;;  %v2020_v15 = vand.u32 4294901760, %v2019_v32  ;;  %v2031_v61 = vsub.f32 %v5711_v36, %v7689_v7  ;;  %v160_v7 = vld [vmem:[#allocation2 + $0x408] sm:$0xff] }
 0x100   :  { %1866 = vmatpush.msrb.mxu0 %v7688_v60  ;;  %1954 = vmatpush.msrb.mxu2 %v5637_v18  ;;  %v2048_v60 = vand.u32 4294901760, %v5748_v5 }
 0x101   :  { %1913 = vmatpush.msrb.mxu1 %v5422_v30  ;;  %2009 = vmatpush.msrb.mxu3 %v2008_v12  ;;  %v2026_v30 = vand.u32 4294901760, %v2025_v47  ;;  %v7691_v12 = vand.u32 4294901760, %v5723_v38  ;;  %v2054_v47 = vand.u32 4294901760, %v5761_v44 }
 0x102   :  { %1870 = vmatpush.msrb.mxu0 %v7690_v49  ;;  %1956 = vmatpush.msrb.mxu2 %v5655_v33  ;;  %v5779_v49 = vand.u32 4294901760, %v164_v9 }
 0x103   :  { %1915 = vmatpush.msrb.mxu1 %v5435_v3  ;;  %2015 = vmatpush.msrb.mxu3 %v2014_v4  ;;  %v2037_v32 = vsub.f32 %v5723_v38, %v7691_v12  ;;  %v2032_v3 = vand.u32 4294901760, %v2031_v61  ;;  %v2043_v4 = vsub.f32 %v5735_v43, %v2042_v58  ;;  %v5792_v12 = vand.u32 4294901760, %v160_v7 }
 0x104   :  { %1874 = vmatpush.msrb.mxu0 %v7692_v41  ;;  %1958 = vmatpush.msrb.mxu2 %v5671_v1  ;;  %v2060_v61 = vand.u32 4294901760, %v5774_v22  ;;  %v5803_v23 = vsub.f32 %v164_v9, %v5779_v49  ;;  %v7695_v41 = vand.u32 4294901760, %v5559_v37  ;;  %v7696_v37 = vand.u32 4294901760, %v5569_v27 }
 0x105   :  { %1917 = vmatpush.msrb.mxu1 %v5440_v25  ;;  %2021 = vmatpush.msrb.mxu3 %v2020_v15  ;;  %v2038_v25 = vand.u32 4294901760, %v2037_v32  ;;  %v2049_v15 = vsub.f32 %v5748_v5, %v2048_v60  ;;  %v5815_v9 = vsub.f32 %v160_v7, %v5792_v12 }
 0x106   :  { %1878 = vmatpush.msrb.mxu0 %v7693_v21  ;;  %1960 = vmatpush.msrb.mxu2 %v5684_v50  ;;  %v2066_v21 = vand.u32 4294901760, %v5790_v63 }
 0x107   :  { %1919 = vmatpush.msrb.mxu1 %v5456_v52  ;;  %2027 = vmatpush.msrb.mxu3 %v2026_v30  ;;  %v2044_v52 = vand.u32 4294901760, %v2043_v4  ;;  %v2055_v30 = vsub.f32 %v5761_v44, %v2054_v47  ;;  %v7697_v4 = vand.u32 4294901760, %v5581_v46  ;;  %v2078_v27 = vand.u32 4294901760, %v5815_v9 }
 0x108   :  { %1882 = vmatpush.msrb.mxu0 %v7694_v24  ;;  %1962 = vmatpush.msrb.mxu2 %v5700_v10  ;;  %v7699_v46 = vand.u32 4294901760, %v5619_v55 }
 0x109   :  { %1921 = vmatpush.msrb.mxu1 %v5473_v13  ;;  %2033 = vmatpush.msrb.mxu3 %v2032_v3  ;;  %v960_v32 = vpop.f32.mrf.mxu0  ;;  %v2050_v13 = vand.u32 4294901760, %v2049_v15  ;;  %v2061_v3 = vsub.f32 %v5774_v22, %v2060_v61  ;;  %v2056_v7 = vand.u32 4294901760, %v2055_v30  ;;  %v7698_v15 = vand.u32 4294901760, %v5602_v11 }
 0x10a   :  { %1886 = vmatpush.msrb.mxu0 %v7695_v41  ;;  %1964 = vmatpush.msrb.mxu2 %v5713_v26  ;;  %v961_v29 = vadd.f32 %v960_v32, %v5688_v40  ;;  %v2072_v40 = vand.u32 4294901760, %v5803_v23  ;;  %v2079_v11 = vsub.f32 %v5815_v9, %v2078_v27  ;;  %v7701_v41 = vand.u32 4294901760, %v5614_v59 }
 0x10b   :  { %1923 = vmatpush.msrb.mxu1 %v5479_v39  ;;  %2039 = vmatpush.msrb.mxu3 %v2038_v25  ;;  %v2067_v39 = vsub.f32 %v5790_v63, %v2066_v21  ;;  %v2062_v25 = vand.u32 4294901760, %v2061_v3 }
 0x10c   :  { %1890 = vmatpush.msrb.mxu0 %v7696_v37  ;;  %1966 = vmatpush.msrb.mxu2 %v5725_v57  ;;  %v2080_v55 = vand.u32 4294901760, %v2079_v11  ;;  %v65_v37 = vld [vmem:[#allocation2 + $0x110] sm:$0xff] }
 0x10d   :  { %1925 = vmatpush.msrb.mxu1 %v5493_v45  ;;  %2045 = vmatpush.msrb.mxu3 %v2044_v52  ;;  %v2073_v45 = vsub.f32 %v5803_v23, %v2072_v40 }
 0x10e   :  { %1894 = vmatpush.msrb.mxu0 %v7697_v4  ;;  %1968 = vmatpush.msrb.mxu2 %v5737_v17  ;;  %v61_v4 = vld [vmem:[#allocation2 + $0xf0] sm:$0xff] }
 0x10f   :  { %1927 = vmatpush.msrb.mxu1 %v5500_v20  ;;  %2051 = vmatpush.msrb.mxu3 %v2050_v13  ;;  %v2068_v20 = vand.u32 4294901760, %v2067_v39  ;;  %v7713_v13 = vld [vmem:[#allocation14_spill] sm:$0xff] }
 0x110   :  { %1898 = vmatpush.msrb.mxu0 %v7698_v15  ;;  %1970 = vmatpush.msrb.mxu2 %v5750_v16  ;;  %v57_v15 = vld [vmem:[#allocation2 + $0xd0] sm:$0xff] }
 0x111   :  { %1929 = vmatpush.msrb.mxu1 %v5516_v6  ;;  %2057 = vmatpush.msrb.mxu3 %v2056_v7  ;;  %v2074_v6 = vand.u32 4294901760, %v2073_v45 }
 0x112   :  { %1902 = vmatpush.msrb.mxu0 %v7699_v46  ;;  %1972 = vmatpush.msrb.mxu2 %v5766_v42 }
 0x113   :  { %1931 = vmatpush.msrb.mxu1 %v5534_v35  ;;  %2063 = vmatpush.msrb.mxu3 %v2062_v25  ;;  %v1061_v24 = vpop.f32.mrf.mxu1  ;;  %v1115_v52 = vpop.f32.mrf.mxu2  ;;  %v7700_v35 = vld [vmem:[#allocation16_spill] sm:$0xff]  ;;  %v5989_v25 = vand.u32 4294901760, %v61_v4 }
 0x114   :  { %1904 = vmatmul.f32.vlgmr.msrb.gmra.mxu0 %v7685_v31  ;;  %1974 = vmatpush.msrb.mxu2 %v5779_v49  ;;  %v1062_v30 = vadd.f32 %v1061_v24, %v961_v29  ;;  %v7707_v29 = vand.u32 4294901760, %v5662_v19  ;;  %v53_v24 = vld [vmem:[#allocation2 + $0xb0] sm:$0xff] }
 0x115   :  { %2089 = vmatpush.msra.mxu0 %v5614_v59  ;;  %1933 = vmatpush.msrb.mxu1 %v5543_v54  ;;  %v7702_v54 = vand.u32 4294901760, %v5633_v2  ;;  %v7704_v59 = vand.u32 4294901760, %v5643_v8 }
 0x116   :  { %2069 = vmatpush.msrb.mxu3 %v2068_v20  ;;  %1976 = vmatpush.msrb.mxu2 %v5792_v12  ;;  %v1116_v32 = vadd.f32 %v1115_v52, %v1062_v30 }
 0x117   :  { %2092 = vmatpush.msra.mxu0 %v5633_v2  ;;  %1935 = vmatpush.msrb.mxu1 %v5556_v51  ;;  %v7703_v51 = vld [vmem:[#allocation17_spill] sm:$0xff]  ;;  %v7706_v2 = vand.u32 4294901760, %v5650_v28 }
 0x118   :  { %2075 = vmatpush.msrb.mxu3 %v2074_v6  ;;  %1982 = vmatmul.f32.vlgmr.msrb.gmra.mxu2 %v7700_v35  ;;  %v6007_v6 = vand.u32 4294901760, %v57_v15 }
 0x119   :  { %2095 = vmatpush.msra.mxu0 %v5643_v8  ;;  %2183 = vmatpush.msra.mxu2 %v7701_v41  ;;  %v7708_v8 = vand.u32 4294901760, %v5682_v14  ;;  %v7714_v41 = vld [vmem:[#allocation15_spill] sm:$0xff] }
 0x11a   :  { %1937 = vmatpush.msrb.mxu1 %v5577_v62  ;;  %2081 = vmatpush.msrb.mxu3 %v2080_v55  ;;  %v7705_v62 = vld [vmem:[#allocation18_spill] sm:$0xff] }
 0x11b   :  { %2083 = vmatmul.f32.vlgmr.msrb.gmra.mxu3 %v5032_v53  ;;  %2098 = vmatpush.msra.mxu0 %v5650_v28  ;;  %v89_v28 = vld [vmem:[#allocation2 + $0x1d0] sm:$0xff] }
 0x11c   :  { %2187 = vmatpush.msra.mxu2 %v7702_v54  ;;  %2250 = vmatpush.msra.mxu3 %v5590_v56 }
 0x11d   :  { %1939 = vmatpush.msrb.mxu1 %v7703_v51  ;;  %2101 = vmatpush.msra.mxu0 %v5662_v19  ;;  %v1154_v19 = vpop.f32.mrf.mxu3 }
 0x11e   :  { %1941 = vmatmul.f32.vlgmr.msrb.gmra.mxu1 %v7685_v31  ;;  %2191 = vmatpush.msra.mxu2 %v7704_v59  ;;  %v6022_v59 = vand.u32 4294901760, %v53_v24 }
 0x11f   :  { %2142 = vmatpush.msra.mxu1 %v5590_v56  ;;  %2252 = vmatpush.msra.mxu3 %v7705_v62  ;;  %v7709_v56 = vand.u32 4294901760, %v5698_v34 }
 0x120   :  { %2104 = vmatpush.msra.mxu0 %v5682_v14  ;;  %2195 = vmatpush.msra.mxu2 %v7706_v2  ;;  %v1155_v14 = vadd.f32 %v1154_v19, %v1116_v32  ;;  %v49_v32 = vld [vmem:[#allocation2 + $0x90] sm:$0xff] }
 0x121   :  { %2144 = vmatpush.msra.mxu1 %v7705_v62  ;;  %2254 = vmatpush.msra.mxu3 %v5621_v48  ;;  %v6027_v2 = vand.u32 4294901760, %v49_v32 }
 0x122   :  { %2107 = vmatpush.msra.mxu0 %v5698_v34  ;;  %2199 = vmatpush.msra.mxu2 %v7707_v29  ;;  %v7711_v34 = vand.u32 4294901760, %v5723_v38  ;;  %v45_v29 = vld [vmem:[#allocation2 + $0x70] sm:$0xff] }
 0x123   :  { %2146 = vmatpush.msra.mxu1 %v5621_v48  ;;  %2256 = vmatpush.msra.mxu3 %v5628_v0  ;;  %v7710_v48 = vand.u32 4294901760, %v5711_v36 }
 0x124   :  { %2110 = vmatpush.msra.mxu0 %v5711_v36  ;;  %2203 = vmatpush.msra.mxu2 %v7708_v8 }
 0x125   :  { %2148 = vmatpush.msra.mxu1 %v5628_v0  ;;  %2258 = vmatpush.msra.mxu3 %v5637_v18  ;;  %v93_v0 = vld [vmem:[#allocation2 + $0x1f0] sm:$0xff] }
 0x126   :  { %2113 = vmatpush.msra.mxu0 %v5723_v38  ;;  %2207 = vmatpush.msra.mxu2 %v7709_v56  ;;  %v5907_v36 = vand.u32 4294901760, %v93_v0  ;;  %v85_v38 = vld [vmem:[#allocation2 + $0x1b0] sm:$0xff] }
 0x127   :  { %2150 = vmatpush.msra.mxu1 %v5637_v18  ;;  %2260 = vmatpush.msra.mxu3 %v5655_v33 }
 0x128   :  { %2116 = vmatpush.msra.mxu0 %v5735_v43  ;;  %2211 = vmatpush.msra.mxu2 %v7710_v48  ;;  %v5921_v43 = vand.u32 4294901760, %v85_v38  ;;  %v6035_v48 = vsub.f32 %v57_v15, %v6007_v6 }
 0x129   :  { %2152 = vmatpush.msra.mxu1 %v5655_v33  ;;  %2262 = vmatpush.msra.mxu3 %v5671_v1 }
 0x12a   :  { %2119 = vmatpush.msra.mxu0 %v5748_v5  ;;  %2215 = vmatpush.msra.mxu2 %v7711_v34  ;;  %v5924_v5 = vsub.f32 %v93_v0, %v5907_v36 }
 0x12b   :  { %2154 = vmatpush.msra.mxu1 %v5671_v1  ;;  %2264 = vmatpush.msra.mxu3 %v5684_v50  ;;  %v1223_v18 = vpop.f32.mrf.mxu0  ;;  %v5912_v1 = vand.u32 4294901760, %v89_v28 }
 0x12c   :  { %2122 = vmatpush.msra.mxu0 %v5761_v44  ;;  %2219 = vmatpush.msra.mxu2 %v2042_v58  ;;  %v1224_v33 = vadd.f32 %v1223_v18, %v1155_v14  ;;  %v77_v58 = vld [vmem:[#allocation2 + $0x170] sm:$0xff] }
 0x12d   :  { %2156 = vmatpush.msra.mxu1 %v5684_v50  ;;  %2266 = vmatpush.msra.mxu3 %v5700_v10  ;;  %v81_v50 = vld [vmem:[#allocation2 + $0x190] sm:$0xff] }
 0x12e   :  { %2125 = vmatpush.msra.mxu0 %v5774_v22  ;;  %2223 = vmatpush.msra.mxu2 %v2048_v60  ;;  %v73_v60 = vld [vmem:[#allocation2 + $0x150] sm:$0xff]  ;;  %v5941_v22 = vand.u32 4294901760, %v77_v58 }
 0x12f   :  { %2158 = vmatpush.msra.mxu1 %v5700_v10  ;;  %2268 = vmatpush.msra.mxu3 %v5713_v26  ;;  %v5930_v10 = vsub.f32 %v89_v28, %v5912_v1  ;;  %v41_v14 = vld [vmem:[#allocation2 + $0x50] sm:$0xff]  ;;  %v6044_v28 = vand.u32 4294901760, %v45_v29 }
 0x130   :  { %2128 = vmatpush.msra.mxu0 %v5790_v63  ;;  %2227 = vmatpush.msra.mxu2 %v2054_v47  ;;  %v7532_v47 = vand.u32 4294901760, %v5924_v5  ;;  %v5972_v7 = vsub.f32 %v77_v58, %v5941_v22  ;;  %v37_v58 = vld [vmem:[#allocation2 + $0x30] sm:$0xff] }
 0x131   :  { %2160 = vmatpush.msra.mxu1 %v5713_v26  ;;  %2270 = vmatpush.msra.mxu3 %v5725_v57  ;;  %v5934_v26 = vand.u32 4294901760, %v81_v50  ;;  %v7531_v63 = vand.u32 4294901760, %v5930_v10  ;;  %v6067_v15 = vand.u32 4294901760, %v37_v58 }
 0x132   :  { %2131 = vmatpush.msra.mxu0 %v5803_v23  ;;  %2231 = vmatpush.msra.mxu2 %v2060_v61  ;;  %v2330_v23 = vsub.f32 %v5924_v5, %v7532_v47  ;;  %v7527_v20 = vand.u32 4294901760, %v5972_v7 }
 0x133   :  { %2162 = vmatpush.msra.mxu1 %v5725_v57  ;;  %2272 = vmatpush.msra.mxu3 %v5737_v17  ;;  %v5945_v57 = vsub.f32 %v85_v38, %v5921_v43  ;;  %v5958_v3 = vsub.f32 %v81_v50, %v5934_v26  ;;  %v6051_v38 = vand.u32 4294901760, %v41_v14  ;;  %v6054_v50 = vsub.f32 %v49_v32, %v6027_v2 }
 0x134   :  { %2134 = vmatpush.msra.mxu0 %v5815_v9  ;;  %2235 = vmatpush.msra.mxu2 %v2066_v21  ;;  %v1260_v44 = vpop.f32.mrf.mxu1  ;;  %v69_v21 = vld [vmem:[#allocation2 + $0x130] sm:$0xff]  ;;  %v5981_v9 = vand.u32 4294901760, %v65_v37  ;;  %v2331_v45 = vand.u32 4294901760, %v2330_v23  ;;  %v2354_v51 = vsub.f32 %v5972_v7, %v7527_v20  ;;  %7715 = vst [vmem:[#allocation18_spill] sm:$0xff] %v6067_v15 }
 0x135   :  { %2164 = vmatpush.msra.mxu1 %v5737_v17  ;;  %2274 = vmatpush.msra.mxu3 %v5750_v16  ;;  %v5947_v61 = vadd.f32 %v1260_v44, %v1224_v33  ;;  %v5955_v17 = vand.u32 4294901760, %v73_v60  ;;  %v7528_v39 = vand.u32 4294901760, %v5958_v3  ;;  %v6047_v33 = vsub.f32 %v53_v24, %v6022_v59  ;;  %v33_v23 = vld [vmem:[#allocation2 + $0x10] sm:$0xff] }
 0x136   :  { %2137 = vmatmul.f32.vlgmr.msra.gmra.mxu0 %v7713_v13  ;;  %2239 = vmatpush.msra.mxu2 %v2072_v40  ;;  %v7529_v40 = vand.u32 4294901760, %v5945_v57  ;;  %v6011_v55 = vsub.f32 %v65_v37, %v5981_v9  ;;  %v2355_v0 = vand.u32 4294901760, %v2354_v51  ;;  %v6077_v24 = vsub.f32 %v41_v14, %v6051_v38  ;;  %v125_v13 = vld [vmem:[#allocation2 + $0x2f0] sm:$0xff] }
 0x137   :  { %7712 = vst [vmem:[#allocation17_spill] sm:$0xff] %v5947_v61  ;;  %2287 = vmatpush.msrb.mxu0 %v5907_v36  ;;  %2166 = vmatpush.msra.mxu1 %v5750_v16  ;;  %v5968_v16 = vand.u32 4294901760, %v69_v21  ;;  %v2348_v52 = vsub.f32 %v5958_v3, %v7528_v39  ;;  %v6083_v51 = vand.u32 4294901760, %v33_v23 }
 0x138   :  { %2276 = vmatpush.msra.mxu3 %v5766_v42  ;;  %2243 = vmatpush.msra.mxu2 %v2078_v27  ;;  %v5985_v27 = vsub.f32 %v73_v60, %v5955_v17  ;;  %v2342_v46 = vsub.f32 %v5945_v57, %v7529_v40  ;;  %v7522_v19 = vand.u32 4294901760, %v6011_v55  ;;  %v133_v40 = vld [vmem:[#allocation2 + $0x330] sm:$0xff] }
 0x139   :  { %2289 = vmatpush.msrb.mxu0 %v5912_v1  ;;  %2168 = vmatpush.msra.mxu1 %v5766_v42  ;;  %v2336_v42 = vsub.f32 %v5930_v10, %v7531_v63  ;;  %v5998_v11 = vsub.f32 %v69_v21, %v5968_v16  ;;  %v2349_v8 = vand.u32 4294901760, %v2348_v52  ;;  %v7520_v21 = vand.u32 4294901760, %v6035_v48  ;;  %v153_v52 = vld [vmem:[#allocation2 + $0x3d0] sm:$0xff]  ;;  %7716 = vst [vmem:[#allocation19_spill] sm:$0xff] %v6083_v51 }
 0x13a   :  { %2278 = vmatpush.msra.mxu3 %v5779_v49  ;;  %2245 = vmatmul.f32.vlgmr.msra.gmra.mxu2 %v5032_v53  ;;  %v7525_v30 = vand.u32 4294901760, %v5985_v27  ;;  %v2343_v54 = vand.u32 4294901760, %v2342_v46  ;;  %v2372_v60 = vsub.f32 %v6011_v55, %v7522_v19  ;;  %v6071_v46 = vsub.f32 %v45_v29, %v6044_v28  ;;  %v141_v19 = vld [vmem:[#allocation2 + $0x370] sm:$0xff] }
 0x13b   :  { %2291 = vmatpush.msrb.mxu0 %v5921_v43  ;;  %2430 = vmatpush.msrb.mxu2 %v5924_v5  ;;  %v7524_v62 = vand.u32 4294901760, %v5998_v11 }
 0x13c   :  { %2170 = vmatpush.msra.mxu1 %v5779_v49  ;;  %2280 = vmatpush.msra.mxu3 %v5792_v12  ;;  %v2337_v49 = vand.u32 4294901760, %v2336_v42  ;;  %v2360_v56 = vsub.f32 %v5985_v27, %v7525_v30  ;;  %v2373_v32 = vand.u32 4294901760, %v2372_v60  ;;  %v145_v60 = vld [vmem:[#allocation2 + $0x390] sm:$0xff] }
 0x13d   :  { %2282 = vmatmul.f32.vlgmr.msra.gmra.mxu3 %v5032_v53  ;;  %2293 = vmatpush.msrb.mxu0 %v5934_v26  ;;  %v2366_v18 = vsub.f32 %v5998_v11, %v7524_v62  ;;  %v137_v62 = vld [vmem:[#allocation2 + $0x350] sm:$0xff] }
 0x13e   :  { %2433 = vmatpush.msrb.mxu2 %v5930_v10  ;;  %2483 = vmatpush.msrb.mxu3 %v5907_v36  ;;  %v2361_v44 = vand.u32 4294901760, %v2360_v56  ;;  %v149_v56 = vld [vmem:[#allocation2 + $0x3b0] sm:$0xff] }
 0x13f   :  { %2172 = vmatpush.msra.mxu1 %v5792_v12  ;;  %2295 = vmatpush.msrb.mxu0 %v5941_v22  ;;  %v6016_v12 = vsub.f32 %v61_v4, %v5989_v25  ;;  %v157_v4 = vld [vmem:[#allocation2 + $0x3f0] sm:$0xff]  ;;  %v2367_v42 = vand.u32 4294901760, %v2366_v18  ;;  %v6095_v18 = vsub.f32 %v37_v58, %v6067_v15  ;;  %v6107_v58 = vsub.f32 %v33_v23, %v6083_v51 }
 0x140   :  { %2176 = vmatmul.f32.vlgmr.msra.gmra.mxu1 %v7714_v41  ;;  %2436 = vmatpush.msrb.mxu2 %v5945_v57  ;;  %v6085_v29 = vand.u32 4294901760, %v157_v4 }
 0x141   :  { %2332 = vmatpush.msrb.mxu1 %v2331_v45  ;;  %2485 = vmatpush.msrb.mxu3 %v5912_v1  ;;  %v7521_v34 = vand.u32 4294901760, %v6016_v12  ;;  %v7519_v45 = vand.u32 4294901760, %v6047_v33 }
 0x142   :  { %2297 = vmatpush.msrb.mxu0 %v5955_v17  ;;  %2439 = vmatpush.msrb.mxu2 %v5958_v3 }
 0x143   :  { %2338 = vmatpush.msrb.mxu1 %v2337_v49  ;;  %2487 = vmatpush.msrb.mxu3 %v5921_v43  ;;  %v2378_v37 = vsub.f32 %v6016_v12, %v7521_v34  ;;  %v7523_v49 = vand.u32 4294901760, %v6054_v50  ;;  %v2390_v14 = vsub.f32 %v6047_v33, %v7519_v45  ;;  %v6112_v34 = vand.u32 4294901760, %v149_v56 }
 0x144   :  { %2299 = vmatpush.msrb.mxu0 %v5968_v16  ;;  %2442 = vmatpush.msrb.mxu2 %v5972_v7 }
 0x145   :  { %2344 = vmatpush.msrb.mxu1 %v2343_v54  ;;  %2489 = vmatpush.msrb.mxu3 %v5934_v26  ;;  %v2384_v54 = vsub.f32 %v6035_v48, %v7520_v21  ;;  %v6110_v21 = vsub.f32 %v157_v4, %v6085_v29  ;;  %v7533_v4 = vand.u32 4294901760, %v6095_v18  ;;  %v6137_v20 = vsub.f32 %v149_v56, %v6112_v34 }
 0x146   :  { %2301 = vmatpush.msrb.mxu0 %v5981_v9  ;;  %2445 = vmatpush.msrb.mxu2 %v5985_v27 }
 0x147   :  { %2350 = vmatpush.msrb.mxu1 %v2349_v8  ;;  %2491 = vmatpush.msrb.mxu3 %v5941_v22  ;;  %v2379_v8 = vand.u32 4294901760, %v2378_v37  ;;  %v2396_v37 = vsub.f32 %v6054_v50, %v7523_v49  ;;  %v2385_v45 = vand.u32 4294901760, %v2384_v54  ;;  %v6116_v49 = vand.u32 4294901760, %v145_v60 }
 0x148   :  { %2303 = vmatpush.msrb.mxu0 %v5989_v25  ;;  %2448 = vmatpush.msrb.mxu2 %v5998_v11  ;;  %v2414_v63 = vsub.f32 %v6095_v18, %v7533_v4  ;;  %v7723_v35 = vand.u32 4294901760, %v6137_v20 }
 0x149   :  { %2356 = vmatpush.msrb.mxu1 %v2355_v0  ;;  %2493 = vmatpush.msrb.mxu3 %v5955_v17  ;;  %v7526_v0 = vand.u32 4294901760, %v6071_v46  ;;  %v2397_v30 = vand.u32 4294901760, %v2396_v37  ;;  %v4359_v37 = vld [vmem:[%s7439_s2] sm:$0xf] }
 0x14a   :  { %2305 = vmatpush.msrb.mxu0 %v6007_v6  ;;  %2451 = vmatpush.msrb.mxu2 %v6011_v55  ;;  %v233_v39 = vperm.slane %v4359_v37, 1  ;;  %v7719_v37 = vand.u32 4294901760, %v6107_v58  ;;  %v2683_v31 = vsub.f32 %v6137_v20, %v7723_v35 }
 0x14b   :  { %2362 = vmatpush.msrb.mxu1 %v2361_v44  ;;  %2495 = vmatpush.msrb.mxu3 %v5968_v16  ;;  %v6097_v44 = vand.u32 4294901760, %v153_v52  ;;  %v2402_v23 = vsub.f32 %v6071_v46, %v7526_v0  ;;  %v6159_v0 = vand.u32 4294901760, %v133_v40 }
 0x14c   :  { %2307 = vmatpush.msrb.mxu0 %v6022_v59  ;;  %2454 = vmatpush.msrb.mxu2 %v6016_v12  ;;  %v2420_v53 = vsub.f32 %v6107_v58, %v7719_v37 }
 0x14d   :  { %2368 = vmatpush.msrb.mxu1 %v2367_v42  ;;  %2497 = vmatpush.msrb.mxu3 %v5981_v9  ;;  %7717 = vst [vmem:[#allocation20_spill] sm:$0xff] %v6097_v44  ;;  %v7530_v42 = vand.u32 4294901760, %v6077_v24  ;;  %v6124_v54 = vsub.f32 %v153_v52, %v6097_v44  ;;  %v2403_v56 = vand.u32 4294901760, %v2402_v23  ;;  %v7718_v23 = vand.u32 4294901760, %v6110_v21 }
 0x14e   :  { %2309 = vmatpush.msrb.mxu0 %v6027_v2  ;;  %2457 = vmatpush.msrb.mxu2 %v6035_v48 }
 0x14f   :  { %2374 = vmatpush.msrb.mxu1 %v2373_v32  ;;  %2499 = vmatpush.msrb.mxu3 %v5989_v25  ;;  %v2391_v32 = vand.u32 4294901760, %v2390_v14  ;;  %v6131_v14 = vand.u32 4294901760, %v141_v19  ;;  %v2671_v4 = vsub.f32 %v6110_v21, %v7718_v23  ;;  %v2415_v23 = vand.u32 4294901760, %v2414_v63 }
 0x150   :  { %2311 = vmatpush.msrb.mxu0 %v6044_v28  ;;  %2460 = vmatpush.msrb.mxu2 %v6047_v33  ;;  %v7721_v37 = vand.u32 4294901760, %v6124_v54 }
 0x151   :  { %2380 = vmatpush.msrb.mxu1 %v2379_v8  ;;  %2501 = vmatpush.msrb.mxu3 %v6007_v6  ;;  %v2408_v8 = vsub.f32 %v6077_v24, %v7530_v42  ;;  %v6147_v42 = vand.u32 4294901760, %v137_v62  ;;  %v2672_v63 = vand.u32 4294901760, %v2671_v4 }
 0x152   :  { %2313 = vmatpush.msrb.mxu0 %v6051_v38  ;;  %2463 = vmatpush.msrb.mxu2 %v6054_v50 }
 0x153   :  { %2386 = vmatpush.msrb.mxu1 %v2385_v45  ;;  %2503 = vmatpush.msrb.mxu3 %v6022_v59  ;;  %v6145_v45 = vsub.f32 %v145_v60, %v6116_v49  ;;  %v2409_v47 = vand.u32 4294901760, %v2408_v8  ;;  %v6157_v60 = vsub.f32 %v141_v19, %v6131_v14  ;;  %v7720_v19 = vand.u32 4294901760, %v5924_v5 }
 0x154   :  { %2315 = vmatpush.msrb.mxu0 %v6067_v15  ;;  %2466 = vmatpush.msrb.mxu2 %v6071_v46  ;;  %v6174_v41 = vsub.f32 %v137_v62, %v6147_v42  ;;  %v2677_v8 = vsub.f32 %v6124_v54, %v7721_v37  ;;  %v7722_v5 = vand.u32 4294901760, %v5930_v10  ;;  %v2421_v37 = vand.u32 4294901760, %v2420_v53  ;;  %v117_v53 = vld [vmem:[#allocation2 + $0x2b0] sm:$0xff] }
 0x155   :  { %2392 = vmatpush.msrb.mxu1 %v2391_v32  ;;  %2505 = vmatpush.msrb.mxu3 %v6027_v2  ;;  %v129_v32 = vld [vmem:[#allocation2 + $0x310] sm:$0xff] }
 0x156   :  { %2317 = vmatpush.msrb.mxu0 %v6083_v51  ;;  %2469 = vmatpush.msrb.mxu2 %v6077_v24  ;;  %v1301_v52 = vpop.f32.mrf.mxu2  ;;  %v2678_v35 = vand.u32 4294901760, %v2677_v8  ;;  %v2684_v8 = vand.u32 4294901760, %v2683_v31 }
 0x157   :  { %2398 = vmatpush.msrb.mxu1 %v2397_v30  ;;  %2507 = vmatpush.msrb.mxu3 %v6044_v28  ;;  %v1302_v61 = vadd.f32 %v1301_v52, %v233_v39  ;;  %v6180_v52 = vand.u32 4294901760, %v129_v32  ;;  %v121_v30 = vld [vmem:[#allocation2 + $0x2d0] sm:$0xff] }
 0x158   :  { %2524 = vmatpush.msra.mxu0 %v7720_v19  ;;  %2472 = vmatpush.msrb.mxu2 %v6095_v18 }
 0x159   :  { %2404 = vmatpush.msrb.mxu1 %v2403_v56  ;;  %2509 = vmatpush.msrb.mxu3 %v6051_v38  ;;  %v1402_v39 = vpop.f32.mrf.mxu3  ;;  %v6187_v56 = vsub.f32 %v133_v40, %v6159_v0  ;;  %v7725_v40 = vand.u32 4294901760, %v6145_v45  ;;  %v6204_v62 = vsub.f32 %v129_v32, %v6180_v52 }
 0x15a   :  { %2528 = vmatpush.msra.mxu0 %v7722_v5  ;;  %2475 = vmatpush.msrb.mxu2 %v6107_v58  ;;  %v1403_v19 = vadd.f32 %v1402_v39, %v1302_v61  ;;  %v6193_v5 = vand.u32 4294901760, %v125_v13  ;;  %v7724_v61 = vand.u32 4294901760, %v5945_v57  ;;  %v7726_v57 = vand.u32 4294901760, %v5958_v3 }
 0x15b   :  { %2410 = vmatpush.msrb.mxu1 %v2409_v47  ;;  %2511 = vmatpush.msrb.mxu3 %v6067_v15  ;;  %v1456_v10 = vpop.f32.mrf.mxu0  ;;  %v2689_v47 = vsub.f32 %v6145_v45, %v7725_v40  ;;  %v6206_v15 = vand.u32 4294901760, %v121_v30  ;;  %v113_v40 = vld [vmem:[#allocation2 + $0x290] sm:$0xff]  ;;  %v6218_v3 = vand.u32 4294901760, %v117_v53 }
 0x15c   :  { %2532 = vmatpush.msra.mxu0 %v7724_v61  ;;  %2628 = vmatpush.msra.mxu2 %v6085_v29  ;;  %v1457_v39 = vadd.f32 %v1456_v10, %v1403_v19  ;;  %v7727_v61 = vand.u32 4294901760, %v6157_v60 }
 0x15d   :  { %2416 = vmatpush.msrb.mxu1 %v2415_v23  ;;  %2513 = vmatpush.msrb.mxu3 %v6083_v51  ;;  %v6216_v51 = vsub.f32 %v125_v13, %v6193_v5  ;;  %v2712_v13 = vand.u32 4294901760, %v6204_v62 }
 0x15e   :  { %2536 = vmatpush.msra.mxu0 %v7726_v57  ;;  %2630 = vmatpush.msra.mxu2 %v6097_v44  ;;  %v2695_v19 = vsub.f32 %v6157_v60, %v7727_v61  ;;  %v1495_v10 = vpop.f32.mrf.mxu1  ;;  %v7728_v57 = vand.u32 4294901760, %v5972_v7  ;;  %v2690_v61 = vand.u32 4294901760, %v2689_v47  ;;  %v7729_v44 = vand.u32 4294901760, %v6174_v41 }
 0x15f   :  { %2673 = vmatpush.msra.mxu3 %v2672_v63  ;;  %2422 = vmatpush.msrb.mxu1 %v2421_v37  ;;  %v1496_v32 = vadd.f32 %v1495_v10, %v1457_v39  ;;  %v1564_v4 = vpop.f32.mrf.mxu2  ;;  %v109_v63 = vld [vmem:[#allocation2 + $0x270] sm:$0xff]  ;;  %v6229_v37 = vsub.f32 %v121_v30, %v6206_v15  ;;  %v6231_v39 = vand.u32 4294901760, %v113_v40  ;;  %v7730_v7 = vand.u32 4294901760, %v5985_v27 }
 0x160   :  { %2540 = vmatpush.msra.mxu0 %v7728_v57  ;;  %v2701_v23 = vsub.f32 %v6174_v41, %v7729_v44  ;;  %2632 = vmatpush.msra.mxu2 %v6112_v34  ;;  %v7731_v44 = vand.u32 4294901760, %v6187_v56  ;;  %v2718_v30 = vand.u32 4294901760, %v6216_v51  ;;  %v105_v27 = vld [vmem:[#allocation2 + $0x250] sm:$0xff] }
 0x161   :  { %2591 = vmatpush.msra.mxu1 %v5907_v36  ;;  %2679 = vmatpush.msra.mxu3 %v2678_v35  ;;  %v1565_v31 = vadd.f32 %v1564_v4, %v1496_v32  ;;  %v2696_v36 = vand.u32 4294901760, %v2695_v19  ;;  %v6242_v35 = vsub.f32 %v117_v53, %v6218_v3  ;;  %v6244_v32 = vand.u32 4294901760, %v109_v63 }
 0x162   :  { %2544 = vmatpush.msra.mxu0 %v7730_v7  ;;  %v2707_v47 = vsub.f32 %v6187_v56, %v7731_v44  ;;  %v1601_v10 = vpop.f32.mrf.mxu3  ;;  %2634 = vmatpush.msra.mxu2 %v6116_v49  ;;  %v2702_v19 = vand.u32 4294901760, %v2701_v23  ;;  %v2724_v57 = vand.u32 4294901760, %v6229_v37  ;;  %v6255_v53 = vsub.f32 %v113_v40, %v6231_v39  ;;  %v97_v44 = vld [vmem:[#allocation2 + $0x210] sm:$0xff] }
 0x163   :  { %2593 = vmatpush.msra.mxu1 %v5912_v1  ;;  %2685 = vmatpush.msra.mxu3 %v2684_v8  ;;  %v1602_v4 = vadd.f32 %v1601_v10, %v1565_v31  ;;  %v7732_v1 = vand.u32 4294901760, %v5998_v11  ;;  %v2713_v8 = vsub.f32 %v6204_v62, %v2712_v13  ;;  %v101_v31 = vld [vmem:[#allocation2 + $0x230] sm:$0xff]  ;;  %v7733_v7 = vand.u32 4294901760, %v6011_v55 }
 0x164   :  { %2636 = vmatpush.msra.mxu2 %v6131_v14  ;;  %v2708_v11 = vand.u32 4294901760, %v2707_v47  ;;  %v2719_v23 = vsub.f32 %v6216_v51, %v2718_v30  ;;  %v6268_v40 = vsub.f32 %v109_v63, %v6244_v32  ;;  %v7734_v55 = vand.u32 4294901760, %v6016_v12 }
 0x165   :  { %2548 = vmatpush.msra.mxu0 %v7732_v1  ;;  %2595 = vmatpush.msra.mxu1 %v5921_v43  ;;  %v6260_v43 = vand.u32 4294901760, %v105_v27  ;;  %v2725_v47 = vsub.f32 %v6229_v37, %v2724_v57  ;;  %v2736_v10 = vand.u32 4294901760, %v6255_v53  ;;  %v7735_v63 = vand.u32 4294901760, %v6035_v48 }
 0x166   :  { %2691 = vmatpush.msra.mxu3 %v2690_v61  ;;  %2638 = vmatpush.msra.mxu2 %v6147_v42  ;;  %v2730_v61 = vand.u32 4294901760, %v6242_v35  ;;  %v2720_v1 = vand.u32 4294901760, %v2719_v23  ;;  %v7736_v48 = vand.u32 4294901760, %v6047_v33 }
 0x167   :  { %2552 = vmatpush.msra.mxu0 %v7733_v7  ;;  %2597 = vmatpush.msra.mxu1 %v5934_v26  ;;  %v6273_v26 = vand.u32 4294901760, %v101_v31  ;;  %v6284_v12 = vsub.f32 %v105_v27, %v6260_v43  ;;  %v2726_v27 = vand.u32 4294901760, %v2725_v47  ;;  %v2737_v7 = vsub.f32 %v6255_v53, %v2736_v10 }
 0x168   :  { %2697 = vmatpush.msra.mxu3 %v2696_v36  ;;  %2640 = vmatpush.msra.mxu2 %v6159_v0  ;;  %v2714_v36 = vand.u32 4294901760, %v2713_v8  ;;  %v2742_v8 = vand.u32 4294901760, %v6268_v40  ;;  %v7739_v47 = vand.u32 4294901760, %v6077_v24 }
 0x169   :  { %2556 = vmatpush.msra.mxu0 %v7734_v55  ;;  %2599 = vmatpush.msra.mxu1 %v5941_v22  ;;  %v6286_v22 = vand.u32 4294901760, %v97_v44  ;;  %v2748_v33 = vand.u32 4294901760, %v6284_v12 }
 0x16a   :  { %2703 = vmatpush.msra.mxu3 %v2702_v19  ;;  %2642 = vmatpush.msra.mxu2 %v6180_v52  ;;  %v2731_v19 = vsub.f32 %v6242_v35, %v2730_v61  ;;  %v2743_v23 = vsub.f32 %v6268_v40, %v2742_v8 }
 0x16b   :  { %2560 = vmatpush.msra.mxu0 %v7735_v63  ;;  %2601 = vmatpush.msra.mxu1 %v5955_v17  ;;  %v6297_v17 = vsub.f32 %v101_v31, %v6273_v26  ;;  %v2749_v63 = vsub.f32 %v6284_v12, %v2748_v33 }
 0x16c   :  { %2709 = vmatpush.msra.mxu3 %v2708_v11  ;;  %2644 = vmatpush.msra.mxu2 %v6193_v5  ;;  %v7737_v11 = vand.u32 4294901760, %v6054_v50  ;;  %v2732_v31 = vand.u32 4294901760, %v2731_v19 }
 0x16d   :  { %2564 = vmatpush.msra.mxu0 %v7736_v48  ;;  %2603 = vmatpush.msra.mxu1 %v5968_v16  ;;  %v6308_v16 = vsub.f32 %v97_v44, %v6286_v22  ;;  %v2754_v50 = vand.u32 4294901760, %v6297_v17  ;;  %v2738_v44 = vand.u32 4294901760, %v2737_v7  ;;  %v7743_v7 = vld [vmem:[#allocation8_spill] sm:$0xff] }
 0x16e   :  { %2715 = vmatpush.msra.mxu3 %v2714_v36  ;;  %2646 = vmatpush.msra.mxu2 %v6206_v15  ;;  %v7738_v36 = vand.u32 4294901760, %v6071_v46 }
 0x16f   :  { %2568 = vmatpush.msra.mxu0 %v7737_v11  ;;  %2605 = vmatpush.msra.mxu1 %v5981_v9  ;;  %v1642_v55 = vpop.f32.mrf.mxu0  ;;  %v2760_v46 = vand.u32 4294901760, %v6308_v16  ;;  %v2755_v24 = vsub.f32 %v6297_v17, %v2754_v50 }
 0x170   :  { %2721 = vmatpush.msra.mxu3 %v2720_v1  ;;  %v1643_v9 = vadd.f32 %v1642_v55, %v1602_v4  ;;  %2648 = vmatpush.msra.mxu2 %v6218_v3  ;;  %v7740_v4 = vand.u32 4294901760, %v6095_v18  ;;  %v2750_v1 = vand.u32 4294901760, %v2749_v63  ;;  %v7746_v55 = vld [vmem:[#allocation9_spill] sm:$0xff] }
 0x171   :  { %2572 = vmatpush.msra.mxu0 %v7738_v36  ;;  %2607 = vmatpush.msra.mxu1 %v5989_v25  ;;  %v2744_v25 = vand.u32 4294901760, %v2743_v23  ;;  %v2761_v18 = vsub.f32 %v6308_v16, %v2760_v46  ;;  %v2756_v19 = vand.u32 4294901760, %v2755_v24  ;;  %v7745_v23 = vld [vmem:[#allocation18_spill] sm:$0xff]  ;;  %v7747_v36 = vand.u32 4294901760, %v6124_v54  ;;  %v7753_v63 = vld [vmem:[#allocation5_spill] sm:$0xff] }
 0x172   :  { %2727 = vmatpush.msra.mxu3 %v2726_v27  ;;  %2650 = vmatpush.msra.mxu2 %v6231_v39 }
 0x173   :  { %2576 = vmatpush.msra.mxu0 %v7739_v47  ;;  %2609 = vmatpush.msra.mxu1 %v6007_v6  ;;  %v7741_v6 = vand.u32 4294901760, %v6107_v58  ;;  %v7751_v47 = vld [vmem:[#allocation20_spill] sm:$0xff] }
 0x174   :  { %2733 = vmatpush.msra.mxu3 %v2732_v31  ;;  %2652 = vmatpush.msra.mxu2 %v6244_v32  ;;  %v7744_v31 = vand.u32 4294901760, %v6110_v21 }
 0x175   :  { %2580 = vmatpush.msra.mxu0 %v7740_v4  ;;  %2611 = vmatpush.msra.mxu1 %v6022_v59  ;;  %v7742_v59 = vld [vmem:[#allocation11_spill] sm:$0xff] }
 0x176   :  { %2739 = vmatpush.msra.mxu3 %v2738_v44  ;;  %2654 = vmatpush.msra.mxu2 %v6260_v43  ;;  %v7749_v44 = vld [vmem:[#allocation7_spill] sm:$0xff] }
 0x177   :  { %2584 = vmatpush.msra.mxu0 %v7741_v6  ;;  %2613 = vmatpush.msra.mxu1 %v6027_v2  ;;  %v2762_v2 = vand.u32 4294901760, %v2761_v18  ;;  %v193_v4 = vld [vmem:[#allocation2 + $0x510] sm:$0xff] }
 0x178   :  { %2745 = vmatpush.msra.mxu3 %v2744_v25  ;;  %2323 = vmatmul.f32.vlgmr.msrb.gmra.mxu0 %v7742_v59  ;;  %v189_v6 = vld [vmem:[#allocation2 + $0x4f0] sm:$0xff]  ;;  %v7772_v59 = vld [vmem:[#allocation17_spill] sm:$0xff] }
 0x179   :  { %2615 = vmatpush.msra.mxu1 %v6044_v28  ;;  %2771 = vmatpush.msrb.mxu0 %v6110_v21  ;;  %v1743_v58 = vpop.f32.mrf.mxu1  ;;  %v1797_v48 = vpop.f32.mrf.mxu2  ;;  %v7750_v21 = vand.u32 4294901760, %v6137_v20 }
 0x17a   :  { %2656 = vmatpush.msra.mxu2 %v6273_v26  ;;  %2751 = vmatpush.msra.mxu3 %v2750_v1  ;;  %v1744_v27 = vadd.f32 %v1743_v58, %v1643_v9  ;;  %v7748_v9 = vld [vmem:[#allocation19_spill] sm:$0xff] }
 0x17b   :  { %2617 = vmatpush.msra.mxu1 %v6051_v38  ;;  %2774 = vmatpush.msrb.mxu0 %v6124_v54  ;;  %v7752_v54 = vand.u32 4294901760, %v6145_v45 }
 0x17c   :  { %2658 = vmatpush.msra.mxu2 %v6286_v22  ;;  %2757 = vmatpush.msra.mxu3 %v2756_v19  ;;  %v1798_v28 = vadd.f32 %v1797_v48, %v1744_v27  ;;  %v1836_v11 = vpop.f32.mrf.mxu3  ;;  %v185_v19 = vld [vmem:[#allocation2 + $0x4d0] sm:$0xff]  ;;  %v6492_v27 = vand.u32 4294901760, %v189_v6 }
 0x17d   :  { %2478 = vmatmul.f32.vlgmr.msrb.gmra.mxu2 %v7743_v7  ;;  %2777 = vmatpush.msrb.mxu0 %v6137_v20  ;;  %v7754_v20 = vand.u32 4294901760, %v6157_v60 }
 0x17e   :  { %2865 = vmatpush.msrb.mxu2 %v7744_v31  ;;  %2619 = vmatpush.msra.mxu1 %v7745_v23  ;;  %v1837_v38 = vadd.f32 %v1836_v11, %v1798_v28  ;;  %v181_v11 = vld [vmem:[#allocation2 + $0x4b0] sm:$0xff] }
 0x17f   :  { %2763 = vmatpush.msra.mxu3 %v2762_v2  ;;  %2780 = vmatpush.msrb.mxu0 %v6145_v45  ;;  %v7756_v45 = vand.u32 4294901760, %v6174_v41 }
 0x180   :  { %2517 = vmatmul.f32.vlgmr.msrb.gmra.mxu3 %v7746_v55  ;;  %2869 = vmatpush.msrb.mxu2 %v7747_v36 }
 0x181   :  { %2932 = vmatpush.msrb.mxu3 %v6085_v29  ;;  %2621 = vmatpush.msra.mxu1 %v7748_v9  ;;  %v7759_v9 = vld [vmem:[#allocation13_spill] sm:$0xff] }
 0x182   :  { %2783 = vmatpush.msrb.mxu0 %v6157_v60  ;;  %2424 = vmatmul.f32.vlgmr.msrb.gmra.mxu1 %v7749_v44 }
 0x183   :  { %2873 = vmatpush.msrb.mxu2 %v7750_v21  ;;  %2824 = vmatpush.msrb.mxu1 %v6085_v29  ;;  %v7755_v29 = vld [vmem:[#allocation10_spill] sm:$0xff]  ;;  %v177_v21 = vld [vmem:[#allocation2 + $0x490] sm:$0xff] }
 0x184   :  { %2934 = vmatpush.msrb.mxu3 %v7751_v47  ;;  %2786 = vmatpush.msrb.mxu0 %v6174_v41  ;;  %v221_v41 = vld [vmem:[#allocation2 + $0x5f0] sm:$0xff] }
 0x185   :  { %2877 = vmatpush.msrb.mxu2 %v7752_v54  ;;  %2826 = vmatpush.msrb.mxu1 %v7751_v47  ;;  %v6404_v60 = vand.u32 4294901760, %v221_v41  ;;  %v6516_v54 = vand.u32 4294901760, %v181_v11 }
 0x186   :  { %2936 = vmatpush.msrb.mxu3 %v6112_v34  ;;  %2664 = vmatmul.f32.vlgmr.msra.gmra.mxu2 %v7753_v63  ;;  %v66_v63 = vld [vmem:[#allocation2 + $0x118] sm:$0xff] }
 0x187   :  { %2789 = vmatpush.msrb.mxu0 %v6187_v56  ;;  %2828 = vmatpush.msrb.mxu1 %v6112_v34  ;;  %v7757_v34 = vand.u32 4294901760, %v6187_v56  ;;  %v6421_v56 = vsub.f32 %v221_v41, %v6404_v60  ;;  %v173_v41 = vld [vmem:[#allocation2 + $0x470] sm:$0xff] }
 0x188   :  { %2881 = vmatpush.msrb.mxu2 %v7754_v20  ;;  %2938 = vmatpush.msrb.mxu3 %v6116_v49 }
 0x189   :  { %2586 = vmatmul.f32.vlgmr.msra.gmra.mxu0 %v7749_v44  ;;  %2765 = vmatmul.f32.vlgmr.msra.gmra.mxu3 %v7755_v29 }
 0x18a   :  { %2792 = vmatpush.msrb.mxu0 %v6204_v62  ;;  %2830 = vmatpush.msrb.mxu1 %v6116_v49 }
 0x18b   :  { %2885 = vmatpush.msrb.mxu2 %v7756_v45  ;;  %2940 = vmatpush.msrb.mxu3 %v6131_v14  ;;  %v6520_v45 = vsub.f32 %v189_v6, %v6492_v27  ;;  %v165_v6 = vld [vmem:[#allocation2 + $0x430] sm:$0xff] }
 0x18c   :  { %2623 = vmatmul.f32.vlgmr.msra.gmra.mxu1 %v7749_v44  ;;  %2795 = vmatpush.msrb.mxu0 %v6216_v51  ;;  %v213_v51 = vld [vmem:[#allocation2 + $0x5b0] sm:$0xff] }
 0x18d   :  { %2832 = vmatpush.msrb.mxu1 %v6131_v14  ;;  %2889 = vmatpush.msrb.mxu2 %v7757_v34  ;;  %v217_v14 = vld [vmem:[#allocation2 + $0x5d0] sm:$0xff]  ;;  %v6418_v62 = vand.u32 4294901760, %v213_v51 }
 0x18e   :  { %2942 = vmatpush.msrb.mxu3 %v6147_v42  ;;  %2798 = vmatpush.msrb.mxu0 %v6229_v37 }
 0x18f   :  { %2834 = vmatpush.msrb.mxu1 %v6147_v42  ;;  %2893 = vmatpush.msrb.mxu2 %v2712_v13 }
 0x190   :  { %2944 = vmatpush.msrb.mxu3 %v6159_v0  ;;  %2801 = vmatpush.msrb.mxu0 %v6242_v35  ;;  %v6442_v35 = vsub.f32 %v213_v51, %v6418_v62 }
 0x191   :  { %2836 = vmatpush.msrb.mxu1 %v6159_v0  ;;  %2897 = vmatpush.msrb.mxu2 %v2718_v30  ;;  %v1905_v49 = vpop.f32.mrf.mxu0  ;;  %v6411_v0 = vand.u32 4294901760, %v217_v14  ;;  %v201_v30 = vld [vmem:[#allocation2 + $0x550] sm:$0xff] }
 0x192   :  { %2946 = vmatpush.msrb.mxu3 %v6180_v52  ;;  %2804 = vmatpush.msrb.mxu0 %v6255_v53  ;;  %v1906_v42 = vadd.f32 %v1905_v49, %v1837_v38  ;;  %v7551_v24 = vand.u32 4294901760, %v6442_v35 }
 0x193   :  { %2838 = vmatpush.msrb.mxu1 %v6180_v52  ;;  %2901 = vmatpush.msrb.mxu2 %v2724_v57  ;;  %v209_v52 = vld [vmem:[#allocation2 + $0x590] sm:$0xff]  ;;  %v6431_v13 = vsub.f32 %v217_v14, %v6411_v0  ;;  %v6531_v14 = vand.u32 4294901760, %v177_v21 }
 0x194   :  { %2948 = vmatpush.msrb.mxu3 %v6193_v5  ;;  %2807 = vmatpush.msrb.mxu0 %v6268_v40  ;;  %v197_v40 = vld [vmem:[#allocation2 + $0x530] sm:$0xff]  ;;  %v3024_v2 = vsub.f32 %v6442_v35, %v7551_v24 }
 0x195   :  { %2840 = vmatpush.msrb.mxu1 %v6193_v5  ;;  %2905 = vmatpush.msrb.mxu2 %v2730_v61  ;;  %v205_v5 = vld [vmem:[#allocation2 + $0x570] sm:$0xff]  ;;  %v7758_v61 = vld [vmem:[#allocation12_spill] sm:$0xff] }
 0x196   :  { %2950 = vmatpush.msrb.mxu3 %v6206_v15  ;;  %2810 = vmatpush.msrb.mxu0 %v6284_v12  ;;  %v6435_v37 = vand.u32 4294901760, %v205_v5  ;;  %v7552_v12 = vand.u32 4294901760, %v6431_v13  ;;  %v3025_v47 = vand.u32 4294901760, %v3024_v2 }
 0x197   :  { %2842 = vmatpush.msrb.mxu1 %v6206_v15  ;;  %2909 = vmatpush.msrb.mxu2 %v2736_v10  ;;  %v6428_v15 = vand.u32 4294901760, %v209_v52  ;;  %v6449_v10 = vand.u32 4294901760, %v201_v30 }
 0x198   :  { %2952 = vmatpush.msrb.mxu3 %v6218_v3  ;;  %2813 = vmatpush.msrb.mxu0 %v6297_v17 }
 0x199   :  { %2844 = vmatpush.msrb.mxu1 %v6218_v3  ;;  %2913 = vmatpush.msrb.mxu2 %v2742_v8  ;;  %v7554_v3 = vand.u32 4294901760, %v6421_v56  ;;  %v6453_v8 = vsub.f32 %v209_v52, %v6428_v15  ;;  %v6482_v18 = vsub.f32 %v201_v30, %v6449_v10 }
 0x19a   :  { %2954 = vmatpush.msrb.mxu3 %v6231_v39  ;;  %2816 = vmatpush.msrb.mxu0 %v6308_v16  ;;  %v3018_v16 = vsub.f32 %v6431_v13, %v7552_v12  ;;  %v74_v12 = vld [vmem:[#allocation2 + $0x158] sm:$0xff] }
 0x19b   :  { %2846 = vmatpush.msrb.mxu1 %v6231_v39  ;;  %2917 = vmatpush.msrb.mxu2 %v2748_v33  ;;  %v1942_v57 = vpop.f32.mrf.mxu1  ;;  %v1983_v53 = vpop.f32.mrf.mxu2  ;;  %v3012_v17 = vsub.f32 %v6421_v56, %v7554_v3  ;;  %v7550_v1 = vand.u32 4294901760, %v6453_v8  ;;  %v7547_v38 = vand.u32 4294901760, %v6482_v18 }
 0x19c   :  { %2956 = vmatpush.msrb.mxu3 %v6244_v32  ;;  %2819 = vmatmul.f32.vlgmr.msrb.gmra.mxu0 %v7758_v61  ;;  %v1943_v39 = vadd.f32 %v1942_v57, %v1906_v42  ;;  %v3019_v31 = vand.u32 4294901760, %v3018_v16  ;;  %v6540_v57 = vand.u32 4294901760, %v173_v41  ;;  %v94_v16 = vld [vmem:[#allocation2 + $0x1f8] sm:$0xff] }
 0x19d   :  { %2848 = vmatpush.msrb.mxu1 %v6244_v32  ;;  %2969 = vmatpush.msra.mxu0 %v6404_v60  ;;  %v6458_v32 = vsub.f32 %v205_v5, %v6435_v37  ;;  %v3013_v48 = vand.u32 4294901760, %v3012_v17  ;;  %v3030_v23 = vsub.f32 %v6453_v8, %v7550_v1  ;;  %v3042_v42 = vsub.f32 %v6482_v18, %v7547_v38  ;;  %v169_v5 = vld [vmem:[#allocation2 + $0x450] sm:$0xff]  ;;  %v7761_v61 = vld [vmem:[#allocation16_spill] sm:$0xff] }
 0x19e   :  { %2921 = vmatpush.msrb.mxu2 %v2754_v50  ;;  %2958 = vmatpush.msrb.mxu3 %v6260_v43  ;;  %v1984_v33 = vadd.f32 %v1983_v53, %v1943_v39  ;;  %v2084_v25 = vpop.f32.mrf.mxu3  ;;  %v6466_v50 = vand.u32 4294901760, %v197_v40  ;;  %v7542_v53 = vand.u32 4294901760, %v6520_v45  ;;  %v6544_v39 = vsub.f32 %v181_v11, %v6516_v54 }
 0x19f   :  { %2850 = vmatpush.msrb.mxu1 %v6260_v43  ;;  %2971 = vmatpush.msra.mxu0 %v6411_v0  ;;  %v7548_v58 = vand.u32 4294901760, %v6458_v32  ;;  %v3031_v49 = vand.u32 4294901760, %v3030_v23  ;;  %v6556_v17 = vsub.f32 %v177_v21, %v6531_v14  ;;  %v6566_v11 = vsub.f32 %v173_v41, %v6540_v57 }
 0x1a0   :  { %2925 = vmatpush.msrb.mxu2 %v2760_v46  ;;  %2960 = vmatpush.msrb.mxu3 %v6273_v26  ;;  %v6471_v43 = vadd.f32 %v2084_v25, %v1984_v33  ;;  %v6478_v46 = vand.u32 4294901760, %v193_v4  ;;  %v6495_v28 = vsub.f32 %v197_v40, %v6466_v50  ;;  %v3043_v33 = vand.u32 4294901760, %v3042_v42 }
 0x1a1   :  { %2927 = vmatmul.f32.vlgmr.msrb.gmra.mxu2 %v7755_v29  ;;  %2973 = vmatpush.msra.mxu0 %v6418_v62  ;;  %v7543_v2 = vand.u32 4294901760, %v6544_v39 }
 0x1a2   :  { %3112 = vmatpush.msra.mxu2 %v6421_v56  ;;  %2852 = vmatpush.msrb.mxu1 %v6273_v26  ;;  %v6499_v26 = vand.u32 4294901760, %v185_v19  ;;  %v6508_v36 = vsub.f32 %v193_v4, %v6478_v46  ;;  %v7545_v20 = vand.u32 4294901760, %v6495_v28  ;;  %v6553_v4 = vand.u32 4294901760, %v169_v5 }
 0x1a3   :  { %2962 = vmatpush.msrb.mxu3 %v6286_v22  ;;  %2975 = vmatpush.msra.mxu0 %v6428_v15 }
 0x1a4   :  { %2964 = vmatmul.f32.vlgmr.msrb.gmra.mxu3 %v7755_v29  ;;  %3115 = vmatpush.msra.mxu2 %v6431_v13  ;;  %v6525_v34 = vsub.f32 %v185_v19, %v6499_v26  ;;  %v7544_v51 = vand.u32 4294901760, %v6508_v36  ;;  %v3048_v30 = vsub.f32 %v6495_v28, %v7545_v20  ;;  %v6578_v41 = vsub.f32 %v169_v5, %v6553_v4  ;;  %v82_v20 = vld [vmem:[#allocation2 + $0x198] sm:$0xff] }
 0x1a5   :  { %3165 = vmatpush.msra.mxu3 %v6404_v60  ;;  %2854 = vmatpush.msrb.mxu1 %v6286_v22  ;;  %v3036_v22 = vsub.f32 %v6458_v32, %v7548_v58  ;;  %v7549_v5 = vand.u32 4294901760, %v6566_v11  ;;  %v6620_v58 = vand.u32 4294901760, %v82_v20  ;;  %v6679_v29 = vand.u32 4294901760, %v66_v63 }
 0x1a6   :  { %2977 = vmatpush.msra.mxu0 %v6435_v37  ;;  %2858 = vmatmul.f32.vlgmr.msrb.gmra.mxu1 %v7759_v9  ;;  %v7541_v40 = vand.u32 4294901760, %v6525_v34  ;;  %v3054_v25 = vsub.f32 %v6508_v36, %v7544_v51  ;;  %v3049_v19 = vand.u32 4294901760, %v3048_v30 }
 0x1a7   :  { %3118 = vmatpush.msra.mxu2 %v6442_v35  ;;  %3014 = vmatpush.msra.mxu1 %v3013_v48  ;;  %v3037_v52 = vand.u32 4294901760, %v3036_v22  ;;  %v3060_v48 = vsub.f32 %v6520_v45, %v7542_v53  ;;  %v6573_v22 = vand.u32 4294901760, %v165_v6  ;;  %v86_v53 = vld [vmem:[#allocation2 + $0x1b8] sm:$0xff]  ;;  %v6646_v24 = vsub.f32 %v82_v20, %v6620_v58 }
 0x1a8   :  { %3167 = vmatpush.msra.mxu3 %v6411_v0  ;;  %2979 = vmatpush.msra.mxu0 %v6449_v10  ;;  %v3066_v23 = vsub.f32 %v6525_v34, %v7541_v40  ;;  %v3055_v21 = vand.u32 4294901760, %v3054_v25 }
 0x1a9   :  { %3121 = vmatpush.msra.mxu2 %v6453_v8  ;;  %3020 = vmatpush.msra.mxu1 %v3019_v31  ;;  %v161_v31 = vld [vmem:[#allocation2 + $0x410] sm:$0xff]  ;;  %v3061_v30 = vand.u32 4294901760, %v3060_v48  ;;  %v6594_v40 = vsub.f32 %v165_v6, %v6573_v22  ;;  %v7553_v48 = vand.u32 4294901760, %v6578_v41 }
 0x1aa   :  { %3169 = vmatpush.msra.mxu3 %v6418_v62  ;;  %2981 = vmatpush.msra.mxu0 %v6466_v50  ;;  %v6584_v42 = vand.u32 4294901760, %v161_v31  ;;  %v3067_v25 = vand.u32 4294901760, %v3066_v23 }
 0x1ab   :  { %3124 = vmatpush.msra.mxu2 %v6458_v32  ;;  %3026 = vmatpush.msra.mxu1 %v3025_v47  ;;  %v7546_v47 = vand.u32 4294901760, %v6556_v17  ;;  %v7556_v38 = vand.u32 4294901760, %v6594_v40 }
 0x1ac   :  { %3171 = vmatpush.msra.mxu3 %v6428_v15  ;;  %2983 = vmatpush.msra.mxu0 %v6478_v46  ;;  %v6609_v6 = vsub.f32 %v161_v31, %v6584_v42 }
 0x1ad   :  { %3127 = vmatpush.msra.mxu2 %v6482_v18  ;;  %3032 = vmatpush.msra.mxu1 %v3031_v49  ;;  %v6580_v49 = vand.u32 4294901760, %v94_v16  ;;  %v3096_v3 = vsub.f32 %v6594_v40, %v7556_v38 }
 0x1ae   :  { %3173 = vmatpush.msra.mxu3 %v6435_v37  ;;  %2985 = vmatpush.msra.mxu0 %v6492_v27  ;;  %v7762_v20 = vand.u32 4294901760, %v6609_v6 }
 0x1af   :  { %3130 = vmatpush.msra.mxu2 %v6495_v28  ;;  %3038 = vmatpush.msra.mxu1 %v3037_v52  ;;  %v90_v52 = vld [vmem:[#allocation2 + $0x1d8] sm:$0xff] }
 0x1b0   :  { %3175 = vmatpush.msra.mxu3 %v6449_v10  ;;  %2987 = vmatpush.msra.mxu0 %v6499_v26  ;;  %v6604_v51 = vand.u32 4294901760, %v90_v52 }
 0x1b1   :  { %3133 = vmatpush.msra.mxu2 %v6508_v36  ;;  %3044 = vmatpush.msra.mxu1 %v3043_v33  ;;  %v3072_v33 = vsub.f32 %v6544_v39, %v7543_v2  ;;  %v6602_v2 = vsub.f32 %v94_v16, %v6580_v49  ;;  %v6615_v16 = vand.u32 4294901760, %v86_v53 }
 0x1b2   :  { %3177 = vmatpush.msra.mxu3 %v6466_v50  ;;  %2989 = vmatpush.msra.mxu0 %v6516_v54  ;;  %7760 = vst [vmem:[#allocation18_spill] sm:$0xff] %v6604_v51  ;;  %v6628_v1 = vsub.f32 %v90_v52, %v6604_v51 }
 0x1b3   :  { %3136 = vmatpush.msra.mxu2 %v6520_v45  ;;  %3050 = vmatpush.msra.mxu1 %v3049_v19  ;;  %v3078_v19 = vsub.f32 %v6556_v17, %v7546_v47  ;;  %v3073_v23 = vand.u32 4294901760, %v3072_v33  ;;  %v78_v47 = vld [vmem:[#allocation2 + $0x178] sm:$0xff]  ;;  %v3090_v33 = vsub.f32 %v6578_v41, %v7553_v48  ;;  %v6637_v48 = vsub.f32 %v86_v53, %v6615_v16 }
 0x1b4   :  { %3179 = vmatpush.msra.mxu3 %v6478_v46  ;;  %2991 = vmatpush.msra.mxu0 %v6531_v14 }
 0x1b5   :  { %3139 = vmatpush.msra.mxu2 %v6525_v34  ;;  %3056 = vmatpush.msra.mxu1 %v3055_v21  ;;  %v3084_v21 = vsub.f32 %v6566_v11, %v7549_v5  ;;  %v3079_v31 = vand.u32 4294901760, %v3078_v19  ;;  %v7557_v5 = vand.u32 4294901760, %v6602_v2 }
 0x1b6   :  { %3181 = vmatpush.msra.mxu3 %v6492_v27  ;;  %2993 = vmatpush.msra.mxu0 %v6540_v57 }
 0x1b7   :  { %3142 = vmatpush.msra.mxu2 %v6544_v39  ;;  %3062 = vmatpush.msra.mxu1 %v3061_v30  ;;  %v2138_v30 = vpop.f32.mrf.mxu0  ;;  %v3085_v19 = vand.u32 4294901760, %v3084_v21  ;;  %v3091_v21 = vand.u32 4294901760, %v3090_v33  ;;  %v3353_v53 = vsub.f32 %v6602_v2, %v7557_v5  ;;  %v7763_v5 = vand.u32 4294901760, %v6421_v56 }
 0x1b8   :  { %3183 = vmatpush.msra.mxu3 %v6499_v26  ;;  %2995 = vmatpush.msra.mxu0 %v6553_v4  ;;  %v2139_v52 = vadd.f32 %v2138_v30, %v6471_v43  ;;  %v6653_v30 = vand.u32 4294901760, %v74_v12  ;;  %v7765_v56 = vand.u32 4294901760, %v6628_v1 }
 0x1b9   :  { %3145 = vmatpush.msra.mxu2 %v6556_v17  ;;  %3068 = vmatpush.msra.mxu1 %v3067_v25  ;;  %v6633_v25 = vand.u32 4294901760, %v78_v47 }
 0x1ba   :  { %3185 = vmatpush.msra.mxu3 %v6516_v54  ;;  %2997 = vmatpush.msra.mxu0 %v6573_v22 }
 0x1bb   :  { %3148 = vmatpush.msra.mxu2 %v6566_v11  ;;  %3074 = vmatpush.msra.mxu1 %v3073_v23  ;;  %v70_v23 = vld [vmem:[#allocation2 + $0x138] sm:$0xff]  ;;  %v6661_v33 = vsub.f32 %v78_v47, %v6633_v25 }
 0x1bc   :  { %3187 = vmatpush.msra.mxu3 %v6531_v14  ;;  %2999 = vmatpush.msra.mxu0 %v6584_v42  ;;  %v6666_v55 = vand.u32 4294901760, %v70_v23  ;;  %v62_v47 = vld [vmem:[#allocation2 + $0xf8] sm:$0xff] }
 0x1bd   :  { %3151 = vmatpush.msra.mxu2 %v6578_v41  ;;  %3080 = vmatpush.msra.mxu1 %v3079_v31  ;;  %v2177_v9 = vpop.f32.mrf.mxu1  ;;  %v2246_v43 = vpop.f32.mrf.mxu2  ;;  %v3102_v31 = vsub.f32 %v6609_v6, %v7762_v20  ;;  %v7764_v20 = vand.u32 4294901760, %v6431_v13  ;;  %v6704_v13 = vsub.f32 %v66_v63, %v6679_v29 }
 0x1be   :  { %3189 = vmatpush.msra.mxu3 %v6540_v57  ;;  %3005 = vmatmul.f32.vlgmr.msra.gmra.mxu0 %v7761_v61  ;;  %v2178_v38 = vadd.f32 %v2177_v9, %v2139_v52  ;;  %v3097_v61 = vand.u32 4294901760, %v3096_v3  ;;  %v7766_v3 = vld [vmem:[#allocation14_spill] sm:$0xff]  ;;  %v6691_v44 = vsub.f32 %v70_v23, %v6666_v55 }
 0x1bf   :  { %3154 = vmatpush.msra.mxu2 %v6594_v40  ;;  %3206 = vmatpush.msrb.mxu0 %v7763_v5  ;;  %v3359_v5 = vsub.f32 %v6628_v1, %v7765_v56 }
 0x1c0   :  { %3086 = vmatpush.msra.mxu1 %v3085_v19  ;;  %3191 = vmatpush.msra.mxu3 %v6553_v4  ;;  %v2247_v7 = vadd.f32 %v2246_v43, %v2178_v38  ;;  %v2283_v52 = vpop.f32.mrf.mxu3  ;;  %v6677_v19 = vsub.f32 %v74_v12, %v6653_v30  ;;  %v3354_v38 = vand.u32 4294901760, %v3353_v53  ;;  %v3103_v43 = vand.u32 4294901760, %v3102_v31  ;;  %v54_v31 = vld [vmem:[#allocation2 + $0xb8] sm:$0xff] }
 0x1c1   :  { %3157 = vmatpush.msra.mxu2 %v6609_v6  ;;  %3210 = vmatpush.msrb.mxu0 %v7764_v20  ;;  %v58_v20 = vld [vmem:[#allocation2 + $0xd8] sm:$0xff]  ;;  %v7768_v12 = vand.u32 4294901760, %v6637_v48  ;;  %v7561_v23 = vand.u32 4294901760, %v6691_v44 }
 0x1c2   :  { %3092 = vmatpush.msra.mxu1 %v3091_v21  ;;  %3193 = vmatpush.msra.mxu3 %v6573_v22  ;;  %v2284_v9 = vadd.f32 %v2283_v52, %v2247_v7  ;;  %v7767_v21 = vand.u32 4294901760, %v6442_v35  ;;  %v7769_v7 = vand.u32 4294901760, %v6646_v24  ;;  %v7770_v52 = vld [vmem:[#allocation15_spill] sm:$0xff] }
 0x1c3   :  { %3160 = vmatmul.f32.vlgmr.msra.gmra.mxu2 %v7766_v3  ;;  %v3365_v56 = vsub.f32 %v6637_v48, %v7768_v12  ;;  %v6693_v3 = vand.u32 4294901760, %v62_v47  ;;  %v3360_v12 = vand.u32 4294901760, %v3359_v5  ;;  %v7775_v5 = vand.u32 4294901760, %v6458_v32 }
 0x1c4   :  { %3214 = vmatpush.msrb.mxu0 %v7767_v21  ;;  %3310 = vmatpush.msrb.mxu2 %v6580_v49  ;;  %v3371_v35 = vsub.f32 %v6646_v24, %v7769_v7  ;;  %v4336_v53 = vrot.slane %v2284_v9, 7  ;;  %v7771_v21 = vand.u32 4294901760, %v6453_v8  ;;  %v7774_v7 = vand.u32 4294901760, %v6661_v33 }
 0x1c5   :  { %3098 = vmatpush.msra.mxu1 %v3097_v61  ;;  %3195 = vmatpush.msra.mxu3 %v6584_v42  ;;  %v6706_v61 = vand.u32 4294901760, %v58_v20  ;;  %v3366_v63 = vand.u32 4294901760, %v3365_v56  ;;  %v7777_v32 = vand.u32 4294901760, %v6677_v19  ;;  %v42_v56 = vld [vmem:[#allocation2 + $0x58] sm:$0xff] }
 0x1c6   :  { %3199 = vmatmul.f32.vlgmr.msra.gmra.mxu3 %v7770_v52  ;;  %3218 = vmatpush.msrb.mxu0 %v7771_v21  ;;  %v6711_v9 = vsel %vm4339_vm0, %v7772_v59, %v4336_v53  ;;  %v3377_v8 = vsub.f32 %v6661_v33, %v7774_v7  ;;  %v50_v21 = vld [vmem:[#allocation2 + $0x98] sm:$0xff]  ;;  %v6720_v52 = vsub.f32 %v62_v47, %v6693_v3  ;;  %v3372_v59 = vand.u32 4294901760, %v3371_v35 }
 0x1c7   :  { %3312 = vmatpush.msrb.mxu2 %v6604_v51  ;;  %3355 = vmatpush.msrb.mxu3 %v3354_v38  ;;  %7773 = vst [vmem:[#allocation19_spill] sm:$0xff] %v6711_v9  ;;  %v6722_v38 = vand.u32 4294901760, %v54_v31  ;;  %v7776_v51 = vld [vmem:[#allocation6_spill] sm:$0xff]  ;;  %v46_v53 = vld [vmem:[#allocation2 + $0x78] sm:$0xff]  ;;  %v6732_v47 = vsub.f32 %v58_v20, %v6706_v61  ;;  %v6734_v7 = vand.u32 4294901760, %v50_v21 }
 0x1c8   :  { %3104 = vmatpush.msra.mxu1 %v3103_v43  ;;  %3222 = vmatpush.msrb.mxu0 %v7775_v5  ;;  %v3383_v43 = vsub.f32 %v6677_v19, %v7777_v32  ;;  %v7778_v5 = vand.u32 4294901760, %v6482_v18  ;;  %v3378_v35 = vand.u32 4294901760, %v3377_v8  ;;  %v6747_v32 = vand.u32 4294901760, %v46_v53  ;;  %v178_v9 = vld [vmem:[#allocation2 + $0x498] sm:$0xff] }
 0x1c9   :  { %3106 = vmatmul.f32.vlgmr.msra.gmra.mxu1 %v7776_v51  ;;  %3314 = vmatpush.msrb.mxu2 %v6615_v16  ;;  %v6745_v20 = vsub.f32 %v54_v31, %v6722_v38  ;;  %v7779_v18 = vand.u32 4294901760, %v6495_v28  ;;  %v7780_v8 = vand.u32 4294901760, %v6704_v13  ;;  %v6758_v31 = vsub.f32 %v50_v21, %v6734_v7 }
 0x1ca   :  { %3273 = vmatpush.msrb.mxu1 %v6404_v60  ;;  %3361 = vmatpush.msrb.mxu3 %v3360_v12  ;;  %v3389_v60 = vsub.f32 %v6691_v44, %v7561_v23  ;;  %v38_v23 = vld [vmem:[#allocation2 + $0x38] sm:$0xff]  ;;  %v7781_v12 = vand.u32 4294901760, %v6508_v36  ;;  %v6763_v28 = vand.u32 4294901760, %v42_v56  ;;  %v6771_v21 = vsub.f32 %v46_v53, %v6747_v32 }
 0x1cb   :  { %3226 = vmatpush.msrb.mxu0 %v7778_v5  ;;  %3316 = vmatpush.msrb.mxu2 %v6620_v58  ;;  %v3406_v5 = vand.u32 4294901760, %v6732_v47  ;;  %v7783_v36 = vand.u32 4294901760, %v6520_v45  ;;  %v7784_v53 = vand.u32 4294901760, %v6525_v34  ;;  %v7785_v34 = vand.u32 4294901760, %v6544_v39 }
 0x1cc   :  { %3275 = vmatpush.msrb.mxu1 %v6411_v0  ;;  %3367 = vmatpush.msrb.mxu3 %v3366_v63  ;;  %v3384_v0 = vand.u32 4294901760, %v3383_v43  ;;  %v3395_v63 = vsub.f32 %v6704_v13, %v7780_v8  ;;  %v34_v8 = vld [vmem:[#allocation2 + $0x18] sm:$0xff]  ;;  %v6787_v45 = vsub.f32 %v42_v56, %v6763_v28 }
 0x1cd   :  { %3230 = vmatpush.msrb.mxu0 %v7779_v18  ;;  %3318 = vmatpush.msrb.mxu2 %v6633_v25  ;;  %v3412_v18 = vand.u32 4294901760, %v6745_v20 }
 0x1ce   :  { %3277 = vmatpush.msrb.mxu1 %v6418_v62  ;;  %3373 = vmatpush.msrb.mxu3 %v3372_v59  ;;  %v3390_v62 = vand.u32 4294901760, %v3389_v60  ;;  %v7782_v59 = vand.u32 4294901760, %v6720_v52  ;;  %v3418_v60 = vand.u32 4294901760, %v6758_v31  ;;  %v3430_v39 = vand.u32 4294901760, %v6787_v45 }
 0x1cf   :  { %3234 = vmatpush.msrb.mxu0 %v7781_v12  ;;  %3320 = vmatpush.msrb.mxu2 %v6653_v30  ;;  %v6776_v12 = vand.u32 4294901760, %v38_v23 }
 0x1d0   :  { %3279 = vmatpush.msrb.mxu1 %v6428_v15  ;;  %3379 = vmatpush.msrb.mxu3 %v3378_v35  ;;  %v3401_v43 = vsub.f32 %v6720_v52, %v7782_v59  ;;  %v3396_v15 = vand.u32 4294901760, %v3395_v63  ;;  %v3407_v35 = vsub.f32 %v6732_v47, %v3406_v5  ;;  %v6789_v59 = vand.u32 4294901760, %v34_v8 }
 0x1d1   :  { %3238 = vmatpush.msrb.mxu0 %v7783_v36  ;;  %3322 = vmatpush.msrb.mxu2 %v6666_v55  ;;  %v3424_v63 = vand.u32 4294901760, %v6771_v21  ;;  %v6800_v56 = vsub.f32 %v38_v23, %v6776_v12 }
 0x1d2   :  { %3281 = vmatpush.msrb.mxu1 %v6435_v37  ;;  %3385 = vmatpush.msrb.mxu3 %v3384_v0  ;;  %v3402_v37 = vand.u32 4294901760, %v3401_v43  ;;  %v3413_v0 = vsub.f32 %v6745_v20, %v3412_v18  ;;  %v7786_v43 = vand.u32 4294901760, %v6556_v17  ;;  %v6811_v36 = vsub.f32 %v34_v8, %v6789_v59 }
 0x1d3   :  { %3242 = vmatpush.msrb.mxu0 %v7784_v53  ;;  %3324 = vmatpush.msrb.mxu2 %v6679_v29  ;;  %v3425_v23 = vsub.f32 %v6771_v21, %v3424_v63  ;;  %v3436_v17 = vand.u32 4294901760, %v6800_v56 }
 0x1d4   :  { %3283 = vmatpush.msrb.mxu1 %v6449_v10  ;;  %3391 = vmatpush.msrb.mxu3 %v3390_v62  ;;  %v3408_v10 = vand.u32 4294901760, %v3407_v35  ;;  %v3419_v62 = vsub.f32 %v6758_v31, %v3418_v60  ;;  %v7788_v35 = vand.u32 4294901760, %v6578_v41  ;;  %v7790_v41 = vand.u32 4294901760, %v6609_v6 }
 0x1d5   :  { %3246 = vmatpush.msrb.mxu0 %v7785_v34  ;;  %3326 = vmatpush.msrb.mxu2 %v6693_v3  ;;  %v3426_v53 = vand.u32 4294901760, %v3425_v23  ;;  %v7792_v6 = vand.u32 4294901760, %v6628_v1 }
 0x1d6   :  { %3285 = vmatpush.msrb.mxu1 %v6466_v50  ;;  %3397 = vmatpush.msrb.mxu3 %v3396_v15  ;;  %v3414_v50 = vand.u32 4294901760, %v3413_v0  ;;  %v7787_v15 = vand.u32 4294901760, %v6566_v11  ;;  %v3420_v8 = vand.u32 4294901760, %v3419_v62  ;;  %v3442_v11 = vand.u32 4294901760, %v6811_v36 }
 0x1d7   :  { %3250 = vmatpush.msrb.mxu0 %v7786_v43  ;;  %3328 = vmatpush.msrb.mxu2 %v6706_v61 }
 0x1d8   :  { %3287 = vmatpush.msrb.mxu1 %v6478_v46  ;;  %3403 = vmatpush.msrb.mxu3 %v3402_v37  ;;  %v3431_v46 = vsub.f32 %v6787_v45, %v3430_v39  ;;  %v7789_v37 = vand.u32 4294901760, %v6594_v40  ;;  %v3443_v40 = vsub.f32 %v6811_v36, %v3442_v11 }
 0x1d9   :  { %3254 = vmatpush.msrb.mxu0 %v7787_v15  ;;  %3330 = vmatpush.msrb.mxu2 %v6722_v38 }
 0x1da   :  { %3289 = vmatpush.msrb.mxu1 %v6492_v27  ;;  %3409 = vmatpush.msrb.mxu3 %v3408_v10  ;;  %v3437_v27 = vsub.f32 %v6800_v56, %v3436_v17 }
 0x1db   :  { %3258 = vmatpush.msrb.mxu0 %v7788_v35  ;;  %3332 = vmatpush.msrb.mxu2 %v6734_v7 }
 0x1dc   :  { %3291 = vmatpush.msrb.mxu1 %v6499_v26  ;;  %3415 = vmatpush.msrb.mxu3 %v3414_v50  ;;  %v3432_v26 = vand.u32 4294901760, %v3431_v46  ;;  %v3438_v0 = vand.u32 4294901760, %v3437_v27  ;;  %v7802_v50 = vld [vmem:[#allocation7_spill] sm:$0xff] }
 0x1dd   :  { %3262 = vmatpush.msrb.mxu0 %v7789_v37  ;;  %3334 = vmatpush.msrb.mxu2 %v6747_v32  ;;  %v114_v37 = vld [vmem:[#allocation2 + $0x298] sm:$0xff] }
 0x1de   :  { %3293 = vmatpush.msrb.mxu1 %v6516_v54  ;;  %3421 = vmatpush.msrb.mxu3 %v3420_v8  ;;  %v3444_v54 = vand.u32 4294901760, %v3443_v40  ;;  %v118_v8 = vld [vmem:[#allocation2 + $0x2b8] sm:$0xff] }
 0x1df   :  { %3266 = vmatpush.msrb.mxu0 %v7790_v41  ;;  %3336 = vmatpush.msrb.mxu2 %v6763_v28  ;;  %v7010_v27 = vand.u32 4294901760, %v118_v8 }
 0x1e0   :  { %3295 = vmatpush.msrb.mxu1 %v6531_v14  ;;  %3427 = vmatpush.msrb.mxu3 %v3426_v53  ;;  %v7791_v14 = vand.u32 4294901760, %v6602_v2 }
 0x1e1   :  { %3268 = vmatmul.f32.vlgmr.msrb.gmra.mxu0 %v7776_v51  ;;  %3338 = vmatpush.msrb.mxu2 %v6776_v12 }
 0x1e2   :  { %3453 = vmatpush.msra.mxu0 %v6602_v2  ;;  %3297 = vmatpush.msrb.mxu1 %v6540_v57  ;;  %v7793_v57 = vand.u32 4294901760, %v6637_v48  ;;  %v7796_v2 = vand.u32 4294901760, %v6661_v33 }
 0x1e3   :  { %3433 = vmatpush.msrb.mxu3 %v3432_v26  ;;  %3340 = vmatpush.msrb.mxu2 %v6789_v59 }
 0x1e4   :  { %3456 = vmatpush.msra.mxu0 %v6628_v1  ;;  %3299 = vmatpush.msrb.mxu1 %v6553_v4  ;;  %v7794_v4 = vld [vmem:[#allocation18_spill] sm:$0xff]  ;;  %v7795_v1 = vand.u32 4294901760, %v6646_v24 }
 0x1e5   :  { %3439 = vmatpush.msrb.mxu3 %v3438_v0  ;;  %3547 = vmatpush.msra.mxu2 %v7791_v14  ;;  %v110_v0 = vld [vmem:[#allocation2 + $0x278] sm:$0xff] }
 0x1e6   :  { %3459 = vmatpush.msra.mxu0 %v6637_v48  ;;  %3301 = vmatpush.msrb.mxu1 %v6573_v22  ;;  %v7797_v22 = vand.u32 4294901760, %v6677_v19 }
 0x1e7   :  { %3445 = vmatpush.msrb.mxu3 %v3444_v54  ;;  %3551 = vmatpush.msra.mxu2 %v7792_v6  ;;  %v7024_v6 = vand.u32 4294901760, %v114_v37 }
 0x1e8   :  { %3462 = vmatpush.msra.mxu0 %v6646_v24  ;;  %3303 = vmatpush.msrb.mxu1 %v6584_v42  ;;  %v7798_v24 = vand.u32 4294901760, %v6691_v44  ;;  %v158_v42 = vld [vmem:[#allocation2 + $0x3f8] sm:$0xff] }
 0x1e9   :  { %3614 = vmatpush.msra.mxu3 %v6580_v49  ;;  %3555 = vmatpush.msra.mxu2 %v7793_v57  ;;  %v6896_v48 = vand.u32 4294901760, %v158_v42 }
 0x1ea   :  { %3305 = vmatmul.f32.vlgmr.msrb.gmra.mxu1 %v7776_v51  ;;  %3465 = vmatpush.msra.mxu0 %v6661_v33 }
 0x1eb   :  { %3506 = vmatpush.msra.mxu1 %v6580_v49  ;;  %3616 = vmatpush.msra.mxu3 %v7794_v4  ;;  %v7799_v49 = vand.u32 4294901760, %v6704_v13 }
 0x1ec   :  { %3468 = vmatpush.msra.mxu0 %v6677_v19  ;;  %3559 = vmatpush.msra.mxu2 %v7795_v1  ;;  %v142_v19 = vld [vmem:[#allocation2 + $0x378] sm:$0xff] }
 0x1ed   :  { %3508 = vmatpush.msra.mxu1 %v7794_v4  ;;  %3618 = vmatpush.msra.mxu3 %v6615_v16  ;;  %v106_v1 = vld [vmem:[#allocation2 + $0x258] sm:$0xff] }
 0x1ee   :  { %3471 = vmatpush.msra.mxu0 %v6691_v44  ;;  %3563 = vmatpush.msra.mxu2 %v7796_v2  ;;  %v154_v44 = vld [vmem:[#allocation2 + $0x3d8] sm:$0xff] }
 0x1ef   :  { %3510 = vmatpush.msra.mxu1 %v6615_v16  ;;  %3620 = vmatpush.msra.mxu3 %v6620_v58  ;;  %v6903_v16 = vand.u32 4294901760, %v154_v44  ;;  %v7803_v2 = vld [vmem:[#allocation8_spill] sm:$0xff] }
 0x1f0   :  { %3474 = vmatpush.msra.mxu0 %v6704_v13  ;;  %3567 = vmatpush.msra.mxu2 %v7797_v22 }
 0x1f1   :  { %3512 = vmatpush.msra.mxu1 %v6620_v58  ;;  %3622 = vmatpush.msra.mxu3 %v6633_v25  ;;  %v7800_v58 = vand.u32 4294901760, %v6720_v52  ;;  %v6921_v33 = vsub.f32 %v154_v44, %v6903_v16 }
 0x1f2   :  { %3477 = vmatpush.msra.mxu0 %v6720_v52  ;;  %3571 = vmatpush.msra.mxu2 %v7798_v24  ;;  %v6934_v52 = vand.u32 4294901760, %v142_v19  ;;  %v7035_v24 = vand.u32 4294901760, %v110_v0 }
 0x1f3   :  { %3514 = vmatpush.msra.mxu1 %v6633_v25  ;;  %3624 = vmatpush.msra.mxu3 %v6653_v30  ;;  %v150_v25 = vld [vmem:[#allocation2 + $0x3b8] sm:$0xff] }
 0x1f4   :  { %3480 = vmatpush.msra.mxu0 %v6732_v47  ;;  %3575 = vmatpush.msra.mxu2 %v7799_v49  ;;  %v138_v47 = vld [vmem:[#allocation2 + $0x358] sm:$0xff] }
 0x1f5   :  { %3516 = vmatpush.msra.mxu1 %v6653_v30  ;;  %3626 = vmatpush.msra.mxu3 %v6666_v55  ;;  %v146_v30 = vld [vmem:[#allocation2 + $0x398] sm:$0xff] }
 0x1f6   :  { %3483 = vmatpush.msra.mxu0 %v6745_v20  ;;  %3579 = vmatpush.msra.mxu2 %v7800_v58  ;;  %v134_v20 = vld [vmem:[#allocation2 + $0x338] sm:$0xff] }
 0x1f7   :  { %3518 = vmatpush.msra.mxu1 %v6666_v55  ;;  %3628 = vmatpush.msra.mxu3 %v6679_v29  ;;  %v6911_v55 = vsub.f32 %v158_v42, %v6896_v48  ;;  %v7039_v42 = vsub.f32 %v118_v8, %v7010_v27 }
 0x1f8   :  { %3486 = vmatpush.msra.mxu0 %v6758_v31  ;;  %3583 = vmatpush.msra.mxu2 %v3406_v5  ;;  %v6950_v31 = vand.u32 4294901760, %v138_v47 }
 0x1f9   :  { %3520 = vmatpush.msra.mxu1 %v6679_v29  ;;  %3630 = vmatpush.msra.mxu3 %v6693_v3  ;;  %v6916_v29 = vand.u32 4294901760, %v150_v25  ;;  %v3693_v13 = vand.u32 4294901760, %v6911_v55 }
 0x1fa   :  { %3489 = vmatpush.msra.mxu0 %v6771_v21  ;;  %3587 = vmatpush.msra.mxu2 %v3412_v18  ;;  %v130_v18 = vld [vmem:[#allocation2 + $0x318] sm:$0xff]  ;;  %v6977_v62 = vsub.f32 %v138_v47, %v6950_v31  ;;  %v7804_v47 = vld [vmem:[#allocation9_spill] sm:$0xff] }
 0x1fb   :  { %3522 = vmatpush.msra.mxu1 %v6693_v3  ;;  %3632 = vmatpush.msra.mxu3 %v6706_v61  ;;  %v6928_v3 = vand.u32 4294901760, %v146_v30  ;;  %v3694_v5 = vsub.f32 %v6911_v55, %v3693_v13  ;;  %v6971_v34 = vand.u32 4294901760, %v130_v18 }
 0x1fc   :  { %3492 = vmatpush.msra.mxu0 %v6787_v45  ;;  %3591 = vmatpush.msra.mxu2 %v3418_v60  ;;  %v6967_v45 = vand.u32 4294901760, %v134_v20 }
 0x1fd   :  { %3524 = vmatpush.msra.mxu1 %v6706_v61  ;;  %3634 = vmatpush.msra.mxu3 %v6722_v38  ;;  %v6937_v61 = vsub.f32 %v150_v25, %v6916_v29  ;;  %v7047_v25 = vand.u32 4294901760, %v106_v1 }
 0x1fe   :  { %3495 = vmatpush.msra.mxu0 %v6800_v56  ;;  %3595 = vmatpush.msra.mxu2 %v3424_v63  ;;  %v7801_v63 = vld [vmem:[#allocation11_spill] sm:$0xff]  ;;  %v126_v56 = vld [vmem:[#allocation2 + $0x2f8] sm:$0xff]  ;;  %v6990_v15 = vsub.f32 %v134_v20, %v6967_v45 }
 0x1ff   :  { %3526 = vmatpush.msra.mxu1 %v6722_v38  ;;  %3636 = vmatpush.msra.mxu3 %v6734_v7  ;;  %v3699_v38 = vand.u32 4294901760, %v6921_v33  ;;  %v3705_v21 = vand.u32 4294901760, %v6937_v61  ;;  %v6987_v23 = vand.u32 4294901760, %v126_v56  ;;  %v102_v20 = vld [vmem:[#allocation2 + $0x238] sm:$0xff]  ;;  %v7073_v8 = vsub.f32 %v106_v1, %v7047_v25 }
 0x200   :  { %3498 = vmatpush.msra.mxu0 %v6811_v36  ;;  %3599 = vmatpush.msra.mxu2 %v3430_v39  ;;  %v122_v36 = vld [vmem:[#allocation2 + $0x2d8] sm:$0xff]  ;;  %v7569_v41 = vand.u32 4294901760, %v6990_v15 }
 0x201   :  { %3528 = vmatpush.msra.mxu1 %v6734_v7  ;;  %3638 = vmatpush.msra.mxu3 %v6747_v32  ;;  %v6953_v7 = vsub.f32 %v146_v30, %v6928_v3  ;;  %v3700_v60 = vsub.f32 %v6921_v33, %v3699_v38  ;;  %v3706_v43 = vsub.f32 %v6937_v61, %v3705_v21  ;;  %v7001_v46 = vand.u32 4294901760, %v122_v36 }
 0x202   :  { %3651 = vmatpush.msrb.mxu0 %v6896_v48  ;;  %3603 = vmatpush.msra.mxu2 %v3436_v17  ;;  %v6995_v17 = vsub.f32 %v130_v18, %v6971_v34  ;;  %v7014_v26 = vsub.f32 %v126_v56, %v6987_v23  ;;  %v3730_v22 = vsub.f32 %v6990_v15, %v7569_v41  ;;  %v7806_v41 = vld [vmem:[#allocation5_spill] sm:$0xff] }
 0x203   :  { %3530 = vmatpush.msra.mxu1 %v6747_v32  ;;  %3640 = vmatpush.msra.mxu3 %v6763_v28  ;;  %v6960_v32 = vsub.f32 %v142_v19, %v6934_v52  ;;  %v7576_v10 = vand.u32 4294901760, %v6953_v7  ;;  %v7027_v57 = vsub.f32 %v122_v36, %v7001_v46  ;;  %v7051_v19 = vsub.f32 %v114_v37, %v7024_v6 }
 0x204   :  { %3653 = vmatpush.msrb.mxu0 %v6903_v16  ;;  %3607 = vmatpush.msra.mxu2 %v3442_v11  ;;  %v7572_v11 = vand.u32 4294901760, %v6977_v62  ;;  %v7568_v40 = vand.u32 4294901760, %v6995_v17  ;;  %v7567_v49 = vand.u32 4294901760, %v7014_v26  ;;  %v7069_v36 = vand.u32 4294901760, %v102_v20 }
 0x205   :  { %3532 = vmatpush.msra.mxu1 %v6763_v28  ;;  %3642 = vmatpush.msra.mxu3 %v6776_v12  ;;  %v3695_v28 = vand.u32 4294901760, %v3694_v5  ;;  %v7574_v39 = vand.u32 4294901760, %v6960_v32  ;;  %v3712_v35 = vsub.f32 %v6953_v7, %v7576_v10  ;;  %v7566_v30 = vand.u32 4294901760, %v7027_v57 }
 0x206   :  { %3346 = vmatmul.f32.vlgmr.msrb.gmra.mxu2 %v7801_v63  ;;  %3655 = vmatpush.msrb.mxu0 %v6916_v29  ;;  %v3724_v14 = vsub.f32 %v6977_v62, %v7572_v11  ;;  %v3736_v58 = vsub.f32 %v6995_v17, %v7568_v40  ;;  %v3731_v5 = vand.u32 4294901760, %v3730_v22  ;;  %v3742_v18 = vsub.f32 %v7014_v26, %v7567_v49  ;;  %v214_v22 = vld [vmem:[#allocation2 + $0x5b8] sm:$0xff] }
 0x207   :  { %3794 = vmatpush.msrb.mxu2 %v6911_v55  ;;  %3534 = vmatpush.msra.mxu1 %v6776_v12  ;;  %v3701_v12 = vand.u32 4294901760, %v3700_v60  ;;  %v3718_v53 = vsub.f32 %v6960_v32, %v7574_v39  ;;  %v3713_v54 = vand.u32 4294901760, %v3712_v35  ;;  %v7565_v60 = vand.u32 4294901760, %v7039_v42  ;;  %v198_v49 = vld [vmem:[#allocation2 + $0x538] sm:$0xff] }
 0x208   :  { %3644 = vmatpush.msra.mxu3 %v6789_v59  ;;  %3657 = vmatpush.msrb.mxu0 %v6928_v3  ;;  %v3725_v44 = vand.u32 4294901760, %v3724_v14  ;;  %v7061_v63 = vsub.f32 %v110_v0, %v7035_v24  ;;  %v3737_v56 = vand.u32 4294901760, %v3736_v58  ;;  %v3743_v35 = vand.u32 4294901760, %v3742_v18  ;;  %v218_v0 = vld [vmem:[#allocation2 + $0x5d8] sm:$0xff] }
 0x209   :  { %3447 = vmatmul.f32.vlgmr.msrb.gmra.mxu3 %v7802_v50  ;;  %3797 = vmatpush.msrb.mxu2 %v6921_v33  ;;  %v3719_v4 = vand.u32 4294901760, %v3718_v53  ;;  %v7093_v1 = vsub.f32 %v102_v20, %v7069_v36  ;;  %v7098_v58 = vand.u32 4294901760, %v218_v0  ;;  %v190_v11 = vld [vmem:[#allocation2 + $0x4f8] sm:$0xff] }
 0x20a   :  { %3847 = vmatpush.msrb.mxu3 %v6896_v48  ;;  %3536 = vmatpush.msra.mxu1 %v6789_v59  ;;  %v3707_v59 = vand.u32 4294901760, %v3706_v43  ;;  %v3748_v43 = vsub.f32 %v7027_v57, %v7566_v30  ;;  %v7562_v53 = vand.u32 4294901760, %v7061_v63  ;;  %v186_v33 = vld [vmem:[#allocation2 + $0x4d8] sm:$0xff]  ;;  %v7189_v10 = vand.u32 4294901760, %v190_v11 }
 0x20b   :  { %3659 = vmatpush.msrb.mxu0 %v6934_v52  ;;  %3800 = vmatpush.msrb.mxu2 %v6937_v61  ;;  %7805 = vst [vmem:[#allocation20_spill] sm:$0xff] %v7098_v58  ;;  %v7202_v39 = vand.u32 4294901760, %v186_v33 }
 0x20c   :  { %3696 = vmatpush.msrb.mxu1 %v3695_v28  ;;  %3849 = vmatpush.msrb.mxu3 %v6903_v16  ;;  %v222_v28 = vld [vmem:[#allocation2 + $0x5f8] sm:$0xff]  ;;  %v3749_v14 = vand.u32 4294901760, %v3748_v43 }
 0x20d   :  { %3661 = vmatpush.msrb.mxu0 %v6950_v31  ;;  %3803 = vmatpush.msrb.mxu2 %v6953_v7  ;;  %v7082_v37 = vand.u32 4294901760, %v222_v28  ;;  %v206_v43 = vld [vmem:[#allocation2 + $0x578] sm:$0xff] }
 0x20e   :  { %3702 = vmatpush.msrb.mxu1 %v3701_v12  ;;  %3851 = vmatpush.msrb.mxu3 %v6916_v29  ;;  %v7563_v12 = vand.u32 4294901760, %v7051_v19 }
 0x20f   :  { %3609 = vmatmul.f32.vlgmr.msra.gmra.mxu2 %v7802_v50  ;;  %3663 = vmatpush.msrb.mxu0 %v6967_v45  ;;  %v7105_v20 = vsub.f32 %v222_v28, %v7082_v37  ;;  %v7570_v28 = vand.u32 4294901760, %v7093_v1 }
 0x210   :  { %3708 = vmatpush.msrb.mxu1 %v3707_v59  ;;  %3806 = vmatpush.msrb.mxu2 %v6960_v32  ;;  %v3754_v59 = vsub.f32 %v7039_v42, %v7565_v60 }
 0x211   :  { %3853 = vmatpush.msrb.mxu3 %v6928_v3  ;;  %3501 = vmatmul.f32.vlgmr.msra.gmra.mxu0 %v7803_v2  ;;  %v7564_v2 = vand.u32 4294901760, %v7073_v8 }
 0x212   :  { %3646 = vmatmul.f32.vlgmr.msra.gmra.mxu3 %v7802_v50  ;;  %3665 = vmatpush.msrb.mxu0 %v6971_v34  ;;  %v98_v50 = vld [vmem:[#allocation2 + $0x218] sm:$0xff] }
 0x213   :  { %3714 = vmatpush.msrb.mxu1 %v3713_v54  ;;  %3809 = vmatpush.msrb.mxu2 %v6977_v62  ;;  %v7086_v54 = vand.u32 4294901760, %v98_v50 }
 0x214   :  { %3855 = vmatpush.msrb.mxu3 %v6934_v52  ;;  %3540 = vmatmul.f32.vlgmr.msra.gmra.mxu1 %v7804_v47  ;;  %v3755_v47 = vand.u32 4294901760, %v3754_v59  ;;  %v3772_v59 = vsub.f32 %v7073_v8, %v7564_v2  ;;  %v202_v2 = vld [vmem:[#allocation2 + $0x558] sm:$0xff] }
 0x215   :  { %3667 = vmatpush.msrb.mxu0 %v6987_v23  ;;  %3720 = vmatpush.msrb.mxu1 %v3719_v4  ;;  %v3760_v4 = vsub.f32 %v7051_v19, %v7563_v12  ;;  %v7110_v18 = vsub.f32 %v98_v50, %v7086_v54  ;;  %v7124_v50 = vsub.f32 %v218_v0, %v7098_v58  ;;  %v7128_v12 = vand.u32 4294901760, %v206_v43 }
 0x216   :  { %3812 = vmatpush.msrb.mxu2 %v6990_v15  ;;  %3857 = vmatpush.msrb.mxu3 %v6950_v31  ;;  %v3773_v0 = vand.u32 4294901760, %v3772_v59 }
 0x217   :  { %3669 = vmatpush.msrb.mxu0 %v7001_v46  ;;  %3726 = vmatpush.msrb.mxu1 %v3725_v44  ;;  %v210_v44 = vld [vmem:[#allocation2 + $0x598] sm:$0xff]  ;;  %v7573_v60 = vand.u32 4294901760, %v7110_v18  ;;  %v7575_v40 = vand.u32 4294901760, %v7124_v50  ;;  %v7153_v59 = vsub.f32 %v206_v43, %v7128_v12 }
 0x218   :  { %3815 = vmatpush.msrb.mxu2 %v6995_v17  ;;  %3859 = vmatpush.msrb.mxu3 %v6967_v45 }
 0x219   :  { %3671 = vmatpush.msrb.mxu0 %v7010_v27  ;;  %3732 = vmatpush.msrb.mxu1 %v3731_v5  ;;  %v3766_v5 = vsub.f32 %v7061_v63, %v7562_v53  ;;  %v7119_v53 = vand.u32 4294901760, %v210_v44  ;;  %v4041_v55 = vsub.f32 %v7124_v50, %v7575_v40 }
 0x21a   :  { %3818 = vmatpush.msrb.mxu2 %v7014_v26  ;;  %3861 = vmatpush.msrb.mxu3 %v6971_v34 }
 0x21b   :  { %3673 = vmatpush.msrb.mxu0 %v7024_v6  ;;  %3738 = vmatpush.msrb.mxu1 %v3737_v56  ;;  %v7112_v56 = vand.u32 4294901760, %v214_v22 }
 0x21c   :  { %3821 = vmatpush.msrb.mxu2 %v7027_v57  ;;  %3863 = vmatpush.msrb.mxu3 %v6987_v23 }
 0x21d   :  { %3675 = vmatpush.msrb.mxu0 %v7035_v24  ;;  %3744 = vmatpush.msrb.mxu1 %v3743_v35  ;;  %v3761_v35 = vand.u32 4294901760, %v3760_v4  ;;  %v7571_v4 = vand.u32 4294901760, %v7105_v20  ;;  %v7134_v30 = vsub.f32 %v214_v22, %v7112_v56  ;;  %v7146_v22 = vand.u32 4294901760, %v202_v2 }
 0x21e   :  { %3824 = vmatpush.msrb.mxu2 %v7039_v42  ;;  %3865 = vmatpush.msrb.mxu3 %v7001_v46 }
 0x21f   :  { %3677 = vmatpush.msrb.mxu0 %v7047_v25  ;;  %3750 = vmatpush.msrb.mxu1 %v3749_v14  ;;  %v3767_v14 = vand.u32 4294901760, %v3766_v5  ;;  %v7141_v5 = vsub.f32 %v210_v44, %v7119_v53  ;;  %v194_v44 = vld [vmem:[#allocation2 + $0x518] sm:$0xff] }
 0x220   :  { %3827 = vmatpush.msrb.mxu2 %v7051_v19  ;;  %3867 = vmatpush.msrb.mxu3 %v7010_v27 }
 0x221   :  { %3679 = vmatpush.msrb.mxu0 %v7069_v36  ;;  %3756 = vmatpush.msrb.mxu1 %v3755_v47  ;;  %v3778_v47 = vsub.f32 %v7093_v1, %v7570_v28  ;;  %v3784_v28 = vsub.f32 %v7110_v18, %v7573_v60  ;;  %v7578_v43 = vand.u32 4294901760, %v7141_v5  ;;  %v7175_v60 = vand.u32 4294901760, %v194_v44 }
 0x222   :  { %3830 = vmatpush.msrb.mxu2 %v7061_v63  ;;  %3869 = vmatpush.msrb.mxu3 %v7024_v6 }
 0x223   :  { %3681 = vmatpush.msrb.mxu0 %v7086_v54  ;;  %3762 = vmatpush.msrb.mxu1 %v3761_v35  ;;  %v4035_v35 = vsub.f32 %v7105_v20, %v7571_v4  ;;  %v3779_v4 = vand.u32 4294901760, %v3778_v47  ;;  %v4053_v61 = vsub.f32 %v7141_v5, %v7578_v43 }
 0x224   :  { %3833 = vmatpush.msrb.mxu2 %v7073_v8  ;;  %3871 = vmatpush.msrb.mxu3 %v7035_v24 }
 0x225   :  { %3687 = vmatmul.f32.vlgmr.msrb.gmra.mxu0 %v7806_v41  ;;  %3768 = vmatpush.msrb.mxu1 %v3767_v14  ;;  %v7577_v41 = vand.u32 4294901760, %v7134_v30  ;;  %v7162_v14 = vand.u32 4294901760, %v198_v49  ;;  %v4036_v47 = vand.u32 4294901760, %v4035_v35  ;;  %v7808_v35 = vld [vmem:[#allocation13_spill] sm:$0xff] }
 0x226   :  { %3888 = vmatpush.msra.mxu0 %v3693_v13  ;;  %3836 = vmatpush.msrb.mxu2 %v7093_v1  ;;  %v7173_v13 = vsub.f32 %v202_v2, %v7146_v22 }
 0x227   :  { %3873 = vmatpush.msrb.mxu3 %v7047_v25  ;;  %3774 = vmatpush.msrb.mxu1 %v3773_v0  ;;  %v7807_v0 = vld [vmem:[#allocation12_spill] sm:$0xff]  ;;  %v4047_v2 = vsub.f32 %v7134_v30, %v7577_v41  ;;  %v7187_v40 = vsub.f32 %v198_v49, %v7162_v14  ;;  %v7200_v49 = vsub.f32 %v194_v44, %v7175_v60  ;;  %v7812_v41 = vld [vmem:[#allocation10_spill] sm:$0xff] }
 0x228   :  { %3892 = vmatpush.msra.mxu0 %v3699_v38  ;;  %3839 = vmatpush.msrb.mxu2 %v7110_v18  ;;  %v3785_v38 = vand.u32 4294901760, %v3784_v28  ;;  %v7809_v28 = vand.u32 4294901760, %v6953_v7  ;;  %v7811_v7 = vand.u32 4294901760, %v6960_v32  ;;  %v7212_v44 = vsub.f32 %v190_v11, %v7189_v10 }
 0x229   :  { %3875 = vmatpush.msrb.mxu3 %v7069_v36  ;;  %3842 = vmatmul.f32.vlgmr.msrb.gmra.mxu2 %v7807_v0  ;;  %v4042_v0 = vand.u32 4294901760, %v4041_v55  ;;  %v4048_v55 = vand.u32 4294901760, %v4047_v2  ;;  %v7813_v32 = vand.u32 4294901760, %v7173_v13  ;;  %v7224_v11 = vsub.f32 %v186_v33, %v7202_v39  ;;  %v170_v2 = vld [vmem:[#allocation2 + $0x458] sm:$0xff] }
 0x22a   :  { %3896 = vmatpush.msra.mxu0 %v3705_v21  ;;  %3992 = vmatpush.msra.mxu2 %v7082_v37  ;;  %v182_v21 = vld [vmem:[#allocation2 + $0x4b8] sm:$0xff] }
 0x22b   :  { %3780 = vmatpush.msrb.mxu1 %v3779_v4  ;;  %3877 = vmatpush.msrb.mxu3 %v7086_v54  ;;  %v7810_v4 = vand.u32 4294901760, %v7153_v59 }
 0x22c   :  { %3881 = vmatmul.f32.vlgmr.msrb.gmra.mxu3 %v7808_v35  ;;  %3900 = vmatpush.msra.mxu0 %v7809_v28  ;;  %v7581_v35 = vand.u32 4294901760, %v7187_v40  ;;  %v7214_v28 = vand.u32 4294901760, %v182_v21 }
 0x22d   :  { %3994 = vmatpush.msra.mxu2 %v7098_v58  ;;  %4037 = vmatpush.msra.mxu3 %v4036_v47  ;;  %v4059_v43 = vsub.f32 %v7153_v59, %v7810_v4  ;;  %v4054_v47 = vand.u32 4294901760, %v4053_v61  ;;  %v174_v58 = vld [vmem:[#allocation2 + $0x478] sm:$0xff]  ;;  %v7226_v4 = vand.u32 4294901760, %v178_v9 }
 0x22e   :  { %3786 = vmatpush.msrb.mxu1 %v3785_v38  ;;  %3904 = vmatpush.msra.mxu0 %v7811_v7  ;;  %v4065_v38 = vsub.f32 %v7173_v13, %v7813_v32  ;;  %v7814_v7 = vand.u32 4294901760, %v6977_v62  ;;  %v7237_v33 = vsub.f32 %v182_v21, %v7214_v28  ;;  %v7239_v32 = vand.u32 4294901760, %v174_v58 }
 0x22f   :  { %3788 = vmatmul.f32.vlgmr.msrb.gmra.mxu1 %v7812_v41  ;;  %3996 = vmatpush.msra.mxu2 %v7112_v56  ;;  %v4060_v61 = vand.u32 4294901760, %v4059_v43  ;;  %v7815_v62 = vand.u32 4294901760, %v6990_v15  ;;  %v7816_v43 = vand.u32 4294901760, %v7200_v49  ;;  %v7250_v21 = vsub.f32 %v178_v9, %v7226_v4 }
 0x230   :  { %3955 = vmatpush.msra.mxu1 %v6896_v48  ;;  %4043 = vmatpush.msra.mxu3 %v4042_v0  ;;  %v4071_v48 = vsub.f32 %v7187_v40, %v7581_v35  ;;  %v166_v35 = vld [vmem:[#allocation2 + $0x438] sm:$0xff]  ;;  %v7817_v0 = vand.u32 4294901760, %v6995_v17  ;;  %v7255_v15 = vand.u32 4294901760, %v170_v2  ;;  %v7263_v9 = vsub.f32 %v174_v58, %v7239_v32 }
 0x231   :  { %3908 = vmatpush.msra.mxu0 %v7814_v7  ;;  %3998 = vmatpush.msra.mxu2 %v7119_v53  ;;  %v4088_v7 = vand.u32 4294901760, %v7224_v11  ;;  %v7819_v17 = vand.u32 4294901760, %v7014_v26  ;;  %v7820_v58 = vand.u32 4294901760, %v7027_v57  ;;  %v7821_v57 = vand.u32 4294901760, %v7039_v42 }
 0x232   :  { %3957 = vmatpush.msra.mxu1 %v6903_v16  ;;  %4049 = vmatpush.msra.mxu3 %v4048_v55  ;;  %v4066_v16 = vand.u32 4294901760, %v4065_v38  ;;  %v4077_v55 = vsub.f32 %v7200_v49, %v7816_v43  ;;  %v162_v43 = vld [vmem:[#allocation2 + $0x418] sm:$0xff]  ;;  %v7279_v26 = vsub.f32 %v170_v2, %v7255_v15 }
 0x233   :  { %3912 = vmatpush.msra.mxu0 %v7815_v62  ;;  %4000 = vmatpush.msra.mxu2 %v7128_v12  ;;  %v4094_v62 = vand.u32 4294901760, %v7237_v33 }
 0x234   :  { %3959 = vmatpush.msra.mxu1 %v6916_v29  ;;  %4055 = vmatpush.msra.mxu3 %v4054_v47  ;;  %v4072_v29 = vand.u32 4294901760, %v4071_v48  ;;  %v7818_v47 = vand.u32 4294901760, %v7212_v44  ;;  %v4100_v48 = vand.u32 4294901760, %v7250_v21  ;;  %v4112_v42 = vand.u32 4294901760, %v7279_v26 }
 0x235   :  { %3916 = vmatpush.msra.mxu0 %v7817_v0  ;;  %4002 = vmatpush.msra.mxu2 %v7146_v22  ;;  %v7268_v0 = vand.u32 4294901760, %v166_v35 }
 0x236   :  { %3961 = vmatpush.msra.mxu1 %v6928_v3  ;;  %4061 = vmatpush.msra.mxu3 %v4060_v61  ;;  %v4083_v38 = vsub.f32 %v7212_v44, %v7818_v47  ;;  %v4078_v3 = vand.u32 4294901760, %v4077_v55  ;;  %v4089_v61 = vsub.f32 %v7224_v11, %v4088_v7  ;;  %v7281_v47 = vand.u32 4294901760, %v162_v43 }
 0x237   :  { %3920 = vmatpush.msra.mxu0 %v7819_v17  ;;  %4004 = vmatpush.msra.mxu2 %v7162_v14  ;;  %v4106_v55 = vand.u32 4294901760, %v7263_v9  ;;  %v7292_v2 = vsub.f32 %v166_v35, %v7268_v0 }
 0x238   :  { %3963 = vmatpush.msra.mxu1 %v6934_v52  ;;  %4067 = vmatpush.msra.mxu3 %v4066_v16  ;;  %v4084_v52 = vand.u32 4294901760, %v4083_v38  ;;  %v4095_v16 = vsub.f32 %v7237_v33, %v4094_v62  ;;  %v7822_v38 = vand.u32 4294901760, %v7051_v19  ;;  %v7303_v17 = vsub.f32 %v162_v43, %v7281_v47 }
 0x239   :  { %3924 = vmatpush.msra.mxu0 %v7820_v58  ;;  %4006 = vmatpush.msra.mxu2 %v7175_v60  ;;  %v4107_v35 = vsub.f32 %v7263_v9, %v4106_v55  ;;  %v4118_v19 = vand.u32 4294901760, %v7292_v2 }
 0x23a   :  { %3965 = vmatpush.msra.mxu1 %v6950_v31  ;;  %4073 = vmatpush.msra.mxu3 %v4072_v29  ;;  %v4090_v31 = vand.u32 4294901760, %v4089_v61  ;;  %v4101_v29 = vsub.f32 %v7250_v21, %v4100_v48  ;;  %v7824_v61 = vand.u32 4294901760, %v7073_v8  ;;  %v7826_v8 = vand.u32 4294901760, %v7110_v18 }
 0x23b   :  { %3928 = vmatpush.msra.mxu0 %v7821_v57  ;;  %4008 = vmatpush.msra.mxu2 %v7189_v10  ;;  %v4108_v58 = vand.u32 4294901760, %v4107_v35  ;;  %v7828_v18 = vand.u32 4294901760, %v7105_v20 }
 0x23c   :  { %3967 = vmatpush.msra.mxu1 %v6967_v45  ;;  %4079 = vmatpush.msra.mxu3 %v4078_v3  ;;  %v4096_v45 = vand.u32 4294901760, %v4095_v16  ;;  %v7823_v3 = vand.u32 4294901760, %v7061_v63  ;;  %v4102_v43 = vand.u32 4294901760, %v4101_v29  ;;  %v4124_v63 = vand.u32 4294901760, %v7303_v17 }
 0x23d   :  { %3932 = vmatpush.msra.mxu0 %v7822_v38  ;;  %4010 = vmatpush.msra.mxu2 %v7202_v39 }
 0x23e   :  { %3969 = vmatpush.msra.mxu1 %v6971_v34  ;;  %4085 = vmatpush.msra.mxu3 %v4084_v52  ;;  %v4113_v34 = vsub.f32 %v7279_v26, %v4112_v42  ;;  %v7825_v52 = vand.u32 4294901760, %v7093_v1  ;;  %v4125_v1 = vsub.f32 %v7303_v17, %v4124_v63 }
 0x23f   :  { %3936 = vmatpush.msra.mxu0 %v7823_v3  ;;  %4012 = vmatpush.msra.mxu2 %v7214_v28 }
 0x240   :  { %3971 = vmatpush.msra.mxu1 %v6987_v23  ;;  %4091 = vmatpush.msra.mxu3 %v4090_v31  ;;  %v4119_v23 = vsub.f32 %v7292_v2, %v4118_v19 }
 0x241   :  { %3940 = vmatpush.msra.mxu0 %v7824_v61  ;;  %4014 = vmatpush.msra.mxu2 %v7226_v4 }
 0x242   :  { %3973 = vmatpush.msra.mxu1 %v7001_v46  ;;  %4097 = vmatpush.msra.mxu3 %v4096_v45  ;;  %v4114_v46 = vand.u32 4294901760, %v4113_v34  ;;  %v4120_v16 = vand.u32 4294901760, %v4119_v23 }
 0x243   :  { %3944 = vmatpush.msra.mxu0 %v7825_v52  ;;  %4016 = vmatpush.msra.mxu2 %v7239_v32 }
 0x244   :  { %3975 = vmatpush.msra.mxu1 %v7010_v27  ;;  %4103 = vmatpush.msra.mxu3 %v4102_v43  ;;  %v4126_v27 = vand.u32 4294901760, %v4125_v1 }
 0x245   :  { %3948 = vmatpush.msra.mxu0 %v7826_v8  ;;  %4018 = vmatpush.msra.mxu2 %v7255_v15 }
 0x246   :  { %3977 = vmatpush.msra.mxu1 %v7024_v6  ;;  %4109 = vmatpush.msra.mxu3 %v4108_v58  ;;  %v7827_v6 = vld [vmem:[#allocation16_spill] sm:$0xff] }
 0x247   :  { %3950 = vmatmul.f32.vlgmr.msra.gmra.mxu0 %v7812_v41  ;;  %4020 = vmatpush.msra.mxu2 %v7268_v0 }
 0x248   :  { %4135 = vmatpush.msrb.mxu0 %v7105_v20  ;;  %3979 = vmatpush.msra.mxu1 %v7035_v24  ;;  %v7829_v24 = vand.u32 4294901760, %v7124_v50  ;;  %v7832_v20 = vand.u32 4294901760, %v7141_v5 }
 0x249   :  { %4115 = vmatpush.msra.mxu3 %v4114_v46  ;;  %4022 = vmatpush.msra.mxu2 %v7281_v47 }
 0x24a   :  { %4138 = vmatpush.msrb.mxu0 %v7124_v50  ;;  %3981 = vmatpush.msra.mxu1 %v7047_v25  ;;  %v7830_v25 = vand.u32 4294901760, %v7134_v30  ;;  %v2518_v50 = vpop.f32.mrf.mxu3 }
 0x24b   :  { %4121 = vmatpush.msra.mxu3 %v4120_v16  ;;  %4028 = vmatmul.f32.vlgmr.msra.gmra.mxu2 %v7827_v6 }
 0x24c   :  { %4141 = vmatpush.msrb.mxu0 %v7134_v30  ;;  %4229 = vmatpush.msrb.mxu2 %v7828_v18  ;;  %v7834_v30 = vand.u32 4294901760, %v7173_v13 }
 0x24d   :  { %3983 = vmatpush.msra.mxu1 %v7069_v36  ;;  %4127 = vmatpush.msra.mxu3 %v4126_v27  ;;  %v7831_v36 = vld [vmem:[#allocation20_spill] sm:$0xff] }
 0x24e   :  { %4129 = vmatmul.f32.vlgmr.msra.gmra.mxu3 %v7776_v51  ;;  %4144 = vmatpush.msrb.mxu0 %v7141_v5 }
 0x24f   :  { %4233 = vmatpush.msrb.mxu2 %v7829_v24  ;;  %4296 = vmatpush.msrb.mxu3 %v7082_v37 }
 0x250   :  { %3985 = vmatpush.msra.mxu1 %v7086_v54  ;;  %4147 = vmatpush.msrb.mxu0 %v7153_v59  ;;  %v7833_v54 = vand.u32 4294901760, %v7153_v59 }
 0x251   :  { %3987 = vmatmul.f32.vlgmr.msra.gmra.mxu1 %v7812_v41  ;;  %4237 = vmatpush.msrb.mxu2 %v7830_v25 }
 0x252   :  { %4188 = vmatpush.msrb.mxu1 %v7082_v37  ;;  %4298 = vmatpush.msrb.mxu3 %v7831_v36  ;;  %v7835_v37 = vand.u32 4294901760, %v7187_v40  ;;  %v2766_v41 = vpop.f32.mrf.mxu3 }
 0x253   :  { %4150 = vmatpush.msrb.mxu0 %v7173_v13  ;;  %4241 = vmatpush.msrb.mxu2 %v7832_v20 }
 0x254   :  { %4190 = vmatpush.msrb.mxu1 %v7831_v36  ;;  %4300 = vmatpush.msrb.mxu3 %v7112_v56 }
 0x255   :  { %4153 = vmatpush.msrb.mxu0 %v7187_v40  ;;  %4245 = vmatpush.msrb.mxu2 %v7833_v54  ;;  %v2324_v40 = vpop.f32.mrf.mxu0 }
 0x256   :  { %4192 = vmatpush.msrb.mxu1 %v7112_v56  ;;  %4302 = vmatpush.msrb.mxu3 %v7119_v53  ;;  %v7836_v56 = vand.u32 4294901760, %v7200_v49 }
 0x257   :  { %4156 = vmatpush.msrb.mxu0 %v7200_v49  ;;  %4249 = vmatpush.msrb.mxu2 %v7834_v30 }
 0x258   :  { %4194 = vmatpush.msrb.mxu1 %v7119_v53  ;;  %4304 = vmatpush.msrb.mxu3 %v7128_v12  ;;  %v7837_v53 = vand.u32 4294901760, %v7212_v44 }
 0x259   :  { %4159 = vmatpush.msrb.mxu0 %v7212_v44  ;;  %4253 = vmatpush.msrb.mxu2 %v7835_v37 }
 0x25a   :  { %4196 = vmatpush.msrb.mxu1 %v7128_v12  ;;  %4306 = vmatpush.msrb.mxu3 %v7146_v22  ;;  %v2425_v12 = vpop.f32.mrf.mxu1  ;;  %v2965_v44 = vpop.f32.mrf.mxu3 }
 0x25b   :  { %4162 = vmatpush.msrb.mxu0 %v7224_v11  ;;  %4257 = vmatpush.msrb.mxu2 %v7836_v56 }
 0x25c   :  { %4198 = vmatpush.msrb.mxu1 %v7146_v22  ;;  %4308 = vmatpush.msrb.mxu3 %v7162_v14 }
 0x25d   :  { %4165 = vmatpush.msrb.mxu0 %v7237_v33  ;;  %4261 = vmatpush.msrb.mxu2 %v7837_v53  ;;  %v2587_v5 = vpop.f32.mrf.mxu0 }
 0x25e   :  { %4200 = vmatpush.msrb.mxu1 %v7162_v14  ;;  %4310 = vmatpush.msrb.mxu3 %v7175_v60 }
 0x25f   :  { %4168 = vmatpush.msrb.mxu0 %v7250_v21  ;;  %4265 = vmatpush.msrb.mxu2 %v4088_v7 }
 0x260   :  { %4202 = vmatpush.msrb.mxu1 %v7175_v60  ;;  %4312 = vmatpush.msrb.mxu3 %v7189_v10  ;;  %v2479_v60 = vpop.f32.mrf.mxu2 }
 0x261   :  { %4171 = vmatpush.msrb.mxu0 %v7263_v9  ;;  %4269 = vmatpush.msrb.mxu2 %v4094_v62 }
 0x262   :  { %4204 = vmatpush.msrb.mxu1 %v7189_v10  ;;  %4314 = vmatpush.msrb.mxu3 %v7202_v39  ;;  %v7838_v10 = vld [vmem:[#allocation14_spill] sm:$0xff]  ;;  %v2624_v59 = vpop.f32.mrf.mxu1 }
 0x263   :  { %4174 = vmatpush.msrb.mxu0 %v7279_v26  ;;  %4273 = vmatpush.msrb.mxu2 %v4100_v48 }
 0x264   :  { %4206 = vmatpush.msrb.mxu1 %v7202_v39  ;;  %4316 = vmatpush.msrb.mxu3 %v7214_v28  ;;  %v7839_v39 = vld [vmem:[#allocation15_spill] sm:$0xff] }
 0x265   :  { %4177 = vmatpush.msrb.mxu0 %v7292_v2  ;;  %4277 = vmatpush.msrb.mxu2 %v4106_v55  ;;  %v2820_v14 = vpop.f32.mrf.mxu0 }
 0x266   :  { %4208 = vmatpush.msrb.mxu1 %v7214_v28  ;;  %4318 = vmatpush.msrb.mxu3 %v7226_v4 }
 0x267   :  { %4180 = vmatpush.msrb.mxu0 %v7303_v17  ;;  %4281 = vmatpush.msrb.mxu2 %v4112_v42 }
 0x268   :  { %4210 = vmatpush.msrb.mxu1 %v7226_v4  ;;  %4320 = vmatpush.msrb.mxu3 %v7239_v32  ;;  %v2665_v22 = vpop.f32.mrf.mxu2 }
 0x269   :  { %4183 = vmatmul.f32.vlgmr.msrb.gmra.mxu0 %v7838_v10  ;;  %4285 = vmatpush.msrb.mxu2 %v4118_v19 }
 0x26a   :  { %4212 = vmatpush.msrb.mxu1 %v7239_v32  ;;  %4322 = vmatpush.msrb.mxu3 %v7255_v15  ;;  %v2859_v49 = vpop.f32.mrf.mxu1  ;;  %v3200_v32 = vpop.f32.mrf.mxu3 }
 0x26b   :  { %4289 = vmatpush.msrb.mxu2 %v4124_v63 }
 0x26c   :  { %4214 = vmatpush.msrb.mxu1 %v7255_v15  ;;  %4324 = vmatpush.msrb.mxu3 %v7268_v0 }
 0x26d   :  { %4291 = vmatmul.f32.vlgmr.msrb.gmra.mxu2 %v7776_v51  ;;  %v3006_v28 = vpop.f32.mrf.mxu0 }
 0x26e   :  { %4216 = vmatpush.msrb.mxu1 %v7268_v0  ;;  %4326 = vmatpush.msrb.mxu3 %v7281_v47 }
 0x26f   :  { %4328 = vmatmul.f32.vlgmr.msrb.gmra.mxu3 %v7776_v51  ;;  %v4360_v51 = vld [vmem:[%s7439_s2] sm:$0xf] }
 0x270   :  { %4218 = vmatpush.msrb.mxu1 %v7281_v47  ;;  %v2928_v13 = vpop.f32.mrf.mxu2  ;;  %v234_v4 = vperm.slane %v4360_v51, 2  ;;  %v235_v21 = vperm.slane %v4360_v51, 3 }
 0x271   :  { %4222 = vmatmul.f32.vlgmr.msrb.gmra.mxu1 %v7839_v39 }
 0x272   :  { %v3107_v33 = vpop.f32.mrf.mxu1  ;;  %v2325_v7 = vadd.f32 %v2324_v40, %v234_v4 }
 0x274   :  { %v2426_v9 = vadd.f32 %v2425_v12, %v2325_v7 }
 0x275   :  { %v3269_v15 = vpop.f32.mrf.mxu0 }
 0x276   :  { %v2480_v47 = vadd.f32 %v2479_v60, %v2426_v9 }
 0x278   :  { %v3161_v11 = vpop.f32.mrf.mxu2  ;;  %v2519_v2 = vadd.f32 %v2518_v50, %v2480_v47 }
 0x27a   :  { %v3306_v48 = vpop.f32.mrf.mxu1  ;;  %v2588_v38 = vadd.f32 %v2587_v5, %v2519_v2 }
 0x27c   :  { %v2625_v45 = vadd.f32 %v2624_v59, %v2588_v38 }
 0x27e   :  { %v2666_v19 = vadd.f32 %v2665_v22, %v2625_v45 }
 0x280   :  { %v2767_v63 = vadd.f32 %v2766_v41, %v2666_v19 }
 0x282   :  { %v2821_v52 = vadd.f32 %v2820_v14, %v2767_v63 }
 0x284   :  { %v2860_v46 = vadd.f32 %v2859_v49, %v2821_v52  ;;  %v4346_v49 = vlaneseq }
 0x286   :  { %v2929_v27 = vadd.f32 %v2928_v13, %v2860_v46  ;;  %vm4348_vm3 = vcmp.lt.s32.totalorder %v4346_v49, 512 }
 0x288   :  { %v2966_v25 = vadd.f32 %v2965_v44, %v2929_v27 }
 0x289   :  { %v3347_v62 = vpop.f32.mrf.mxu2 }
 0x28a   :  { %v3348_v0 = vadd.f32 %v3347_v62, %v235_v21  ;;  %v3007_v20 = vadd.f32 %v3006_v28, %v2966_v25 }
 0x28c   :  { %v3448_v26 = vpop.f32.mrf.mxu3  ;;  %v3108_v37 = vadd.f32 %v3107_v33, %v3007_v20 }
 0x28d   :  { %v3449_v55 = vadd.f32 %v3448_v26, %v3348_v0 }
 0x28e   :  { %v3502_v57 = vpop.f32.mrf.mxu0  ;;  %v3162_v10 = vadd.f32 %v3161_v11, %v3108_v37  ;;  %v7840_v11 = vld [vmem:[#allocation19_spill] sm:$0xff] }
 0x28f   :  { %v3503_v31 = vadd.f32 %v3502_v57, %v3449_v55 }
 0x290   :  { %v3201_v60 = vadd.f32 %v3200_v32, %v3162_v10 }
 0x291   :  { %v3541_v29 = vpop.f32.mrf.mxu1 }
 0x292   :  { %v3542_v42 = vadd.f32 %v3541_v29, %v3503_v31  ;;  %v3610_v17 = vpop.f32.mrf.mxu2  ;;  %v3270_v5 = vadd.f32 %v3269_v15, %v3201_v60 }
 0x294   :  { %v3611_v35 = vadd.f32 %v3610_v17, %v3542_v42  ;;  %v3307_v41 = vadd.f32 %v3306_v48, %v3270_v5 }
 0x295   :  { %v3647_v3 = vpop.f32.mrf.mxu3 }
 0x296   :  { %v3648_v61 = vadd.f32 %v3647_v3, %v3611_v35  ;;  %v4337_v28 = vrot.slane %v3307_v41, 6 }
 0x2a2   :  { %v3688_v43 = vpop.f32.mrf.mxu0 }
 0x2a3   :  { %v3689_v58 = vadd.f32 %v3688_v43, %v3648_v61 }
 0x2ac   :  { %v3789_v34 = vpop.f32.mrf.mxu1  ;;  %v3843_v8 = vpop.f32.mrf.mxu2 }
 0x2ad   :  { %v3790_v23 = vadd.f32 %v3789_v34, %v3689_v58 }
 0x2af   :  { %v3844_v1 = vadd.f32 %v3843_v8, %v3790_v23  ;;  %v3882_v16 = vpop.f32.mrf.mxu3 }
 0x2b1   :  { %v3883_v18 = vadd.f32 %v3882_v16, %v3844_v1 }
 0x2c4   :  { %v3951_v6 = vpop.f32.mrf.mxu0 }
 0x2c5   :  { %v3952_v36 = vadd.f32 %v3951_v6, %v3883_v18 }
 0x2ce   :  { %v3988_v24 = vpop.f32.mrf.mxu1  ;;  %v4029_v30 = vpop.f32.mrf.mxu2 }
 0x2cf   :  { %v3989_v54 = vadd.f32 %v3988_v24, %v3952_v36 }
 0x2d1   :  { %v4030_v56 = vadd.f32 %v4029_v30, %v3989_v54  ;;  %v4130_v53 = vpop.f32.mrf.mxu3 }
 0x2d3   :  { %v4131_v40 = vadd.f32 %v4130_v53, %v4030_v56 }
 0x2e6   :  { %v4184_v39 = vpop.f32.mrf.mxu0 }
 0x2e7   :  { %v4185_v12 = vadd.f32 %v4184_v39, %v4131_v40 }
 0x2ee   :  { %v4223_v50 = vpop.f32.mrf.mxu1 }
 0x2ef   :  { %v4224_v22 = vadd.f32 %v4223_v50, %v4185_v12 }
 0x2f0   :  { %v4292_v59 = vpop.f32.mrf.mxu2 }
 0x2f1   :  { %v4293_v14 = vadd.f32 %v4292_v59, %v4224_v22 }
 0x2f2   :  { %v4329_v13 = vpop.f32.mrf.mxu3 }
 0x2f3   :  { %v4330_v44 = vadd.f32 %v4329_v13, %v4293_v14 }
 0x2f5   :  { %v4338_v51 = vrot.slane %v4330_v44, 5 }
 0x2f7   :  { %v4342_v4 = vsel %vm4341_vm1, %v4337_v28, %v4338_v51 }
 0x2f8   :  { %v4344_v33 = vsel %vm4343_vm2, %v7840_v11, %v4342_v4 }
 0x2f9   :  { %4350 = vst.msk [vmem:[%s7440_s3] sm:$0xf] %vm4348_vm3, %v4344_v33 }
 0x2fa   :  { %4355 = vsyncpa [#allocation3], 1 }

</bundles_post_ra>
